<compile_context>
chip_gen: v6e
topology: v6e:2x2x1
jax: 0.10.0
libtpu: 0.0.40
codegen_flags: <defaults>
</compile_context>

<pallas_src>
import jax
import jax.numpy as jnp
from jax.experimental import pallas as pl
from jax.experimental.pallas import tpu as pltpu

NFC = 1024
NFC2 = 512
BN_EPS = 1e-5
LRELU_SLOPE = 0.2
OUT_LANES = 128  # lane-dense output width (column 0 holds the real result)


def _bn_lrelu(h, gamma, beta, eps_col, inv_b):
    """Training-mode BatchNorm1d + LeakyReLU(0.2); one-pass stats, fused affine.

    `eps_col` is BN eps pre-scaled per output column so int8 weight columns can
    feed the MXU without dequant: with h' = c_j * h_j (c_j = 127/s_j),
    BN(h', eps * c_j^2) == BN(h, eps) exactly (batch-stat normalization is
    invariant to per-column scaling).
    """
    s1 = jnp.sum(h, axis=0, keepdims=True)
    s2 = jnp.sum(h * h, axis=0, keepdims=True)
    mean = s1 * inv_b
    # One-pass variance (E[h^2]-E[h]^2) can go slightly negative in f32; clamp
    # so rsqrt never sees a negative argument.
    var = jnp.maximum(s2 * inv_b - mean * mean, 0.0)
    scale = gamma * jax.lax.rsqrt(var + eps_col)
    shift = beta - mean * scale
    hn = h * scale + shift
    return jnp.where(hn > 0, hn, LRELU_SLOPE * hn)


def encd_kernel(
    x_ref,
    w1_ref, g1_ref, be1_ref, e1_ref,
    w2_hbm, g2_ref, be2_ref, e2_ref,
    w3_hbm, g3_ref, be3_ref, e3_ref,
    w4_ref, b4_ref,
    o_ref,
    w2_vmem, w3_vmem, dma_sem,
):
    # Kick off the two large int8 weight DMAs immediately so they stream from
    # HBM while the layer-1 (and layer-2) matmul/BN run.
    cp2 = pltpu.make_async_copy(w2_hbm, w2_vmem, dma_sem.at[0])
    cp3 = pltpu.make_async_copy(w3_hbm, w3_vmem, dma_sem.at[1])
    cp2.start()
    cp3.start()

    B = x_ref.shape[0]
    inv_b = 1.0 / B  # static at trace time

    # Block 1: Linear(nlatent, 1024) + BN + LeakyReLU (bf16 weight, bias cancels).
    h = jnp.dot(x_ref[...].astype(jnp.bfloat16), w1_ref[...],
                preferred_element_type=jnp.float32)
    h = _bn_lrelu(h, g1_ref[...], be1_ref[...], e1_ref[...], inv_b)

    # Block 2: Linear(1024, 1024) + BN + LeakyReLU (int8 weight, no dequant).
    cp2.wait()
    w2 = w2_vmem[...].astype(jnp.float32).astype(jnp.bfloat16)  # ints <= 127 exact in bf16
    h = jnp.dot(h.astype(jnp.bfloat16), w2, preferred_element_type=jnp.float32)
    h = _bn_lrelu(h, g2_ref[...], be2_ref[...], e2_ref[...], inv_b)

    # Block 3: Linear(1024, 512) + BN + LeakyReLU (int8 weight, no dequant).
    cp3.wait()
    w3 = w3_vmem[...].astype(jnp.float32).astype(jnp.bfloat16)
    h = jnp.dot(h.astype(jnp.bfloat16), w3, preferred_element_type=jnp.float32)
    h = _bn_lrelu(h, g3_ref[...], be3_ref[...], e3_ref[...], inv_b)

    # Head: Linear(512, 1) + Sigmoid via VPU multiply + lane (XLU) reduction.
    # A (512,128) zero-padded MXU dot was considered (review item) but rejected
    # for the small/medium-B DMA-bound regime: it adds 64-128 KB of padding
    # bytes to HBM for an epilogue saving that only matters at B >= ~512.
    logits = jnp.sum(h * w4_ref[...], axis=-1, keepdims=True) + b4_ref[...]
    sig = 1.0 / (1.0 + jnp.exp(-logits))
    o_ref[...] = jnp.broadcast_to(sig, o_ref.shape).astype(o_ref.dtype)


def _vmem_limit_bytes(B, nlat):
    """Rough live-set estimate; floor 32 MiB, ceiling 100 MiB (v5e/v6e)."""
    w_resident = NFC * NFC + NFC * NFC2 + 2 * 2 * nlat * NFC   # int8 scratch + dbl-buffered bf16 w1
    w_upcast = (4 + 2) * NFC * NFC                              # f32 + bf16 temporaries of the w2 cast
    act = B * (4 * nlat + (4 + 4 + 2) * NFC + 4 * NFC2 + 2 * 4 * OUT_LANES)
    est = w_resident + w_upcast + act + (8 << 20)               # small params + compiler headroom
    # TODO(synk): on v7x (64 MiB physical VMEM) cap at ~48 MiB and batch-tile.
    return int(min(max(est, 32 << 20), 100 << 20))


@jax.jit
def encd_forward(x, kparams):
    B, nlat = x.shape
    args = (
        x,
        kparams["w1"], kparams["g1"], kparams["be1"], kparams["e1"],
        kparams["w2q"], kparams["g2"], kparams["be2"], kparams["e2"],
        kparams["w3q"], kparams["g3"], kparams["be3"], kparams["e3"],
        kparams["w4_row"], kparams["b4"],
    )
    vmem = pl.BlockSpec(memory_space=pltpu.MemorySpace.VMEM)
    hbm = pl.BlockSpec(memory_space=pl.ANY)          # stay in HBM; kernel DMAs manually
    in_specs = [
        vmem,
        vmem, vmem, vmem, vmem,
        hbm, vmem, vmem, vmem,
        hbm, vmem, vmem, vmem,
        vmem, vmem,
    ]

    weight_bytes = 2 * nlat * NFC + NFC * NFC + NFC * NFC2      # bf16 w1 + int8 w2/w3
    param_bytes = 4 * (6 * NFC + 4 * NFC2 + 1)                  # gammas/betas/eps_cols/w4/b4
    io_bytes = 4 * (B * nlat + B * OUT_LANES)
    cost = pl.CostEstimate(
        flops=2 * B * (nlat * NFC + NFC * NFC + NFC * NFC2 + NFC2),
        transcendentals=B + 2 * NFC + NFC2,                     # sigmoid exps + rsqrts
        bytes_accessed=weight_bytes + param_bytes + io_bytes,
    )

    out = pl.pallas_call(
        encd_kernel,
        out_shape=jax.ShapeDtypeStruct((B, OUT_LANES), jnp.float32),
        in_specs=in_specs,
        out_specs=vmem,
        scratch_shapes=[
            pltpu.VMEM((NFC, NFC), jnp.int8),    # w2 landing buffer
            pltpu.VMEM((NFC, NFC2), jnp.int8),   # w3 landing buffer
            pltpu.SemaphoreType.DMA((2,)),
        ],
        compiler_params=pltpu.CompilerParams(
            vmem_limit_bytes=_vmem_limit_bytes(B, nlat)),
        cost_estimate=cost,
    )(*args)
    return out[:, :1]


def init_params(key, nlatentdim):
    """PyTorch-Linear-style uniform init, f32 (full parameter set incl. biases)."""
    def linear(k, fan_in, fan_out):
        kw, kb = jax.random.split(k)
        bound = 1.0 / (fan_in ** 0.5)
        w = jax.random.uniform(kw, (fan_in, fan_out), jnp.float32, -bound, bound)
        b = jax.random.uniform(kb, (1, fan_out), jnp.float32, -bound, bound)
        return w, b

    k1, k2, k3, k4 = jax.random.split(key, 4)
    w1, b1 = linear(k1, nlatentdim, NFC)
    w2, b2 = linear(k2, NFC, NFC)
    w3, b3 = linear(k3, NFC, NFC2)
    w4, b4 = linear(k4, NFC2, 1)
    return {
        "w1": w1, "b1": b1,
        "g1": jnp.ones((1, NFC), jnp.float32), "be1": jnp.zeros((1, NFC), jnp.float32),
        "w2": w2, "b2": b2,
        "g2": jnp.ones((1, NFC), jnp.float32), "be2": jnp.zeros((1, NFC), jnp.float32),
        "w3": w3, "b3": b3,
        "g3": jnp.ones((1, NFC2), jnp.float32), "be3": jnp.zeros((1, NFC2), jnp.float32),
        "w4": w4, "b4": b4,
    }


def _quantize_per_out_col(w):
    """Symmetric int8 quantization per OUTPUT column; returns (int8 weights, scale)."""
    s = jnp.maximum(jnp.max(jnp.abs(w), axis=0, keepdims=True), 1e-12)  # (1, out)
    q = jnp.clip(jnp.round(w * (127.0 / s)), -127.0, 127.0).astype(jnp.int8)
    return q, s


def to_kernel_params(p):
    """bf16 w1, int8 w2/w3 (per-column), BN eps pre-scaled per column, no pre-BN biases."""
    w2q, s2 = _quantize_per_out_col(p["w2"])
    w3q, s3 = _quantize_per_out_col(p["w3"])
    return {
        "w1": p["w1"].astype(jnp.bfloat16),
        "g1": p["g1"], "be1": p["be1"],
        "e1": jnp.full((1, NFC), BN_EPS, jnp.float32),            # unscaled layer
        "w2q": w2q, "g2": p["g2"], "be2": p["be2"],
        "e2": BN_EPS * (127.0 / s2) ** 2,                          # eps * c_j^2
        "w3q": w3q, "g3": p["g3"], "be3": p["be3"],
        "e3": BN_EPS * (127.0 / s3) ** 2,
        "w4_row": p["w4"].reshape(1, NFC2).astype(jnp.float32),    # used on the VPU
        "b4": p["b4"],                                             # (1, 1) f32
    }


def encd_reference_f32(x, p):
    """Original-module semantics: f32 Linear(+bias) -> train-mode BN -> LeakyReLU."""
    def bn_lrelu(h, g, b):
        m = jnp.mean(h, axis=0, keepdims=True)
        v = jnp.mean((h - m) ** 2, axis=0, keepdims=True)
        hn = (h - m) / jnp.sqrt(v + BN_EPS) * g + b
        return jnp.where(hn > 0, hn, LRELU_SLOPE * hn)

    h = bn_lrelu(x @ p["w1"] + p["b1"], p["g1"], p["be1"])
    h = bn_lrelu(h @ p["w2"] + p["b2"], p["g2"], p["be2"])
    h = bn_lrelu(h @ p["w3"] + p["b3"], p["g3"], p["be3"])
    return jax.nn.sigmoid(h @ p["w4"] + p["b4"])


def encd_reference_exact(x, kp):
    """Mirrors the kernel math (bf16 dots, int8 weights w/o dequant, scaled eps)."""
    B = x.shape[0]
    inv_b = 1.0 / B

    def bn_lrelu(h, g, b, e):
        mean = jnp.sum(h, axis=0, keepdims=True) * inv_b
        var = jnp.maximum(jnp.sum(h * h, axis=0, keepdims=True) * inv_b - mean * mean, 0.0)
        scale = g * jax.lax.rsqrt(var + e)
        hn = h * scale + (b - mean * scale)
        return jnp.where(hn > 0, hn, LRELU_SLOPE * hn)

    def q_to_bf16(wq):
        return wq.astype(jnp.float32).astype(jnp.bfloat16)

    h = jnp.dot(x.astype(jnp.bfloat16), kp["w1"], preferred_element_type=jnp.float32)
    h = bn_lrelu(h, kp["g1"], kp["be1"], kp["e1"])
    h = jnp.dot(h.astype(jnp.bfloat16), q_to_bf16(kp["w2q"]), preferred_element_type=jnp.float32)
    h = bn_lrelu(h, kp["g2"], kp["be2"], kp["e2"])
    h = jnp.dot(h.astype(jnp.bfloat16), q_to_bf16(kp["w3q"]), preferred_element_type=jnp.float32)
    h = bn_lrelu(h, kp["g3"], kp["be3"], kp["e3"])
    logits = jnp.sum(h * kp["w4_row"], axis=-1, keepdims=True) + kp["b4"]
    return jax.nn.sigmoid(logits)


if __name__ == "__main__":
    key = jax.random.PRNGKey(0)
    k_x, k_p = jax.random.split(key)

    batch = 8
    nlatentdim = 16

    x = jax.random.normal(k_x, (batch, nlatentdim), jnp.float32)
    fparams = init_params(k_p, nlatentdim)
    kparams = to_kernel_params(fparams)

    out = jax.block_until_ready(encd_forward(x, kparams))
    assert out.shape == (batch, 1), out.shape

    ref_exact = encd_reference_exact(x, kparams)   # same math as the kernel
    ref_f32 = encd_reference_f32(x, fparams)       # original PyTorch (train-mode) semantics
    assert jnp.allclose(out, ref_exact, atol=2e-3, rtol=2e-3), (out, ref_exact)
    assert jnp.allclose(out, ref_f32, atol=5e-2, rtol=5e-2), (out, ref_f32)

    print("KERNEL_OK")
</pallas_src>

<mosaic_0001>
module attributes {stable_mosaic.version = 11 : i64} {
  func.func @encd_kernel(%arg0: memref<8x16xf32, #tpu.memory_space<vmem>>, %arg1: memref<16x1024xbf16, #tpu.memory_space<vmem>>, %arg2: memref<1x1024xf32, #tpu.memory_space<vmem>>, %arg3: memref<1x1024xf32, #tpu.memory_space<vmem>>, %arg4: memref<1x1024xf32, #tpu.memory_space<vmem>>, %arg5: memref<1024x1024xi8, #tpu.memory_space<any>>, %arg6: memref<1x1024xf32, #tpu.memory_space<vmem>>, %arg7: memref<1x1024xf32, #tpu.memory_space<vmem>>, %arg8: memref<1x1024xf32, #tpu.memory_space<vmem>>, %arg9: memref<1024x512xi8, #tpu.memory_space<any>>, %arg10: memref<1x512xf32, #tpu.memory_space<vmem>>, %arg11: memref<1x512xf32, #tpu.memory_space<vmem>>, %arg12: memref<1x512xf32, #tpu.memory_space<vmem>>, %arg13: memref<1x512xf32, #tpu.memory_space<vmem>>, %arg14: memref<1x1xf32, #tpu.memory_space<vmem>>, %arg15: memref<8x128xf32, #tpu.memory_space<vmem>>, %arg16: memref<1024x1024xi8, #tpu.memory_space<vmem>>, %arg17: memref<1024x512xi8, #tpu.memory_space<vmem>>, %arg18: memref<2x!tpu.dma_semaphore, #tpu.memory_space<semaphore_mem>>) attributes {dimension_semantics = [], scalar_prefetch = 0 : i64, scratch_operands = 3 : i64, tpu.core_type = #tpu.core_type<tc>} {
    %c0_i32 = arith.constant 0 : i32
    %0 = tpu.memref_slice %arg18[%c0_i32] : memref<2x!tpu.dma_semaphore, #tpu.memory_space<semaphore_mem>> -> memref<1x!tpu.dma_semaphore, #tpu.memory_space<semaphore_mem>>
    %1 = tpu.memref_squeeze %0 : memref<1x!tpu.dma_semaphore, #tpu.memory_space<semaphore_mem>> -> memref<!tpu.dma_semaphore, #tpu.memory_space<semaphore_mem>>
    tpu.enqueue_dma source(%arg5 : memref<1024x1024xi8, #tpu.memory_space<any>>) target(%arg16 : memref<1024x1024xi8, #tpu.memory_space<vmem>>) target_semaphore(%1 : memref<!tpu.dma_semaphore, #tpu.memory_space<semaphore_mem>>)
    %c1_i32 = arith.constant 1 : i32
    %2 = tpu.memref_slice %arg18[%c1_i32] : memref<2x!tpu.dma_semaphore, #tpu.memory_space<semaphore_mem>> -> memref<1x!tpu.dma_semaphore, #tpu.memory_space<semaphore_mem>>
    %3 = tpu.memref_squeeze %2 : memref<1x!tpu.dma_semaphore, #tpu.memory_space<semaphore_mem>> -> memref<!tpu.dma_semaphore, #tpu.memory_space<semaphore_mem>>
    tpu.enqueue_dma source(%arg9 : memref<1024x512xi8, #tpu.memory_space<any>>) target(%arg17 : memref<1024x512xi8, #tpu.memory_space<vmem>>) target_semaphore(%3 : memref<!tpu.dma_semaphore, #tpu.memory_space<semaphore_mem>>)
    %c0 = arith.constant 0 : index
    %c0_0 = arith.constant 0 : index
    %4 = vector.load %arg0[%c0, %c0_0] : memref<8x16xf32, #tpu.memory_space<vmem>>, vector<8x16xf32>
    %5 = arith.truncf %4 : vector<8x16xf32> to vector<8x16xbf16>
    %c0_1 = arith.constant 0 : index
    %c0_2 = arith.constant 0 : index
    %6 = vector.load %arg1[%c0_1, %c0_2] : memref<16x1024xbf16, #tpu.memory_space<vmem>>, vector<16x1024xbf16>
    %cst = arith.constant dense<0.000000e+00> : vector<8x1024xf32>
    %7 = tpu.matmul %5, %6, %cst {dimension_numbers = #tpu.dot_dimension_numbers<[1], [0], [0], [1], [0, 0, 1, 1], [], []>} : vector<8x16xbf16>, vector<16x1024xbf16>, vector<8x1024xf32> -> vector<8x1024xf32>
    %c0_3 = arith.constant 0 : index
    %c0_4 = arith.constant 0 : index
    %8 = vector.load %arg2[%c0_3, %c0_4] : memref<1x1024xf32, #tpu.memory_space<vmem>>, vector<1x1024xf32>
    %c0_5 = arith.constant 0 : index
    %c0_6 = arith.constant 0 : index
    %9 = vector.load %arg3[%c0_5, %c0_6] : memref<1x1024xf32, #tpu.memory_space<vmem>>, vector<1x1024xf32>
    %c0_7 = arith.constant 0 : index
    %c0_8 = arith.constant 0 : index
    %10 = vector.load %arg4[%c0_7, %c0_8] : memref<1x1024xf32, #tpu.memory_space<vmem>>, vector<1x1024xf32>
    %cst_9 = arith.constant dense<0.000000e+00> : vector<1024xf32>
    %11 = vector.multi_reduction <add>, %7, %cst_9 [0] : vector<8x1024xf32> to vector<1024xf32>
    %12 = vector.shape_cast %11 : vector<1024xf32> to vector<1x1024xf32>
    %13 = arith.mulf %7, %7 : vector<8x1024xf32>
    %cst_10 = arith.constant dense<0.000000e+00> : vector<1024xf32>
    %14 = vector.multi_reduction <add>, %13, %cst_10 [0] : vector<8x1024xf32> to vector<1024xf32>
    %15 = vector.shape_cast %14 : vector<1024xf32> to vector<1x1024xf32>
    %cst_11 = arith.constant 1.250000e-01 : f32
    %16 = vector.broadcast %cst_11 : f32 to vector<1x1024xf32>
    %17 = arith.mulf %12, %16 : vector<1x1024xf32>
    %cst_12 = arith.constant 1.250000e-01 : f32
    %18 = vector.broadcast %cst_12 : f32 to vector<1x1024xf32>
    %19 = arith.mulf %15, %18 : vector<1x1024xf32>
    %20 = arith.mulf %17, %17 : vector<1x1024xf32>
    %21 = arith.subf %19, %20 : vector<1x1024xf32>
    %cst_13 = arith.constant 0.000000e+00 : f32
    %22 = vector.broadcast %cst_13 : f32 to vector<1x1024xf32>
    %23 = arith.maximumf %21, %22 : vector<1x1024xf32>
    %24 = arith.addf %23, %10 : vector<1x1024xf32>
    %25 = math.rsqrt %24 : vector<1x1024xf32>
    %26 = arith.mulf %8, %25 : vector<1x1024xf32>
    %27 = arith.mulf %17, %26 : vector<1x1024xf32>
    %28 = arith.subf %9, %27 : vector<1x1024xf32>
    %29 = vector.broadcast %26 : vector<1x1024xf32> to vector<8x1024xf32>
    %30 = arith.mulf %7, %29 : vector<8x1024xf32>
    %31 = vector.broadcast %28 : vector<1x1024xf32> to vector<8x1024xf32>
    %32 = arith.addf %30, %31 : vector<8x1024xf32>
    %cst_14 = arith.constant 0.000000e+00 : f32
    %33 = vector.broadcast %cst_14 : f32 to vector<8x1024xf32>
    %34 = arith.cmpf ogt, %32, %33 : vector<8x1024xf32>
    %cst_15 = arith.constant 2.000000e-01 : f32
    %35 = vector.broadcast %cst_15 : f32 to vector<8x1024xf32>
    %36 = arith.mulf %35, %32 : vector<8x1024xf32>
    %37 = arith.select %34, %32, %36 : vector<8x1024xi1>, vector<8x1024xf32>
    %c0_i32_16 = arith.constant 0 : i32
    %38 = tpu.memref_slice %arg18[%c0_i32_16] : memref<2x!tpu.dma_semaphore, #tpu.memory_space<semaphore_mem>> -> memref<1x!tpu.dma_semaphore, #tpu.memory_space<semaphore_mem>>
    %39 = tpu.memref_squeeze %38 : memref<1x!tpu.dma_semaphore, #tpu.memory_space<semaphore_mem>> -> memref<!tpu.dma_semaphore, #tpu.memory_space<semaphore_mem>>
    tpu.wait_dma2 semaphore(%39 : memref<!tpu.dma_semaphore, #tpu.memory_space<semaphore_mem>>) src(%arg5 : memref<1024x1024xi8, #tpu.memory_space<any>>) dst(%arg16 : memref<1024x1024xi8, #tpu.memory_space<vmem>>)
    %c0_17 = arith.constant 0 : index
    %c0_18 = arith.constant 0 : index
    %40 = vector.load %arg16[%c0_17, %c0_18] : memref<1024x1024xi8, #tpu.memory_space<vmem>>, vector<1024x1024xi8>
    %41 = arith.sitofp %40 : vector<1024x1024xi8> to vector<1024x1024xf32>
    %42 = arith.truncf %41 : vector<1024x1024xf32> to vector<1024x1024xbf16>
    %43 = arith.truncf %37 : vector<8x1024xf32> to vector<8x1024xbf16>
    %cst_19 = arith.constant dense<0.000000e+00> : vector<8x1024xf32>
    %44 = tpu.matmul %43, %42, %cst_19 {dimension_numbers = #tpu.dot_dimension_numbers<[1], [0], [0], [1], [0, 0, 1, 1], [], []>} : vector<8x1024xbf16>, vector<1024x1024xbf16>, vector<8x1024xf32> -> vector<8x1024xf32>
    %c0_20 = arith.constant 0 : index
    %c0_21 = arith.constant 0 : index
    %45 = vector.load %arg6[%c0_20, %c0_21] : memref<1x1024xf32, #tpu.memory_space<vmem>>, vector<1x1024xf32>
    %c0_22 = arith.constant 0 : index
    %c0_23 = arith.constant 0 : index
    %46 = vector.load %arg7[%c0_22, %c0_23] : memref<1x1024xf32, #tpu.memory_space<vmem>>, vector<1x1024xf32>
    %c0_24 = arith.constant 0 : index
    %c0_25 = arith.constant 0 : index
    %47 = vector.load %arg8[%c0_24, %c0_25] : memref<1x1024xf32, #tpu.memory_space<vmem>>, vector<1x1024xf32>
    %cst_26 = arith.constant dense<0.000000e+00> : vector<1024xf32>
    %48 = vector.multi_reduction <add>, %44, %cst_26 [0] : vector<8x1024xf32> to vector<1024xf32>
    %49 = vector.shape_cast %48 : vector<1024xf32> to vector<1x1024xf32>
    %50 = arith.mulf %44, %44 : vector<8x1024xf32>
    %cst_27 = arith.constant dense<0.000000e+00> : vector<1024xf32>
    %51 = vector.multi_reduction <add>, %50, %cst_27 [0] : vector<8x1024xf32> to vector<1024xf32>
    %52 = vector.shape_cast %51 : vector<1024xf32> to vector<1x1024xf32>
    %cst_28 = arith.constant 1.250000e-01 : f32
    %53 = vector.broadcast %cst_28 : f32 to vector<1x1024xf32>
    %54 = arith.mulf %49, %53 : vector<1x1024xf32>
    %cst_29 = arith.constant 1.250000e-01 : f32
    %55 = vector.broadcast %cst_29 : f32 to vector<1x1024xf32>
    %56 = arith.mulf %52, %55 : vector<1x1024xf32>
    %57 = arith.mulf %54, %54 : vector<1x1024xf32>
    %58 = arith.subf %56, %57 : vector<1x1024xf32>
    %cst_30 = arith.constant 0.000000e+00 : f32
    %59 = vector.broadcast %cst_30 : f32 to vector<1x1024xf32>
    %60 = arith.maximumf %58, %59 : vector<1x1024xf32>
    %61 = arith.addf %60, %47 : vector<1x1024xf32>
    %62 = math.rsqrt %61 : vector<1x1024xf32>
    %63 = arith.mulf %45, %62 : vector<1x1024xf32>
    %64 = arith.mulf %54, %63 : vector<1x1024xf32>
    %65 = arith.subf %46, %64 : vector<1x1024xf32>
    %66 = vector.broadcast %63 : vector<1x1024xf32> to vector<8x1024xf32>
    %67 = arith.mulf %44, %66 : vector<8x1024xf32>
    %68 = vector.broadcast %65 : vector<1x1024xf32> to vector<8x1024xf32>
    %69 = arith.addf %67, %68 : vector<8x1024xf32>
    %cst_31 = arith.constant 0.000000e+00 : f32
    %70 = vector.broadcast %cst_31 : f32 to vector<8x1024xf32>
    %71 = arith.cmpf ogt, %69, %70 : vector<8x1024xf32>
    %cst_32 = arith.constant 2.000000e-01 : f32
    %72 = vector.broadcast %cst_32 : f32 to vector<8x1024xf32>
    %73 = arith.mulf %72, %69 : vector<8x1024xf32>
    %74 = arith.select %71, %69, %73 : vector<8x1024xi1>, vector<8x1024xf32>
    %c1_i32_33 = arith.constant 1 : i32
    %75 = tpu.memref_slice %arg18[%c1_i32_33] : memref<2x!tpu.dma_semaphore, #tpu.memory_space<semaphore_mem>> -> memref<1x!tpu.dma_semaphore, #tpu.memory_space<semaphore_mem>>
    %76 = tpu.memref_squeeze %75 : memref<1x!tpu.dma_semaphore, #tpu.memory_space<semaphore_mem>> -> memref<!tpu.dma_semaphore, #tpu.memory_space<semaphore_mem>>
    tpu.wait_dma2 semaphore(%76 : memref<!tpu.dma_semaphore, #tpu.memory_space<semaphore_mem>>) src(%arg9 : memref<1024x512xi8, #tpu.memory_space<any>>) dst(%arg17 : memref<1024x512xi8, #tpu.memory_space<vmem>>)
    %c0_34 = arith.constant 0 : index
    %c0_35 = arith.constant 0 : index
    %77 = vector.load %arg17[%c0_34, %c0_35] : memref<1024x512xi8, #tpu.memory_space<vmem>>, vector<1024x512xi8>
    %78 = arith.sitofp %77 : vector<1024x512xi8> to vector<1024x512xf32>
    %79 = arith.truncf %78 : vector<1024x512xf32> to vector<1024x512xbf16>
    %80 = arith.truncf %74 : vector<8x1024xf32> to vector<8x1024xbf16>
    %cst_36 = arith.constant dense<0.000000e+00> : vector<8x512xf32>
    %81 = tpu.matmul %80, %79, %cst_36 {dimension_numbers = #tpu.dot_dimension_numbers<[1], [0], [0], [1], [0, 0, 1, 1], [], []>} : vector<8x1024xbf16>, vector<1024x512xbf16>, vector<8x512xf32> -> vector<8x512xf32>
    %c0_37 = arith.constant 0 : index
    %c0_38 = arith.constant 0 : index
    %82 = vector.load %arg10[%c0_37, %c0_38] : memref<1x512xf32, #tpu.memory_space<vmem>>, vector<1x512xf32>
    %c0_39 = arith.constant 0 : index
    %c0_40 = arith.constant 0 : index
    %83 = vector.load %arg11[%c0_39, %c0_40] : memref<1x512xf32, #tpu.memory_space<vmem>>, vector<1x512xf32>
    %c0_41 = arith.constant 0 : index
    %c0_42 = arith.constant 0 : index
    %84 = vector.load %arg12[%c0_41, %c0_42] : memref<1x512xf32, #tpu.memory_space<vmem>>, vector<1x512xf32>
    %cst_43 = arith.constant dense<0.000000e+00> : vector<512xf32>
    %85 = vector.multi_reduction <add>, %81, %cst_43 [0] : vector<8x512xf32> to vector<512xf32>
    %86 = vector.shape_cast %85 : vector<512xf32> to vector<1x512xf32>
    %87 = arith.mulf %81, %81 : vector<8x512xf32>
    %cst_44 = arith.constant dense<0.000000e+00> : vector<512xf32>
    %88 = vector.multi_reduction <add>, %87, %cst_44 [0] : vector<8x512xf32> to vector<512xf32>
    %89 = vector.shape_cast %88 : vector<512xf32> to vector<1x512xf32>
    %cst_45 = arith.constant 1.250000e-01 : f32
    %90 = vector.broadcast %cst_45 : f32 to vector<1x512xf32>
    %91 = arith.mulf %86, %90 : vector<1x512xf32>
    %cst_46 = arith.constant 1.250000e-01 : f32
    %92 = vector.broadcast %cst_46 : f32 to vector<1x512xf32>
    %93 = arith.mulf %89, %92 : vector<1x512xf32>
    %94 = arith.mulf %91, %91 : vector<1x512xf32>
    %95 = arith.subf %93, %94 : vector<1x512xf32>
    %cst_47 = arith.constant 0.000000e+00 : f32
    %96 = vector.broadcast %cst_47 : f32 to vector<1x512xf32>
    %97 = arith.maximumf %95, %96 : vector<1x512xf32>
    %98 = arith.addf %97, %84 : vector<1x512xf32>
    %99 = math.rsqrt %98 : vector<1x512xf32>
    %100 = arith.mulf %82, %99 : vector<1x512xf32>
    %101 = arith.mulf %91, %100 : vector<1x512xf32>
    %102 = arith.subf %83, %101 : vector<1x512xf32>
    %103 = vector.broadcast %100 : vector<1x512xf32> to vector<8x512xf32>
    %104 = arith.mulf %81, %103 : vector<8x512xf32>
    %105 = vector.broadcast %102 : vector<1x512xf32> to vector<8x512xf32>
    %106 = arith.addf %104, %105 : vector<8x512xf32>
    %cst_48 = arith.constant 0.000000e+00 : f32
    %107 = vector.broadcast %cst_48 : f32 to vector<8x512xf32>
    %108 = arith.cmpf ogt, %106, %107 : vector<8x512xf32>
    %cst_49 = arith.constant 2.000000e-01 : f32
    %109 = vector.broadcast %cst_49 : f32 to vector<8x512xf32>
    %110 = arith.mulf %109, %106 : vector<8x512xf32>
    %111 = arith.select %108, %106, %110 : vector<8x512xi1>, vector<8x512xf32>
    %c0_50 = arith.constant 0 : index
    %c0_51 = arith.constant 0 : index
    %112 = vector.load %arg13[%c0_50, %c0_51] : memref<1x512xf32, #tpu.memory_space<vmem>>, vector<1x512xf32>
    %113 = vector.broadcast %112 : vector<1x512xf32> to vector<8x512xf32>
    %114 = arith.mulf %111, %113 : vector<8x512xf32>
    %cst_52 = arith.constant dense<0.000000e+00> : vector<8xf32>
    %115 = vector.multi_reduction <add>, %114, %cst_52 [1] : vector<8x512xf32> to vector<8xf32>
    %116 = vector.shape_cast %115 : vector<8xf32> to vector<8x1xf32>
    %c0_53 = arith.constant 0 : index
    %c0_54 = arith.constant 0 : index
    %117 = vector.load %arg14[%c0_53, %c0_54] : memref<1x1xf32, #tpu.memory_space<vmem>>, vector<1x1xf32>
    %118 = vector.broadcast %117 : vector<1x1xf32> to vector<8x1xf32>
    %119 = arith.addf %116, %118 : vector<8x1xf32>
    %cst_55 = arith.constant 0.000000e+00 : f32
    %120 = vector.broadcast %cst_55 : f32 to vector<8x1xf32>
    %121 = arith.subf %120, %119 : vector<8x1xf32>
    %122 = math.exp %121 : vector<8x1xf32>
    %cst_56 = arith.constant 1.000000e+00 : f32
    %123 = vector.broadcast %cst_56 : f32 to vector<8x1xf32>
    %124 = arith.addf %123, %122 : vector<8x1xf32>
    %cst_57 = arith.constant 1.000000e+00 : f32
    %125 = vector.broadcast %cst_57 : f32 to vector<8x1xf32>
    %126 = arith.divf %125, %124 : vector<8x1xf32>
    %127 = vector.shape_cast %126 : vector<8x1xf32> to vector<8x1xf32>
    %128 = vector.broadcast %127 : vector<8x1xf32> to vector<8x128xf32>
    %c0_58 = arith.constant 0 : index
    %c0_59 = arith.constant 0 : index
    %129 = vector.load %arg15[%c0_58, %c0_59] : memref<8x128xf32, #tpu.memory_space<vmem>>, vector<8x128xf32>
    tpu.vector_store %arg15[%c0_58, %c0_59], %128 {strides = array<i32>} : memref<8x128xf32, #tpu.memory_space<vmem>>, vector<8x128xf32>,
    return
  }
}

</mosaic_0001>

<bundles_post_ra>
// kernel: encd_forward.1
= control target key start
LH: loop header
LB: loop body
LE: loop exit
PB: predicated region body
PF: predicated region fallthrough
CT: control target
= control target key end

     0   :  { %s4797_s0 = inlined_call_operand.hbm [shape: f32[8,16], index: 0, kind: input, shape index: {}]   ;;  %s4798_s1 = inlined_call_operand.hbm [shape: bf16[16,1024], index: 1, kind: input, shape index: {}]   ;;  %s4799_s2 = inlined_call_operand.vmem [shape: f32[1,1024], index: 2, kind: input, shape index: {}]   ;;  %s4800_s3 = inlined_call_operand.hbm [shape: f32[1,1024], index: 3, kind: input, shape index: {}]   ;;  %s4801_s4 = inlined_call_operand.hbm [shape: f32[1,1024], index: 4, kind: input, shape index: {}]   ;;  %s4802_s5 = inlined_call_operand.hbm [shape: s8[1024,1024], index: 5, kind: input, shape index: {}]   ;;  %s4803_s6 = inlined_call_operand.vmem [shape: f32[1,1024], index: 6, kind: input, shape index: {}]   ;;  %s4804_s7 = inlined_call_operand.hbm [shape: f32[1,1024], index: 7, kind: input, shape index: {}]   ;;  %s4805_s8 = inlined_call_operand.hbm [shape: f32[1,1024], index: 8, kind: input, shape index: {}]   ;;  %s4806_s9 = inlined_call_operand.hbm [shape: s8[1024,512], index: 9, kind: input, shape index: {}]   ;;  %s4807_s10 = inlined_call_operand.hbm [shape: f32[1,512], index: 10, kind: input, shape index: {}]   ;;  %s4808_s11 = inlined_call_operand.hbm [shape: f32[1,512], index: 11, kind: input, shape index: {}]   ;;  %s4809_s12 = inlined_call_operand.hbm [shape: f32[1,512], index: 12, kind: input, shape index: {}]   ;;  %s4810_s13 = inlined_call_operand.vmem [shape: f32[1,512], index: 13, kind: input, shape index: {}]   ;;  %s4811_s14 = inlined_call_operand.<no memory space> [shape: f32[1,1], index: 14, kind: input, shape index: {}]   ;;  %s4812_s15 = inlined_call_operand.vmem [shape: f32[8,128], index: 15, kind: output, shape index: {}]  }
   0x1   :  { %v20_v0 = vstv %s4811_s14 }
   0x2   :  { %21 = vst [vmem:[#allocation5] sm:$0x1] %v20_v0 }
   0x3   :  { %22 = vsyncpa [#allocation7], 0 }
   0x4   :  { %23 = vsyncpa [#allocation9], 0 }
   0x5   :  { %24 = vsyncpa [#allocation12], 0 }
   0x6   :  { %25 = vsyncpa [#allocation15], 0 }
   0x7   :  { %26 = vsyncpa [#allocation18], 0  ;;  %s4072_s20 = smov [#allocation8]  }
   0x8   :  { %s42_s21 = sshll.u32 %s4072_s20, 4  ;;  %s43_s21 = int_to_ptr.vmem [resolvable:$true] %s42_s21 }
   0x9   :  { %s3846_s22 = scalar_lea.vmem %s43_s21, 1024  ;;  %p3851_p1 = scmp.lt.s32.totalorder %s43_s21, %s43_s21 }
   0xa   :  { %p3847_p0 = scmp.ne.s32.totalorder %s43_s21, %s3846_s22  ;;  %p3852_p2 = scmp.lt.s32.totalorder %s3846_s22, %s3846_s22 }
   0xc   :  { %p3853_p3 = por %p3852_p2, %p3851_p1 }
   0xe   :  { %p3854_p4 = pnand %p3853_p3, %p3847_p0 }
  0x10   :  { %3857 = shalt.err (!%p3854_p4)
}
  0x11   :  { %s4073_s23 = smov 512   ;;  %s4074_s24 = smov 32  }
  0x12   :  { %48 = dma.hbm_to_vmem [thread:$0]  %s4798_s1, 1024, %s43_s21, [#allocation9], %s4073_s23, %s4073_s23, %s4074_s24  }
  0x13   :  { %s4075_s26 = smov [#allocation11]   ;;  %s4076_s28 = smov [#allocation14]  }
  0x14   :  { %s67_s27 = sshll.u32 %s4075_s26, 4  ;;  %s89_s29 = sshll.u32 %s4076_s28, 4  ;;  %s68_s27 = int_to_ptr.vmem [resolvable:$true] %s67_s27  ;;  %s90_s29 = int_to_ptr.vmem [resolvable:$true] %s89_s29 }
  0x15   :  { %s3866_s30 = scalar_lea.vmem %s68_s27, 128  ;;  %p3871_p6 = scmp.lt.s32.totalorder %s68_s27, %s68_s27 }
  0x16   :  { %p3867_p5 = scmp.ne.s32.totalorder %s68_s27, %s3866_s30  ;;  %p3872_p7 = scmp.lt.s32.totalorder %s3866_s30, %s3866_s30 }
  0x18   :  { %p3873_p8 = por %p3872_p7, %p3871_p6 }
  0x1a   :  { %p3874_p9 = pnand %p3873_p8, %p3867_p5 }
  0x1c   :  { %3877 = shalt.err (!%p3874_p9)
}
  0x1d   :  { %70 = dma.hbm_to_vmem [thread:$0]  %s4801_s4, 128, %s68_s27, [#allocation12]  }
  0x1e   :  { %s3886_s18 = scalar_lea.vmem %s90_s29, 128  ;;  %p3891_p11 = scmp.lt.s32.totalorder %s90_s29, %s90_s29 }
  0x1f   :  { %p3887_p10 = scmp.ne.s32.totalorder %s90_s29, %s3886_s18  ;;  %p3892_p12 = scmp.lt.s32.totalorder %s3886_s18, %s3886_s18 }
  0x21   :  { %p3893_p13 = por %p3892_p12, %p3891_p11 }
  0x23   :  { %p3894_p0 = pnand %p3893_p13, %p3887_p10 }
  0x25   :  { %3897 = shalt.err (!%p3894_p0)
}
  0x26   :  { %92 = dma.hbm_to_vmem [thread:$0]  %s4805_s8, 128, %s90_s29, [#allocation15]  }
  0x27   :  { %s4077_s20 = smov [#allocation17]   ;;  %s4078_s22 = smov [#allocation6]  }
  0x28   :  { %s109_s21 = sshll.u32 %s4077_s20, 4  ;;  %s33_s23 = sshll.u32 %s4078_s22, 4  ;;  %s110_s21 = int_to_ptr.vmem [resolvable:$true] %s109_s21  ;;  %s34_s23 = int_to_ptr.vmem [resolvable:$true] %s33_s23 }
  0x29   :  { %s3906_s24 = scalar_lea.vmem %s110_s21, 64  ;;  %p3911_p2 = scmp.lt.s32.totalorder %s110_s21, %s110_s21 }
  0x2a   :  { %p3907_p1 = scmp.ne.s32.totalorder %s110_s21, %s3906_s24  ;;  %p3912_p3 = scmp.lt.s32.totalorder %s3906_s24, %s3906_s24 }
  0x2c   :  { %p3913_p4 = por %p3912_p3, %p3911_p2 }
  0x2e   :  { %p3914_p5 = pnand %p3913_p4, %p3907_p1 }
  0x30   :  { %3917 = shalt.err (!%p3914_p5)
}
  0x31   :  { %112 = dma.hbm_to_vmem [thread:$0]  %s4808_s11, 64, %s110_s21, [#allocation18]  }
  0x32   :  { %s3926_s14 = scalar_lea.vmem %s34_s23, 128  ;;  %p3931_p7 = scmp.lt.s32.totalorder %s34_s23, %s34_s23 }
  0x33   :  { %p3927_p6 = scmp.ne.s32.totalorder %s34_s23, %s3926_s14  ;;  %p3932_p8 = scmp.lt.s32.totalorder %s3926_s14, %s3926_s14 }
  0x35   :  { %p3933_p9 = por %p3932_p8, %p3931_p7 }
  0x37   :  { %p3934_p10 = pnand %p3933_p9, %p3927_p6 }
  0x39   :  { %3937 = shalt.err (!%p3934_p10)
}
  0x3a   :  { %36 = dma.hbm_to_vmem [thread:$0]  %s4797_s0, 128, %s34_s23, [#allocation7]  }
  0x3b   :  { %s4079_s27 = smov [#allocation10]   ;;  %s4080_s29 = smov [#allocation13]  }
  0x3c   :  { %s57_s28 = sshll.u32 %s4079_s27, 4  ;;  %s79_s30 = sshll.u32 %s4080_s29, 4  ;;  %s58_s28 = int_to_ptr.vmem [resolvable:$true] %s57_s28  ;;  %s80_s30 = int_to_ptr.vmem [resolvable:$true] %s79_s30 }
  0x3d   :  { %s3946_s16 = scalar_lea.vmem %s58_s28, 128  ;;  %p3951_p12 = scmp.lt.s32.totalorder %s58_s28, %s58_s28 }
  0x3e   :  { %p3947_p11 = scmp.ne.s32.totalorder %s58_s28, %s3946_s16  ;;  %p3952_p13 = scmp.lt.s32.totalorder %s3946_s16, %s3946_s16 }
  0x40   :  { %p3953_p0 = por %p3952_p13, %p3951_p12 }
  0x42   :  { %p3954_p1 = pnand %p3953_p0, %p3947_p11 }
  0x44   :  { %3957 = shalt.err (!%p3954_p1)
}
  0x45   :  { %60 = dma.hbm_to_vmem [thread:$0]  %s4800_s3, 128, %s58_s28, [#allocation9]  }
  0x46   :  { %s3966_s18 = scalar_lea.vmem %s80_s30, 128  ;;  %p3971_p3 = scmp.lt.s32.totalorder %s80_s30, %s80_s30 }
  0x47   :  { %p3967_p2 = scmp.ne.s32.totalorder %s80_s30, %s3966_s18  ;;  %p3972_p4 = scmp.lt.s32.totalorder %s3966_s18, %s3966_s18 }
  0x49   :  { %p3973_p5 = por %p3972_p4, %p3971_p3 }
  0x4b   :  { %p3974_p6 = pnand %p3973_p5, %p3967_p2 }
  0x4d   :  { %3977 = shalt.err (!%p3974_p6)
}
  0x4e   :  { %82 = dma.hbm_to_vmem [thread:$0]  %s4804_s7, 128, %s80_s30, [#allocation12]  }
  0x4f   :  { %s4081_s19 = smov [#allocation16]   ;;  %s4082_s21 = smov [#allocation19]  }
  0x50   :  { %s99_s20 = sshll.u32 %s4081_s19, 4  ;;  %s119_s22 = sshll.u32 %s4082_s21, 4  ;;  %s100_s20 = int_to_ptr.vmem [resolvable:$true] %s99_s20  ;;  %s120_s22 = int_to_ptr.vmem [resolvable:$true] %s119_s22 }
  0x51   :  { %s3986_s23 = scalar_lea.vmem %s100_s20, 64  ;;  %p3991_p8 = scmp.lt.s32.totalorder %s100_s20, %s100_s20 }
  0x52   :  { %p3987_p7 = scmp.ne.s32.totalorder %s100_s20, %s3986_s23  ;;  %p3992_p9 = scmp.lt.s32.totalorder %s3986_s23, %s3986_s23 }
  0x54   :  { %p3993_p10 = por %p3992_p9, %p3991_p8 }
  0x56   :  { %p3994_p11 = pnand %p3993_p10, %p3987_p7 }
  0x58   :  { %3997 = shalt.err (!%p3994_p11)
}
  0x59   :  { %102 = dma.hbm_to_vmem [thread:$0]  %s4807_s10, 64, %s100_s20, [#allocation15]  }
  0x5a   :  { %s4006_s4 = scalar_lea.vmem %s120_s22, 64  ;;  %p4011_p13 = scmp.lt.s32.totalorder %s120_s22, %s120_s22 }
  0x5b   :  { %p4007_p12 = scmp.ne.s32.totalorder %s120_s22, %s4006_s4  ;;  %p4012_p0 = scmp.lt.s32.totalorder %s4006_s4, %s4006_s4 }
  0x5d   :  { %p4013_p1 = por %p4012_p0, %p4011_p13 }
  0x5f   :  { %p4014_p2 = pnand %p4013_p1, %p4007_p12 }
  0x61   :  { %4017 = shalt.err (!%p4014_p2)
}
  0x62   :  { %122 = dma.hbm_to_vmem [thread:$0]  %s4809_s12, 64, %s120_s22, [#allocation18]  }
  0x63   :  { %4058 = dma.done.wait [#allocation7], 128  }
  0x64   :  { %4059 = vsyncadd [#allocation7], 4294967168 }
  0x65   :  { %4060 = dma.done.wait [#allocation9], 1152  }
  0x66   :  { %4061 = vsyncadd [#allocation9], 4294966144 }
  0x67   :  { %4062 = dma.done.wait [#allocation12], 256  }
  0x68   :  { %4063 = vsyncadd [#allocation12], 4294967040 }
  0x69   :  { %4064 = dma.done.wait [#allocation15], 192  }
  0x6a   :  { %4065 = vsyncadd [#allocation15], 4294967104 }
  0x6b   :  { %4066 = dma.done.wait [#allocation18], 128  }
  0x6c   :  { %4067 = vsyncadd [#allocation18], 4294967168  ;;  %v4083_v1 = vmov 0   ;;  %v180_v2 = vld [vmem:[#allocation8] sm:$0xff]  ;;  %v181_v4 = vld [vmem:[#allocation8 + $0x8] sm:$0xff]  ;;  %vm228_vm0 = vcmask 130048  }
  0x6d   :  { %264 = vmatprep.mubr.bf16.mxu0 %v4083_v1  ;;  %305 = vmatprep.mubr.bf16.mxu1 %v4083_v1  ;;  %v184_v3 = vld [vmem:[#allocation8 + $0x20] sm:$0xff]  ;;  %v185_v6 = vld [vmem:[#allocation8 + $0x28] sm:$0xff]  ;;  %v178_v8 = vld [vmem:[#allocation6] sm:$0xff]  ;;  %s4084_s10 = smov [#allocation2]   ;;  %s4085_s14 = smov [#allocation3]  }
  0x6e   :  { %v3763_v5 = vcombine.high %v180_v2, %v184_v3  ;;  %v3762_v7 = vcombine.low %v180_v2, %v184_v3  ;;  %v182_v9 = vld [vmem:[#allocation8 + $0x10] sm:$0xff]  ;;  %v3765_v10 = vcombine.high %v181_v4, %v185_v6  ;;  %v3764_v11 = vcombine.low %v181_v4, %v185_v6  ;;  %v183_v13 = vld [vmem:[#allocation8 + $0x18] sm:$0xff]  ;;  %s162_s12 = sshll.u32 %s4084_s10, 4  ;;  %s174_s8 = sshll.u32 %s4085_s14, 4  ;;  %s163_s12 = int_to_ptr.vmem [resolvable:$true] %s162_s12  ;;  %s175_s8 = int_to_ptr.vmem [resolvable:$true] %s174_s8 }
  0x6f   :  { %v186_v12 = vld [vmem:[#allocation8 + $0x30] sm:$0xff]  ;;  %v187_v14 = vld [vmem:[#allocation8 + $0x38] sm:$0xff]  ;;  %v179_v15 = vpack.c.bf16 %v178_v8, %v178_v8  ;;  %s4026_s26 = scalar_lea.vmem %s163_s12, 32768  ;;  %p4031_p4 = scmp.lt.s32.totalorder %s163_s12, %s163_s12 }
  0x70   :  { %246 = vmatprep.subr.bf16.mxu0 %v3763_v5  ;;  %v3767_v16 = vcombine.high %v182_v9, %v186_v12  ;;  %v3769_v17 = vcombine.high %v183_v13, %v187_v14  ;;  %287 = vmatprep.subr.bf16.mxu1 %v3765_v10  ;;  %v3766_v18 = vcombine.low %v182_v9, %v186_v12  ;;  %p4027_p3 = scmp.ne.s32.totalorder %s163_s12, %s4026_s26  ;;  %p4032_p5 = scmp.lt.s32.totalorder %s4026_s26, %s4026_s26 }
  0x71   :  { %247 = vmatpush1.bf16.msra.mxu0 %v3762_v7  ;;  %288 = vmatpush1.bf16.msra.mxu1 %v3764_v11  ;;  %v3768_v19 = vcombine.low %v183_v13, %v187_v14 }
  0x72   :  { %328 = vmatprep.subr.bf16.mxu0 %v3767_v16  ;;  %369 = vmatprep.subr.bf16.mxu1 %v3769_v17  ;;  %p4033_p6 = por %p4032_p5, %p4031_p4 }
  0x74   :  { %3770 = vmatmul.mubr.msk.bf16.vlgmr.msra.gmra.mxu0 %vm228_vm0, %v179_v15  ;;  %3771 = vmatmul.mubr.msk.bf16.vlgmr.msra.gmra.mxu1 %vm228_vm0, %v179_v15  ;;  %p4034_p7 = pnand %p4033_p6, %p4027_p3 }
  0x75   :  { %329 = vmatpush1.bf16.msra.mxu0 %v3766_v18  ;;  %370 = vmatpush1.bf16.msra.mxu1 %v3768_v19 }
  0x76   :  { %346 = vmatprep.mubr.bf16.mxu0 %v4083_v1  ;;  %387 = vmatprep.mubr.bf16.mxu1 %v4083_v1 }
  0x7c   :  { %3772 = vmatmul.mubr.msk.bf16.vlgmr.msra.gmra.mxu0 %vm228_vm0, %v179_v15  ;;  %3773 = vmatmul.mubr.msk.bf16.vlgmr.msra.gmra.mxu1 %vm228_vm0, %v179_v15 }
  0x7d   :  { %4037 = shalt.err (!%p4034_p7)  }
  0x7e   :  { %165 = dma.hbm_to_vmem [thread:$0]  %s4802_s5, 32768, %s163_s12, [#allocation4] }
  0x7f   :  { %s4046_s29 = scalar_lea.vmem %s175_s8, 16384  ;;  %p4051_p9 = scmp.lt.s32.totalorder %s175_s8, %s175_s8 }
  0x80   :  { %p4047_p8 = scmp.ne.s32.totalorder %s175_s8, %s4046_s29  ;;  %p4052_p10 = scmp.lt.s32.totalorder %s4046_s29, %s4046_s29 }
  0x82   :  { %p4053_p11 = por %p4052_p10, %p4051_p9 }
  0x84   :  { %p4054_p12 = pnand %p4053_p11, %p4047_p8 }
  0x86   :  { %4057 = shalt.err (!%p4054_p12)  }
  0x87   :  { %177 = dma.hbm_to_vmem [thread:$0]  %s4806_s9, 16384, %s175_s8, [#allocation4 + $0x1]  ;;  %v544_v20 = vlaneseq  ;;  %v4250_v12 = vld [vmem:[#allocation11] sm:$0xff] }
  0x89   :  { %v4207_v21 = vshrl.u32 %v544_v20, 7 }
  0x8b   :  { %v4217_v26 = vsub.s32 0, %v4207_v21  ;;  %v4241_v2 = vsub.s32 2, %v4207_v21  ;;  %v4244_v3 = vsub.s32 1, %v4207_v21  ;;  %v4253_v20 = vsub.s32 3, %v4207_v21 }
 0x134   :  { %v4209_v22 = vpop.f32.mrf.mxu0  ;;  %v4214_v25 = vpop.f32.mrf.mxu1 }
 0x135   :  { %v399_v23 = vrot.slane %v4209_v22, 4  ;;  %v447_v24 = vmul.f32 %v4209_v22, %v4209_v22  ;;  %v411_v27 = vrot.slane %v4214_v25, 4  ;;  %v449_v28 = vmul.f32 %v4214_v25, %v4214_v25 }
 0x136   :  { %v4222_v29 = vpop.f32.mrf.mxu0  ;;  %v4228_v34 = vpop.f32.mrf.mxu1 }
 0x137   :  { %v400_v30 = vadd.f32 %v399_v23, %v4209_v22  ;;  %v455_v31 = vrot.slane %v447_v24, 4  ;;  %v405_v32 = vrot.slane %v4222_v29, 4  ;;  %v448_v33 = vmul.f32 %v4222_v29, %v4222_v29 }
 0x138   :  { %v412_v35 = vadd.f32 %v411_v27, %v4214_v25  ;;  %v467_v36 = vrot.slane %v449_v28, 4  ;;  %v417_v37 = vrot.slane %v4228_v34, 4  ;;  %v450_v38 = vmul.f32 %v4228_v34, %v4228_v34  ;;  %v270_v39 = vpop.f32.mrf.mxu0  ;;  %v311_v44 = vpop.f32.mrf.mxu1 }
 0x139   :  { %v401_v40 = vrot.slane %v400_v30, 2  ;;  %v456_v41 = vadd.f32 %v455_v31, %v447_v24  ;;  %v406_v42 = vadd.f32 %v405_v32, %v4222_v29  ;;  %v461_v43 = vrot.slane %v448_v33, 4 }
 0x13a   :  { %v413_v45 = vrot.slane %v412_v35, 2  ;;  %v468_v46 = vadd.f32 %v467_v36, %v449_v28  ;;  %v418_v47 = vadd.f32 %v417_v37, %v4228_v34  ;;  %v473_v48 = vrot.slane %v450_v38, 4  ;;  %v271_v49 = vpop.f32.mrf.mxu0  ;;  %v312_v54 = vpop.f32.mrf.mxu1 }
 0x13b   :  { %v402_v50 = vadd.f32 %v401_v40, %v400_v30  ;;  %v457_v51 = vrot.slane %v456_v41, 2  ;;  %v407_v52 = vrot.slane %v406_v42, 2  ;;  %v462_v53 = vadd.f32 %v461_v43, %v448_v33 }
 0x13c   :  { %v414_v55 = vadd.f32 %v413_v45, %v412_v35  ;;  %v469_v56 = vrot.slane %v468_v46, 2  ;;  %v419_v57 = vrot.slane %v418_v47, 2  ;;  %v474_v58 = vadd.f32 %v473_v48, %v450_v38  ;;  %v4236_v59 = vpop.f32.mrf.mxu0  ;;  %v4238_v0 = vpop.f32.mrf.mxu1 }
 0x13d   :  { %v403_v60 = vrot.slane %v402_v50, 1  ;;  %v458_v61 = vadd.f32 %v457_v51, %v456_v41  ;;  %v408_v62 = vadd.f32 %v407_v52, %v406_v42  ;;  %v463_v63 = vrot.slane %v462_v53, 2 }
 0x13e   :  { %v420_v4 = vadd.f32 %v419_v57, %v418_v47  ;;  %v475_v5 = vrot.slane %v474_v58, 2  ;;  %v4246_v6 = vpop.f32.mrf.mxu0  ;;  %v415_v7 = vrot.slane %v414_v55, 1  ;;  %v470_v8 = vadd.f32 %v469_v56, %v468_v46  ;;  %v4248_v11 = vpop.f32.mrf.mxu1 }
 0x13f   :  { %v409_v9 = vrot.slane %v408_v62, 1  ;;  %v464_v10 = vadd.f32 %v463_v63, %v462_v53  ;;  %v404_v13 = vadd.f32 %v403_v60, %v402_v50  ;;  %v459_v14 = vrot.slane %v458_v61, 1 }
 0x140   :  { %v421_v15 = vrot.slane %v420_v4, 1  ;;  %v476_v16 = vadd.f32 %v475_v5, %v474_v58  ;;  %v352_v17 = vpop.f32.mrf.mxu0  ;;  %v393_v23 = vpop.f32.mrf.mxu1  ;;  %v547_v30 = vrot.slane %v4250_v12, %v4217_v26  ;;  %v416_v31 = vadd.f32 %v415_v7, %v414_v55 }
 0x141   :  { %v410_v18 = vadd.f32 %v409_v9, %v408_v62  ;;  %v465_v19 = vrot.slane %v464_v10, 1  ;;  %v471_v32 = vrot.slane %v470_v8, 1  ;;  %v460_v35 = vadd.f32 %v459_v14, %v458_v61 }
 0x142   :  { %v422_v24 = vadd.f32 %v421_v15, %v420_v4  ;;  %v477_v27 = vrot.slane %v476_v16, 1  ;;  %v353_v28 = vpop.f32.mrf.mxu0  ;;  %v394_v33 = vpop.f32.mrf.mxu1  ;;  %v4257_v36 = vmul.f32 0.125, %v404_v13  ;;  %v555_v37 = vrot.slane %v4250_v12, %v4241_v2 }
 0x143   :  { %v551_v38 = vrot.slane %v4250_v12, %v4244_v3  ;;  %v466_v39 = vadd.f32 %v465_v19, %v464_v10  ;;  %v4263_v40 = vmul.f32 0.125, %v410_v18  ;;  %v559_v41 = vrot.slane %v4250_v12, %v4253_v20 }
 0x144   :  { %v423_v42 = vrot.slane %v4236_v59, 4  ;;  %v478_v43 = vadd.f32 %v477_v27, %v476_v16  ;;  %v4268_v44 = vmul.f32 0.125, %v422_v24  ;;  %v451_v45 = vmul.f32 %v4236_v59, %v4236_v59 }
 0x145   :  { %v4273_v46 = vsub.s32 4, %v4207_v21  ;;  %v472_v47 = vadd.f32 %v471_v32, %v470_v8  ;;  %v4275_v48 = vmul.f32 0.125, %v416_v31  ;;  %v435_v50 = vrot.slane %v4238_v0, 4 }
 0x146   :  { %v424_v49 = vadd.f32 %v423_v42, %v4236_v59  ;;  %v4279_v51 = vmul.f32 0.125, %v460_v35  ;;  %v4283_v52 = vmul.f32 %v4257_v36, %v4257_v36  ;;  %v479_v53 = vrot.slane %v451_v45, 4 }
 0x147   :  { %v453_v54 = vmul.f32 %v4238_v0, %v4238_v0  ;;  %v512_v55 = vmul.f32 0.125, %v466_v39  ;;  %v520_v56 = vmul.f32 %v4263_v40, %v4263_v40  ;;  %v436_v58 = vadd.f32 %v435_v50, %v4238_v0 }
 0x148   :  { %v425_v57 = vrot.slane %v424_v49, 2  ;;  %v514_v60 = vmul.f32 0.125, %v478_v43  ;;  %v522_v61 = vmul.f32 %v4268_v44, %v4268_v44  ;;  %v480_v62 = vadd.f32 %v479_v53, %v451_v45 }
 0x149   :  { %v491_v63 = vrot.slane %v453_v54, 4  ;;  %v513_v4 = vmul.f32 0.125, %v472_v47  ;;  %v563_v7 = vrot.slane %v4250_v12, %v4273_v46  ;;  %v437_v8 = vrot.slane %v436_v58, 2 }
 0x14a   :  { %v426_v5 = vadd.f32 %v425_v57, %v424_v49  ;;  %v527_v9 = vsub.f32 %v4279_v51, %v4283_v52  ;;  %v521_v10 = vmul.f32 %v4275_v48, %v4275_v48  ;;  %v481_v13 = vrot.slane %v480_v62, 2 }
 0x14b   :  { %v492_v14 = vadd.f32 %v491_v63, %v453_v54  ;;  %v528_v15 = vsub.f32 %v512_v55, %v520_v56  ;;  %v438_v17 = vadd.f32 %v437_v8, %v436_v58  ;;  %v429_v18 = vrot.slane %v4246_v6, 4 }
 0x14c   :  { %v427_v16 = vrot.slane %v426_v5, 1  ;;  %v530_v19 = vsub.f32 %v514_v60, %v522_v61  ;;  %v482_v23 = vadd.f32 %v481_v13, %v480_v62  ;;  %v452_v27 = vmul.f32 %v4246_v6, %v4246_v6 }
 0x14d   :  { %v493_v24 = vrot.slane %v492_v14, 2  ;;  %v439_v31 = vrot.slane %v438_v17, 1  ;;  %v430_v32 = vadd.f32 %v429_v18, %v4246_v6  ;;  %v441_v33 = vrot.slane %v4248_v11, 4 }
 0x14e   :  { %v428_v28 = vadd.f32 %v427_v16, %v426_v5  ;;  %v483_v35 = vrot.slane %v482_v23, 1  ;;  %v485_v42 = vrot.slane %v452_v27, 4  ;;  %v454_v43 = vmul.f32 %v4248_v11, %v4248_v11 }
 0x14f   :  { %v494_v39 = vadd.f32 %v493_v24, %v492_v14  ;;  %v440_v47 = vadd.f32 %v439_v31, %v438_v17  ;;  %v431_v49 = vrot.slane %v430_v32, 2  ;;  %v442_v50 = vadd.f32 %v441_v33, %v4248_v11 }
 0x150   :  { %v4305_v45 = vmul.f32 0.125, %v428_v28  ;;  %v484_v51 = vadd.f32 %v483_v35, %v482_v23  ;;  %v486_v53 = vadd.f32 %v485_v42, %v452_v27  ;;  %v497_v54 = vrot.slane %v454_v43, 4 }
 0x151   :  { %v495_v52 = vrot.slane %v494_v39, 1  ;;  %v4310_v56 = vmul.f32 0.125, %v440_v47  ;;  %v432_v57 = vadd.f32 %v431_v49, %v430_v32  ;;  %v443_v58 = vrot.slane %v442_v50, 2 }
 0x152   :  { %v523_v55 = vmul.f32 %v4305_v45, %v4305_v45  ;;  %v515_v60 = vmul.f32 0.125, %v484_v51  ;;  %v487_v62 = vrot.slane %v486_v53, 2  ;;  %v498_v63 = vadd.f32 %v497_v54, %v454_v43 }
 0x153   :  { %v496_v61 = vadd.f32 %v495_v52, %v494_v39  ;;  %v529_v5 = vsub.f32 %v513_v4, %v521_v10  ;;  %v536_v8 = vmax.f32 %v528_v15, 0.0  ;;  %v433_v13 = vrot.slane %v432_v57, 1 }
 0x154   :  { %v444_v14 = vadd.f32 %v443_v58, %v442_v50  ;;  %v525_v17 = vmul.f32 %v4310_v56, %v4310_v56  ;;  %v488_v18 = vadd.f32 %v487_v62, %v486_v53  ;;  %v499_v23 = vrot.slane %v498_v63, 2 }
 0x155   :  { %v517_v16 = vmul.f32 0.125, %v496_v61  ;;  %v538_v24 = vmax.f32 %v530_v19, 0.0  ;;  %v531_v27 = vsub.f32 %v515_v60, %v523_v55  ;;  %v434_v28 = vadd.f32 %v433_v13, %v432_v57 }
 0x156   :  { %v445_v31 = vrot.slane %v444_v14, 1  ;;  %v535_v32 = vmax.f32 %v527_v9, 0.0  ;;  %v4315_v33 = vsub.s32 6, %v4207_v21  ;;  %v489_v35 = vrot.slane %v488_v18, 1 }
 0x157   :  { %v500_v39 = vadd.f32 %v499_v23, %v498_v63  ;;  %v537_v4 = vmax.f32 %v529_v5, 0.0  ;;  %v4317_v10 = vmul.f32 0.125, %v434_v28  ;;  %v4320_v15 = vsub.s32 5, %v4207_v21 }
 0x158   :  { %v446_v42 = vadd.f32 %v445_v31, %v444_v14  ;;  %v585_v19 = vadd.f32 %v551_v38, %v536_v8  ;;  %v533_v43 = vsub.f32 %v517_v16, %v525_v17  ;;  %v490_v47 = vadd.f32 %v489_v35, %v488_v18 }
 0x159   :  { %v501_v49 = vrot.slane %v500_v39, 1  ;;  %v587_v9 = vadd.f32 %v559_v41, %v538_v24  ;;  %v539_v50 = vmax.f32 %v531_v27, 0.0  ;;  %v524_v51 = vmul.f32 %v4317_v10, %v4317_v10 }
 0x15a   :  { %v4330_v52 = vmul.f32 0.125, %v446_v42  ;;  %v584_v53 = vadd.f32 %v547_v30, %v535_v32  ;;  %v571_v38 = vrot.slane %v4250_v12, %v4315_v33  ;;  %v516_v54 = vmul.f32 0.125, %v490_v47 }
 0x15b   :  { %v586_v55 = vadd.f32 %v555_v37, %v537_v4  ;;  %v502_v57 = vadd.f32 %v501_v49, %v500_v39  ;;  %v4343_v58 = vsub.s32 7, %v4207_v21  ;;  %3792 = vrsqrt.f32 %v585_v19 }
 0x15c   :  { %v526_v41 = vmul.f32 %v4330_v52, %v4330_v52  ;;  %v541_v60 = vmax.f32 %v533_v43, 0.0  ;;  %v532_v61 = vsub.f32 %v516_v54, %v524_v51  ;;  %v567_v30 = vrot.slane %v4250_v12, %v4320_v15 }
 0x15d   :  { %3794 = vrsqrt.f32 %v587_v9  ;;  %v588_v62 = vadd.f32 %v563_v7, %v539_v50  ;;  %v518_v63 = vmul.f32 0.125, %v502_v57  ;;  %v575_v8 = vrot.slane %v4250_v12, %v4343_v58 }
 0x15e   :  { %3796 = vrsqrt.f32 %v584_v53  ;;  %v540_v37 = vmax.f32 %v532_v61, 0.0  ;;  %v590_v13 = vadd.f32 %v571_v38, %v541_v60  ;;  %v4086_v18 = vmov 1966171168  }
 0x15f   :  { %3798 = vrsqrt.f32 %v586_v55  ;;  %v534_v5 = vsub.f32 %v518_v63, %v526_v41  ;;  %v613_v23 = vunpack.c.l.s4 %v4086_v18  ;;  %v396_v55 = vld [vmem:[%s4799_s2] sm:$0xff] }
 0x160   :  { %v589_v14 = vadd.f32 %v567_v30, %v540_v37  ;;  %3800 = vrsqrt.f32 %v588_v62 }
 0x161   :  { %v542_v16 = vmax.f32 %v534_v5, 0.0  ;;  %v614_v7 = vunpack.c.0.s8 %v613_v23 }
 0x162   :  { %3802 = vrsqrt.f32 %v589_v14 }
 0x163   :  { %v591_v17 = vadd.f32 %v575_v8, %v542_v16  ;;  %3804 = vrsqrt.f32 %v590_v13  ;;  %v4353_v32 = vsub.s32 %v614_v7, %v4207_v21 }
 0x165   :  { %3806 = vrsqrt.f32 %v591_v17 }
 0x168   :  { %v3793_v24 = vpop.eup %3792 }
 0x16a   :  { %v3795_v27 = vpop.eup %3794 }
 0x16b   :  { %v3797_v28 = vpop.eup %3796 }
 0x16c   :  { %v3799_v31 = vpop.eup %3798  ;;  %v608_v35 = vcombine.low %v3797_v28, %v3793_v24 }
 0x16d   :  { %v609_v12 = vcombine.low %v3799_v31, %v3795_v27  ;;  %v3801_v39 = vpop.eup %3800 }
 0x16e   :  { %v618_v43 = vrot.slane %v608_v35, %v4353_v32 }
 0x16f   :  { %v3803_v4 = vpop.eup %3802  ;;  %v625_v47 = vrot.slane %v609_v12, %v4353_v32 }
 0x170   :  { %v610_v42 = vcombine.low %v3801_v39, %v3803_v4  ;;  %v3805_v19 = vpop.eup %3804  ;;  %v397_v39 = vld [vmem:[#allocation10] sm:$0xff] }
 0x171   :  { %v640_v51 = vcombine.low %v618_v43, %v625_v47 }
 0x172   :  { %v3807_v49 = vpop.eup %3806  ;;  %v632_v9 = vrot.slane %v610_v42, %v4353_v32 }
 0x173   :  { %v611_v50 = vcombine.low %v3805_v19, %v3807_v49  ;;  %v648_v21 = vrot.slane %v640_v51, %v4353_v32 }
 0x175   :  { %v639_v53 = vrot.slane %v611_v50, %v4353_v32 }
 0x177   :  { %v641_v38 = vcombine.low %v632_v9, %v639_v53 }
 0x179   :  { %v655_v54 = vrot.slane %v641_v38, %v4353_v32 }
 0x17b   :  { %v656_v57 = vcombine.low %v648_v21, %v655_v54 }
 0x17d   :  { %v658_v41 = vmul.f32 %v656_v57, %v396_v55 }
 0x17f   :  { %v663_v60 = vrot.slane %v658_v41, %v4217_v26  ;;  %v667_v61 = vrot.slane %v658_v41, %v4244_v3  ;;  %v671_v30 = vrot.slane %v658_v41, %v4241_v2  ;;  %v675_v62 = vrot.slane %v658_v41, %v4253_v20 }
 0x180   :  { %v679_v63 = vrot.slane %v658_v41, %v4273_v46  ;;  %v683_v37 = vrot.slane %v658_v41, %v4320_v15  ;;  %v687_v5 = vrot.slane %v658_v41, %v4315_v33  ;;  %v691_v8 = vrot.slane %v658_v41, %v4343_v58 }
 0x181   :  { %v700_v13 = vmul.f32 %v663_v60, %v4257_v36  ;;  %v701_v14 = vmul.f32 %v667_v61, %v4263_v40  ;;  %v702_v16 = vmul.f32 %v671_v30, %v4275_v48  ;;  %v703_v17 = vmul.f32 %v675_v62, %v4268_v44 }
 0x182   :  { %v704_v18 = vmul.f32 %v679_v63, %v4305_v45  ;;  %v705_v23 = vmul.f32 %v683_v37, %v4317_v10  ;;  %v706_v24 = vmul.f32 %v687_v5, %v4310_v56  ;;  %v707_v7 = vmul.f32 %v691_v8, %v4330_v52 }
 0x183   :  { %v716_v27 = vcombine.low %v700_v13, %v701_v14  ;;  %v717_v28 = vcombine.low %v702_v16, %v703_v17  ;;  %v767_v4 = vmul.f32 %v663_v60, %v4209_v22  ;;  %v768_v19 = vmul.f32 %v667_v61, %v4222_v29 }
 0x184   :  { %v718_v31 = vcombine.low %v704_v18, %v705_v23  ;;  %v719_v35 = vcombine.low %v706_v24, %v707_v7  ;;  %v769_v43 = vmul.f32 %v671_v30, %v4214_v25  ;;  %v770_v47 = vmul.f32 %v675_v62, %v4228_v34 }
 0x185   :  { %v726_v36 = vrot.slane %v716_v27, %v4353_v32  ;;  %v733_v40 = vrot.slane %v717_v28, %v4353_v32  ;;  %v771_v49 = vmul.f32 %v679_v63, %v4236_v59  ;;  %v772_v9 = vmul.f32 %v683_v37, %v4246_v6 }
 0x186   :  { %v740_v48 = vrot.slane %v718_v31, %v4353_v32  ;;  %v747_v44 = vrot.slane %v719_v35, %v4353_v32  ;;  %v773_v50 = vmul.f32 %v687_v5, %v4238_v0  ;;  %v774_v51 = vmul.f32 %v691_v8, %v4248_v11 }
 0x187   :  { %v748_v12 = vcombine.low %v726_v36, %v733_v40 }
 0x188   :  { %v749_v45 = vcombine.low %v740_v48, %v747_v44 }
 0x189   :  { %v756_v10 = vrot.slane %v748_v12, %v4353_v32 }
 0x18a   :  { %v763_v56 = vrot.slane %v749_v45, %v4353_v32 }
 0x18c   :  { %v764_v52 = vcombine.low %v756_v10, %v763_v56 }
 0x18e   :  { %v766_v42 = vsub.f32 %v397_v39, %v764_v52 }
 0x190   :  { %v779_v53 = vrot.slane %v766_v42, %v4217_v26  ;;  %v783_v38 = vrot.slane %v766_v42, %v4244_v3  ;;  %v787_v22 = vrot.slane %v766_v42, %v4241_v2  ;;  %v791_v29 = vrot.slane %v766_v42, %v4253_v20 }
 0x191   :  { %v795_v25 = vrot.slane %v766_v42, %v4273_v46  ;;  %v799_v34 = vrot.slane %v766_v42, %v4320_v15  ;;  %v803_v59 = vrot.slane %v766_v42, %v4315_v33  ;;  %v807_v6 = vrot.slane %v766_v42, %v4343_v58 }
 0x192   :  { %v816_v21 = vadd.f32 %v779_v53, %v767_v4  ;;  %v817_v0 = vadd.f32 %v783_v38, %v768_v19  ;;  %v818_v54 = vadd.f32 %v787_v22, %v769_v43  ;;  %v819_v11 = vadd.f32 %v791_v29, %v770_v47 }
 0x193   :  { %v820_v55 = vadd.f32 %v795_v25, %v771_v49  ;;  %v821_v57 = vadd.f32 %v799_v34, %v772_v9  ;;  %v822_v41 = vadd.f32 %v803_v59, %v773_v50  ;;  %v823_v60 = vadd.f32 %v807_v6, %v774_v51 }
 0x194   :  { %vm824_vm1 = vcmp.gt.f32.partialorder %v816_v21, 0.0  ;;  %vm825_vm2 = vcmp.gt.f32.partialorder %v817_v0, 0.0  ;;  %vm826_vm3 = vcmp.gt.f32.partialorder %v818_v54, 0.0  ;;  %vm827_vm4 = vcmp.gt.f32.partialorder %v819_v11, 0.0 }
 0x195   :  { %vm828_vm5 = vcmp.gt.f32.partialorder %v820_v55, 0.0  ;;  %vm829_vm6 = vcmp.gt.f32.partialorder %v821_v57, 0.0  ;;  %vm830_vm7 = vcmp.gt.f32.partialorder %v822_v41, 0.0  ;;  %vm831_vm8 = vcmp.gt.f32.partialorder %v823_v60, 0.0 }
 0x196   :  { %v832_v61 = vmul.f32 0.2, %v816_v21  ;;  %v833_v30 = vmul.f32 0.2, %v817_v0  ;;  %v834_v62 = vmul.f32 0.2, %v818_v54 }
 0x197   :  { %v835_v63 = vmul.f32 0.2, %v819_v11  ;;  %v836_v37 = vmul.f32 0.2, %v820_v55  ;;  %v837_v5 = vmul.f32 0.2, %v821_v57 }
 0x198   :  { %v838_v8 = vmul.f32 0.2, %v822_v41  ;;  %v839_v13 = vmul.f32 0.2, %v823_v60  ;;  %v4403_v14 = vsel %vm824_vm1, %v816_v21, %v832_v61  ;;  %v841_v16 = vsel %vm825_vm2, %v817_v0, %v833_v30 }
 0x199   :  { %v4407_v17 = vsel %vm826_vm3, %v818_v54, %v834_v62  ;;  %v843_v18 = vsel %vm827_vm4, %v819_v11, %v835_v63  ;;  %v4411_v23 = vsel %vm828_vm5, %v820_v55, %v836_v37  ;;  %v4414_v24 = vsel %vm829_vm6, %v821_v57, %v837_v5 }
 0x19a   :  { %v4417_v7 = vsel %vm830_vm7, %v822_v41, %v838_v8  ;;  %v4420_v27 = vsel %vm831_vm8, %v823_v60, %v839_v13 }
 0x19b   :  { %4068 = dma.done.wait [#allocation4], 32768 }
 0x19c   :  { %4069 = vsyncadd [#allocation4], 4294934528  ;;  %v4422_v28 = vpack.c.bf16 %v841_v16, %v841_v16  ;;  %v4424_v31 = vpack.c.bf16 %v843_v18, %v843_v18  ;;  %v877_v35 = vld [vmem:[#allocation2 + $0xc8] sm:$0xff]  ;;  %v876_v40 = vld [vmem:[#allocation2 + $0xc0] sm:$0xff] }
 0x19d   :  { %v941_v36 = vld [vmem:[#allocation2 + $0x2c8] sm:$0xff]  ;;  %v1157_v48 = vunpack.c.l.s8.bf16 %v877_v35  ;;  %v1165_v44 = vunpack.c.h.s8.bf16 %v877_v35  ;;  %v940_v10 = vld [vmem:[#allocation2 + $0x2c0] sm:$0xff]  ;;  %v1164_v56 = vunpack.c.h.s8.bf16 %v876_v40  ;;  %v1156_v42 = vunpack.c.l.s8.bf16 %v876_v40 }
 0x19e   :  { %1660 = vmatprep.mubr.bf16.mxu0 %v4422_v28  ;;  %1701 = vmatprep.mubr.bf16.mxu1 %v4424_v31  ;;  %v1285_v12 = vunpack.c.l.s8.bf16 %v941_v36  ;;  %v1293_v45 = vunpack.c.h.s8.bf16 %v941_v36  ;;  %v1292_v39 = vunpack.c.h.s8.bf16 %v940_v10  ;;  %v869_v52 = vld [vmem:[#allocation2 + $0x88] sm:$0xff]  ;;  %v1284_v19 = vunpack.c.l.s8.bf16 %v940_v10  ;;  %v868_v49 = vld [vmem:[#allocation2 + $0x80] sm:$0xff] }
 0x19f   :  { %v933_v4 = vld [vmem:[#allocation2 + $0x288] sm:$0xff]  ;;  %1628 = vmatprep.subr.bf16.mxu0 %v1165_v44  ;;  %v1149_v43 = vunpack.c.h.s8.bf16 %v869_v52  ;;  %v932_v9 = vld [vmem:[#allocation2 + $0x280] sm:$0xff]  ;;  %v1148_v50 = vunpack.c.h.s8.bf16 %v868_v49  ;;  %v1141_v53 = vunpack.c.l.s8.bf16 %v869_v52  ;;  %v1140_v25 = vunpack.c.l.s8.bf16 %v868_v49 }
 0x1a0   :  { %1669 = vmatprep.subr.bf16.mxu1 %v1293_v45  ;;  %1629 = vmatpush1.bf16.msra.mxu0 %v1164_v56  ;;  %v1277_v47 = vunpack.c.h.s8.bf16 %v933_v4  ;;  %v1276_v51 = vunpack.c.h.s8.bf16 %v932_v9  ;;  %v1269_v38 = vunpack.c.l.s8.bf16 %v933_v4  ;;  %v861_v22 = vld [vmem:[#allocation2 + $0x48] sm:$0xff]  ;;  %v1268_v34 = vunpack.c.l.s8.bf16 %v932_v9  ;;  %v860_v21 = vld [vmem:[#allocation2 + $0x40] sm:$0xff] }
 0x1a1   :  { %1670 = vmatpush1.bf16.msra.mxu1 %v1292_v39  ;;  %1630 = vmatprep.subr.bf16.mxu0 %v1157_v48  ;;  %v925_v29 = vld [vmem:[#allocation2 + $0x248] sm:$0xff]  ;;  %v1133_v59 = vunpack.c.h.s8.bf16 %v861_v22  ;;  %v924_v0 = vld [vmem:[#allocation2 + $0x240] sm:$0xff]  ;;  %v1132_v54 = vunpack.c.h.s8.bf16 %v860_v21  ;;  %v1125_v55 = vunpack.c.l.s8.bf16 %v861_v22  ;;  %v1124_v61 = vunpack.c.l.s8.bf16 %v860_v21 }
 0x1a2   :  { %1671 = vmatprep.subr.bf16.mxu1 %v1285_v12  ;;  %v1261_v6 = vunpack.c.h.s8.bf16 %v925_v29  ;;  %v1260_v11 = vunpack.c.h.s8.bf16 %v924_v0  ;;  %v1253_v57 = vunpack.c.l.s8.bf16 %v925_v29  ;;  %v853_v41 = vld [vmem:[#allocation2 + $0x8] sm:$0xff]  ;;  %v1252_v30 = vunpack.c.l.s8.bf16 %v924_v0  ;;  %v852_v37 = vld [vmem:[#allocation2] sm:$0xff] }
 0x1a3   :  { %v917_v60 = vld [vmem:[#allocation2 + $0x208] sm:$0xff]  ;;  %v1117_v62 = vunpack.c.h.s8.bf16 %v853_v41  ;;  %v916_v5 = vld [vmem:[#allocation2 + $0x200] sm:$0xff]  ;;  %v1116_v8 = vunpack.c.h.s8.bf16 %v852_v37  ;;  %v1109_v16 = vunpack.c.l.s8.bf16 %v853_v41  ;;  %v1108_v40 = vunpack.c.l.s8.bf16 %v852_v37 }
 0x1a4   :  { %1631 = vmatpush1.bf16.msra.mxu0 %v1156_v42  ;;  %v1245_v63 = vunpack.c.h.s8.bf16 %v917_v60  ;;  %v1244_v13 = vunpack.c.h.s8.bf16 %v916_v5  ;;  %v1237_v18 = vunpack.c.l.s8.bf16 %v917_v60  ;;  %v909_v35 = vld [vmem:[#allocation2 + $0x1c8] sm:$0xff]  ;;  %v1236_v48 = vunpack.c.l.s8.bf16 %v916_v5  ;;  %v908_v45 = vld [vmem:[#allocation2 + $0x1c0] sm:$0xff] }
 0x1a5   :  { %1672 = vmatpush1.bf16.msra.mxu1 %v1284_v19  ;;  %1632 = vmatprep.subr.bf16.mxu0 %v1149_v43  ;;  %v973_v36 = vld [vmem:[#allocation2 + $0x3c8] sm:$0xff]  ;;  %v1229_v44 = vunpack.c.h.s8.bf16 %v909_v35  ;;  %v972_v10 = vld [vmem:[#allocation2 + $0x3c0] sm:$0xff]  ;;  %v1228_v56 = vunpack.c.h.s8.bf16 %v908_v45  ;;  %v1221_v52 = vunpack.c.l.s8.bf16 %v909_v35  ;;  %v1220_v43 = vunpack.c.l.s8.bf16 %v908_v45 }
 0x1a6   :  { %1673 = vmatprep.subr.bf16.mxu1 %v1277_v47  ;;  %v1357_v12 = vunpack.c.h.s8.bf16 %v973_v36  ;;  %v1356_v39 = vunpack.c.h.s8.bf16 %v972_v10  ;;  %v1349_v4 = vunpack.c.l.s8.bf16 %v973_v36  ;;  %v901_v42 = vld [vmem:[#allocation2 + $0x188] sm:$0xff]  ;;  %v1348_v47 = vunpack.c.l.s8.bf16 %v972_v10 }
 0x1a7   :  { %v965_v19 = vld [vmem:[#allocation2 + $0x388] sm:$0xff]  ;;  %v1213_v49 = vunpack.c.h.s8.bf16 %v901_v42  ;;  %v1205_v22 = vunpack.c.l.s8.bf16 %v901_v42 }
 0x1a8   :  { %1633 = vmatpush1.bf16.msra.mxu0 %v1148_v50  ;;  %v1341_v9 = vunpack.c.h.s8.bf16 %v965_v19  ;;  %v900_v50 = vld [vmem:[#allocation2 + $0x180] sm:$0xff]  ;;  %v1333_v29 = vunpack.c.l.s8.bf16 %v965_v19 }
 0x1a9   :  { %1674 = vmatpush1.bf16.msra.mxu1 %v1276_v51  ;;  %1634 = vmatprep.subr.bf16.mxu0 %v1141_v53  ;;  %v964_v51 = vld [vmem:[#allocation2 + $0x380] sm:$0xff]  ;;  %v1212_v53 = vunpack.c.h.s8.bf16 %v900_v50 }
 0x1aa   :  { %1675 = vmatprep.subr.bf16.mxu1 %v1269_v38  ;;  %v1340_v38 = vunpack.c.h.s8.bf16 %v964_v51 }
 0x1ac   :  { %1635 = vmatpush1.bf16.msra.mxu0 %v1140_v25  ;;  %v893_v25 = vld [vmem:[#allocation2 + $0x148] sm:$0xff] }
 0x1ad   :  { %1676 = vmatpush1.bf16.msra.mxu1 %v1268_v34  ;;  %1636 = vmatprep.subr.bf16.mxu0 %v1133_v59  ;;  %v957_v34 = vld [vmem:[#allocation2 + $0x348] sm:$0xff]  ;;  %v1204_v59 = vunpack.c.l.s8.bf16 %v900_v50  ;;  %v1197_v21 = vunpack.c.h.s8.bf16 %v893_v25  ;;  %v1189_v41 = vunpack.c.l.s8.bf16 %v893_v25  ;;  %v4438_v50 = vpack.c.bf16 %v4414_v24, %v4414_v24 }
 0x1ae   :  { %1677 = vmatprep.subr.bf16.mxu1 %v1261_v6  ;;  %v1332_v6 = vunpack.c.l.s8.bf16 %v964_v51  ;;  %v1325_v0 = vunpack.c.h.s8.bf16 %v957_v34  ;;  %v1317_v60 = vunpack.c.l.s8.bf16 %v957_v34 }
 0x1b0   :  { %1637 = vmatpush1.bf16.msra.mxu0 %v1132_v54  ;;  %v892_v54 = vld [vmem:[#allocation2 + $0x140] sm:$0xff] }
 0x1b1   :  { %1678 = vmatpush1.bf16.msra.mxu1 %v1260_v11  ;;  %1638 = vmatprep.subr.bf16.mxu0 %v1125_v55  ;;  %v956_v11 = vld [vmem:[#allocation2 + $0x340] sm:$0xff]  ;;  %v1196_v55 = vunpack.c.h.s8.bf16 %v892_v54 }
 0x1b2   :  { %1679 = vmatprep.subr.bf16.mxu1 %v1253_v57  ;;  %v1324_v57 = vunpack.c.h.s8.bf16 %v956_v11 }
 0x1b4   :  { %1639 = vmatpush1.bf16.msra.mxu0 %v1124_v61  ;;  %v885_v61 = vld [vmem:[#allocation2 + $0x108] sm:$0xff] }
 0x1b5   :  { %1680 = vmatpush1.bf16.msra.mxu1 %v1252_v30  ;;  %1640 = vmatprep.subr.bf16.mxu0 %v1117_v62  ;;  %v949_v30 = vld [vmem:[#allocation2 + $0x308] sm:$0xff]  ;;  %v1188_v62 = vunpack.c.l.s8.bf16 %v892_v54  ;;  %v1181_v37 = vunpack.c.h.s8.bf16 %v885_v61  ;;  %v1173_v35 = vunpack.c.l.s8.bf16 %v885_v61 }
 0x1b6   :  { %1681 = vmatprep.subr.bf16.mxu1 %v1245_v63  ;;  %v1316_v63 = vunpack.c.l.s8.bf16 %v956_v11  ;;  %v1309_v5 = vunpack.c.h.s8.bf16 %v949_v30  ;;  %v1301_v36 = vunpack.c.l.s8.bf16 %v949_v30 }
 0x1b8   :  { %1641 = vmatpush1.bf16.msra.mxu0 %v1116_v8  ;;  %v884_v8 = vld [vmem:[#allocation2 + $0x100] sm:$0xff] }
 0x1b9   :  { %1682 = vmatpush1.bf16.msra.mxu1 %v1244_v13  ;;  %1642 = vmatprep.subr.bf16.mxu0 %v1109_v16  ;;  %v948_v13 = vld [vmem:[#allocation2 + $0x300] sm:$0xff]  ;;  %v1180_v16 = vunpack.c.h.s8.bf16 %v884_v8 }
 0x1ba   :  { %1683 = vmatprep.subr.bf16.mxu1 %v1237_v18  ;;  %v1308_v18 = vunpack.c.h.s8.bf16 %v948_v13 }
 0x1bc   :  { %1643 = vmatpush1.bf16.msra.mxu0 %v1108_v40  ;;  %v1005_v40 = vld [vmem:[#allocation2 + $0x4c8] sm:$0xff] }
 0x1bd   :  { %1684 = vmatpush1.bf16.msra.mxu1 %v1236_v48  ;;  %1644 = vmatprep.subr.bf16.mxu0 %v1229_v44  ;;  %v1069_v48 = vld [vmem:[#allocation2 + $0x6c8] sm:$0xff]  ;;  %v1172_v44 = vunpack.c.l.s8.bf16 %v884_v8  ;;  %v1421_v45 = vunpack.c.h.s8.bf16 %v1005_v40 }
 0x1be   :  { %1685 = vmatprep.subr.bf16.mxu1 %v1357_v12  ;;  %v1300_v12 = vunpack.c.l.s8.bf16 %v948_v13  ;;  %v1549_v10 = vunpack.c.h.s8.bf16 %v1069_v48 }
 0x1c0   :  { %1645 = vmatpush2.bf16.msra.mxu0 %v1228_v56  ;;  %v1004_v56 = vld [vmem:[#allocation2 + $0x4c0] sm:$0xff] }
 0x1c1   :  { %1686 = vmatpush2.bf16.msra.mxu1 %v1356_v39  ;;  %1646 = vmatprep.subr.bf16.mxu0 %v1221_v52  ;;  %v1068_v39 = vld [vmem:[#allocation2 + $0x6c0] sm:$0xff]  ;;  %v4430_v52 = vpack.c.bf16 %v4403_v14, %v4403_v14  ;;  %v1420_v42 = vunpack.c.h.s8.bf16 %v1004_v56  ;;  %v4442_v14 = vpack.c.bf16 %v4420_v27, %v4420_v27 }
 0x1c2   :  { %1687 = vmatprep.subr.bf16.mxu1 %v1349_v4  ;;  %v4434_v4 = vpack.c.bf16 %v4407_v17, %v4407_v17  ;;  %v1548_v19 = vunpack.c.h.s8.bf16 %v1068_v39  ;;  %v1412_v17 = vunpack.c.l.s8.bf16 %v1004_v56  ;;  %v1540_v51 = vunpack.c.l.s8.bf16 %v1068_v39 }
 0x1c4   :  { %1647 = vmatpush2.bf16.msra.mxu0 %v1220_v43  ;;  %v1413_v43 = vunpack.c.l.s8.bf16 %v1005_v40 }
 0x1c5   :  { %1688 = vmatpush2.bf16.msra.mxu1 %v1348_v47  ;;  %1648 = vmatprep.subr.bf16.mxu0 %v1213_v49  ;;  %v1541_v47 = vunpack.c.l.s8.bf16 %v1069_v48  ;;  %v997_v49 = vld [vmem:[#allocation2 + $0x488] sm:$0xff] }
 0x1c6   :  { %1689 = vmatprep.subr.bf16.mxu1 %v1341_v9  ;;  %v1061_v9 = vld [vmem:[#allocation2 + $0x688] sm:$0xff]  ;;  %v1397_v25 = vunpack.c.l.s8.bf16 %v997_v49 }
 0x1c7   :  { %v1525_v34 = vunpack.c.l.s8.bf16 %v1061_v9 }
 0x1c8   :  { %1649 = vmatpush2.bf16.msra.mxu0 %v1212_v53  ;;  %v1405_v53 = vunpack.c.h.s8.bf16 %v997_v49 }
 0x1c9   :  { %1690 = vmatpush2.bf16.msra.mxu1 %v1340_v38  ;;  %1650 = vmatprep.subr.bf16.mxu0 %v1205_v22  ;;  %v1533_v38 = vunpack.c.h.s8.bf16 %v1061_v9  ;;  %v996_v22 = vld [vmem:[#allocation2 + $0x480] sm:$0xff] }
 0x1ca   :  { %1691 = vmatprep.subr.bf16.mxu1 %v1333_v29  ;;  %v1060_v29 = vld [vmem:[#allocation2 + $0x680] sm:$0xff]  ;;  %v1404_v24 = vunpack.c.h.s8.bf16 %v996_v22 }
 0x1cb   :  { %v1532_v27 = vunpack.c.h.s8.bf16 %v1060_v29 }
 0x1cc   :  { %1651 = vmatpush2.bf16.msra.mxu0 %v1204_v59  ;;  %v989_v59 = vld [vmem:[#allocation2 + $0x448] sm:$0xff] }
 0x1cd   :  { %1692 = vmatpush2.bf16.msra.mxu1 %v1332_v6  ;;  %1652 = vmatprep.subr.bf16.mxu0 %v1197_v21  ;;  %v1053_v6 = vld [vmem:[#allocation2 + $0x648] sm:$0xff]  ;;  %v1396_v21 = vunpack.c.l.s8.bf16 %v996_v22  ;;  %v1389_v54 = vunpack.c.h.s8.bf16 %v989_v59  ;;  %v1381_v61 = vunpack.c.l.s8.bf16 %v989_v59 }
 0x1ce   :  { %1693 = vmatprep.subr.bf16.mxu1 %v1325_v0  ;;  %v1524_v0 = vunpack.c.l.s8.bf16 %v1060_v29  ;;  %v1517_v11 = vunpack.c.h.s8.bf16 %v1053_v6  ;;  %v1509_v30 = vunpack.c.l.s8.bf16 %v1053_v6 }
 0x1d0   :  { %1653 = vmatpush2.bf16.msra.mxu0 %v1196_v55  ;;  %v988_v55 = vld [vmem:[#allocation2 + $0x440] sm:$0xff] }
 0x1d1   :  { %1694 = vmatpush2.bf16.msra.mxu1 %v1324_v57  ;;  %1654 = vmatprep.subr.bf16.mxu0 %v1189_v41  ;;  %v1052_v57 = vld [vmem:[#allocation2 + $0x640] sm:$0xff]  ;;  %v1388_v41 = vunpack.c.h.s8.bf16 %v988_v55 }
 0x1d2   :  { %1695 = vmatprep.subr.bf16.mxu1 %v1317_v60  ;;  %v1516_v60 = vunpack.c.h.s8.bf16 %v1052_v57 }
 0x1d4   :  { %1655 = vmatpush2.bf16.msra.mxu0 %v1188_v62  ;;  %v981_v62 = vld [vmem:[#allocation2 + $0x408] sm:$0xff] }
 0x1d5   :  { %1696 = vmatpush2.bf16.msra.mxu1 %v1316_v63  ;;  %1656 = vmatprep.subr.bf16.mxu0 %v1181_v37  ;;  %v1045_v63 = vld [vmem:[#allocation2 + $0x608] sm:$0xff]  ;;  %v1380_v37 = vunpack.c.l.s8.bf16 %v988_v55  ;;  %v1373_v8 = vunpack.c.h.s8.bf16 %v981_v62  ;;  %v1365_v40 = vunpack.c.l.s8.bf16 %v981_v62 }
 0x1d6   :  { %1697 = vmatprep.subr.bf16.mxu1 %v1309_v5  ;;  %v1508_v5 = vunpack.c.l.s8.bf16 %v1052_v57  ;;  %v1501_v13 = vunpack.c.h.s8.bf16 %v1045_v63  ;;  %v1493_v48 = vunpack.c.l.s8.bf16 %v1045_v63 }
 0x1d8   :  { %1657 = vmatpush2.bf16.msra.mxu0 %v1180_v16  ;;  %v980_v16 = vld [vmem:[#allocation2 + $0x400] sm:$0xff] }
 0x1d9   :  { %1698 = vmatpush2.bf16.msra.mxu1 %v1308_v18  ;;  %1658 = vmatprep.subr.bf16.mxu0 %v1173_v35  ;;  %v1044_v18 = vld [vmem:[#allocation2 + $0x600] sm:$0xff]  ;;  %v1372_v35 = vunpack.c.h.s8.bf16 %v980_v16 }
 0x1da   :  { %1699 = vmatprep.subr.bf16.mxu1 %v1301_v36  ;;  %v1500_v36 = vunpack.c.h.s8.bf16 %v1044_v18 }
 0x1dc   :  { %1659 = vmatpush2.bf16.msra.mxu0 %v1172_v44  ;;  %v1037_v44 = vld [vmem:[#allocation2 + $0x5c8] sm:$0xff] }
 0x1dd   :  { %1700 = vmatpush2.bf16.msra.mxu1 %v1300_v12  ;;  %1710 = vmatprep.subr.bf16.mxu0 %v1421_v45  ;;  %v1101_v12 = vld [vmem:[#allocation2 + $0x7c8] sm:$0xff]  ;;  %v1364_v45 = vunpack.c.l.s8.bf16 %v980_v16  ;;  %v1485_v56 = vunpack.c.h.s8.bf16 %v1037_v44  ;;  %v1477_v49 = vunpack.c.l.s8.bf16 %v1037_v44 }
 0x1de   :  { %1751 = vmatprep.subr.bf16.mxu1 %v1549_v10  ;;  %v1492_v10 = vunpack.c.l.s8.bf16 %v1044_v18  ;;  %v1613_v39 = vunpack.c.h.s8.bf16 %v1101_v12  ;;  %v1605_v9 = vunpack.c.l.s8.bf16 %v1101_v12 }
 0x1df   :  { %1661 = vmatmul.mubr.bf16.vlgmr.msra.gmra.mxu0 %v4430_v52 }
 0x1e0   :  { %1702 = vmatmul.mubr.bf16.vlgmr.msra.gmra.mxu1 %v4434_v4  ;;  %1711 = vmatpush1.bf16.msra.mxu0 %v1420_v42  ;;  %v1036_v42 = vld [vmem:[#allocation2 + $0x5c0] sm:$0xff] }
 0x1e1   :  { %1752 = vmatpush1.bf16.msra.mxu1 %v1548_v19  ;;  %1712 = vmatprep.subr.bf16.mxu0 %v1413_v43  ;;  %v1100_v19 = vld [vmem:[#allocation2 + $0x7c0] sm:$0xff]  ;;  %v1484_v43 = vunpack.c.h.s8.bf16 %v1036_v42 }
 0x1e2   :  { %1753 = vmatprep.subr.bf16.mxu1 %v1541_v47  ;;  %1742 = vmatprep.mubr.bf16.mxu0 %v4438_v50  ;;  %v1612_v47 = vunpack.c.h.s8.bf16 %v1100_v19 }
 0x1e3   :  { %1783 = vmatprep.mubr.bf16.mxu1 %v4442_v14 }
 0x1e4   :  { %1713 = vmatpush1.bf16.msra.mxu0 %v1412_v17  ;;  %v1029_v17 = vld [vmem:[#allocation2 + $0x588] sm:$0xff] }
 0x1e5   :  { %1754 = vmatpush1.bf16.msra.mxu1 %v1540_v51  ;;  %1714 = vmatprep.subr.bf16.mxu0 %v1405_v53  ;;  %v1093_v51 = vld [vmem:[#allocation2 + $0x788] sm:$0xff]  ;;  %v1476_v53 = vunpack.c.l.s8.bf16 %v1036_v42  ;;  %v1469_v22 = vunpack.c.h.s8.bf16 %v1029_v17  ;;  %v1461_v59 = vunpack.c.l.s8.bf16 %v1029_v17 }
 0x1e6   :  { %1755 = vmatprep.subr.bf16.mxu1 %v1533_v38  ;;  %v1604_v38 = vunpack.c.l.s8.bf16 %v1100_v19  ;;  %v1597_v29 = vunpack.c.h.s8.bf16 %v1093_v51  ;;  %v1589_v6 = vunpack.c.l.s8.bf16 %v1093_v51 }
 0x1e8   :  { %1715 = vmatpush1.bf16.msra.mxu0 %v1404_v24  ;;  %v1028_v24 = vld [vmem:[#allocation2 + $0x580] sm:$0xff] }
 0x1e9   :  { %1756 = vmatpush1.bf16.msra.mxu1 %v1532_v27  ;;  %1716 = vmatprep.subr.bf16.mxu0 %v1397_v25  ;;  %v1092_v27 = vld [vmem:[#allocation2 + $0x780] sm:$0xff]  ;;  %v1468_v25 = vunpack.c.h.s8.bf16 %v1028_v24 }
 0x1ea   :  { %1757 = vmatprep.subr.bf16.mxu1 %v1525_v34  ;;  %v1596_v34 = vunpack.c.h.s8.bf16 %v1092_v27 }
 0x1ec   :  { %1717 = vmatpush1.bf16.msra.mxu0 %v1396_v21  ;;  %v1021_v21 = vld [vmem:[#allocation2 + $0x548] sm:$0xff] }
 0x1ed   :  { %1758 = vmatpush1.bf16.msra.mxu1 %v1524_v0  ;;  %1718 = vmatprep.subr.bf16.mxu0 %v1389_v54  ;;  %v1085_v0 = vld [vmem:[#allocation2 + $0x748] sm:$0xff]  ;;  %v1460_v54 = vunpack.c.l.s8.bf16 %v1028_v24  ;;  %v1453_v55 = vunpack.c.h.s8.bf16 %v1021_v21  ;;  %v1445_v62 = vunpack.c.l.s8.bf16 %v1021_v21 }
 0x1ee   :  { %1759 = vmatprep.subr.bf16.mxu1 %v1517_v11  ;;  %v1588_v11 = vunpack.c.l.s8.bf16 %v1092_v27  ;;  %v1581_v57 = vunpack.c.h.s8.bf16 %v1085_v0  ;;  %v1573_v63 = vunpack.c.l.s8.bf16 %v1085_v0 }
 0x1f0   :  { %1719 = vmatpush1.bf16.msra.mxu0 %v1388_v41  ;;  %v1020_v41 = vld [vmem:[#allocation2 + $0x540] sm:$0xff] }
 0x1f1   :  { %1760 = vmatpush1.bf16.msra.mxu1 %v1516_v60  ;;  %1720 = vmatprep.subr.bf16.mxu0 %v1381_v61  ;;  %v1084_v60 = vld [vmem:[#allocation2 + $0x740] sm:$0xff]  ;;  %v1452_v61 = vunpack.c.h.s8.bf16 %v1020_v41 }
 0x1f2   :  { %1761 = vmatprep.subr.bf16.mxu1 %v1509_v30  ;;  %v1580_v30 = vunpack.c.h.s8.bf16 %v1084_v60 }
 0x1f4   :  { %1721 = vmatpush1.bf16.msra.mxu0 %v1380_v37  ;;  %v1013_v37 = vld [vmem:[#allocation2 + $0x508] sm:$0xff] }
 0x1f5   :  { %1762 = vmatpush1.bf16.msra.mxu1 %v1508_v5  ;;  %1722 = vmatprep.subr.bf16.mxu0 %v1373_v8  ;;  %v1077_v5 = vld [vmem:[#allocation2 + $0x708] sm:$0xff]  ;;  %v1444_v8 = vunpack.c.l.s8.bf16 %v1020_v41  ;;  %v1437_v16 = vunpack.c.h.s8.bf16 %v1013_v37  ;;  %v1429_v44 = vunpack.c.l.s8.bf16 %v1013_v37 }
 0x1f6   :  { %1763 = vmatprep.subr.bf16.mxu1 %v1501_v13  ;;  %v1572_v13 = vunpack.c.l.s8.bf16 %v1084_v60  ;;  %v1565_v18 = vunpack.c.h.s8.bf16 %v1077_v5  ;;  %v1557_v12 = vunpack.c.l.s8.bf16 %v1077_v5 }
 0x1f8   :  { %1723 = vmatpush1.bf16.msra.mxu0 %v1372_v35  ;;  %v1012_v35 = vld [vmem:[#allocation2 + $0x500] sm:$0xff] }
 0x1f9   :  { %1764 = vmatpush1.bf16.msra.mxu1 %v1500_v36  ;;  %1724 = vmatprep.subr.bf16.mxu0 %v1365_v40  ;;  %v1076_v36 = vld [vmem:[#allocation2 + $0x700] sm:$0xff]  ;;  %v1436_v40 = vunpack.c.h.s8.bf16 %v1012_v35 }
 0x1fa   :  { %1765 = vmatprep.subr.bf16.mxu1 %v1493_v48  ;;  %v1564_v48 = vunpack.c.h.s8.bf16 %v1076_v36 }
 0x1fc   :  { %1725 = vmatpush1.bf16.msra.mxu0 %v1364_v45  ;;  %v879_v45 = vld [vmem:[#allocation2 + $0xd8] sm:$0xff] }
 0x1fd   :  { %1766 = vmatpush1.bf16.msra.mxu1 %v1492_v10  ;;  %1726 = vmatprep.subr.bf16.mxu0 %v1485_v56  ;;  %v943_v10 = vld [vmem:[#allocation2 + $0x2d8] sm:$0xff]  ;;  %v1428_v56 = vunpack.c.l.s8.bf16 %v1012_v35  ;;  %v1167_v42 = vunpack.c.h.s8.bf16 %v879_v45 }
 0x1fe   :  { %1767 = vmatprep.subr.bf16.mxu1 %v1613_v39  ;;  %v1556_v39 = vunpack.c.l.s8.bf16 %v1076_v36  ;;  %v1295_v19 = vunpack.c.h.s8.bf16 %v943_v10 }
 0x200   :  { %1727 = vmatpush2.bf16.msra.mxu0 %v1484_v43  ;;  %v878_v43 = vld [vmem:[#allocation2 + $0xd0] sm:$0xff] }
 0x201   :  { %1768 = vmatpush2.bf16.msra.mxu1 %v1612_v47  ;;  %1728 = vmatprep.subr.bf16.mxu0 %v1477_v49  ;;  %v942_v47 = vld [vmem:[#allocation2 + $0x2d0] sm:$0xff]  ;;  %v4450_v49 = vpack.c.bf16 %v4411_v23, %v4411_v23  ;;  %v1166_v17 = vunpack.c.h.s8.bf16 %v878_v43  ;;  %v1158_v23 = vunpack.c.l.s8.bf16 %v878_v43 }
 0x202   :  { %1769 = vmatprep.subr.bf16.mxu1 %v1605_v9  ;;  %v4454_v9 = vpack.c.bf16 %v4417_v7, %v4417_v7  ;;  %v1294_v51 = vunpack.c.h.s8.bf16 %v942_v47  ;;  %v1286_v24 = vunpack.c.l.s8.bf16 %v942_v47 }
 0x204   :  { %1729 = vmatpush2.bf16.msra.mxu0 %v1476_v53  ;;  %v1159_v53 = vunpack.c.l.s8.bf16 %v879_v45 }
 0x205   :  { %1770 = vmatpush2.bf16.msra.mxu1 %v1604_v38  ;;  %1730 = vmatprep.subr.bf16.mxu0 %v1469_v22  ;;  %v1287_v38 = vunpack.c.l.s8.bf16 %v943_v10  ;;  %v871_v22 = vld [vmem:[#allocation2 + $0x98] sm:$0xff] }
 0x206   :  { %1771 = vmatprep.subr.bf16.mxu1 %v1597_v29  ;;  %v935_v29 = vld [vmem:[#allocation2 + $0x298] sm:$0xff]  ;;  %v1151_v7 = vunpack.c.h.s8.bf16 %v871_v22  ;;  %v1143_v21 = vunpack.c.l.s8.bf16 %v871_v22 }
 0x207   :  { %v1279_v27 = vunpack.c.h.s8.bf16 %v935_v29  ;;  %v1271_v0 = vunpack.c.l.s8.bf16 %v935_v29 }
 0x208   :  { %1731 = vmatpush2.bf16.msra.mxu0 %v1468_v25  ;;  %v870_v25 = vld [vmem:[#allocation2 + $0x90] sm:$0xff] }
 0x209   :  { %1772 = vmatpush2.bf16.msra.mxu1 %v1596_v34  ;;  %1732 = vmatprep.subr.bf16.mxu0 %v1461_v59  ;;  %v934_v34 = vld [vmem:[#allocation2 + $0x290] sm:$0xff]  ;;  %v1150_v59 = vunpack.c.h.s8.bf16 %v870_v25 }
 0x20a   :  { %1773 = vmatprep.subr.bf16.mxu1 %v1589_v6  ;;  %v1278_v6 = vunpack.c.h.s8.bf16 %v934_v34 }
 0x20c   :  { %1733 = vmatpush2.bf16.msra.mxu0 %v1460_v54  ;;  %v863_v54 = vld [vmem:[#allocation2 + $0x58] sm:$0xff] }
 0x20d   :  { %1774 = vmatpush2.bf16.msra.mxu1 %v1588_v11  ;;  %1734 = vmatprep.subr.bf16.mxu0 %v1453_v55  ;;  %v927_v11 = vld [vmem:[#allocation2 + $0x258] sm:$0xff]  ;;  %v1142_v55 = vunpack.c.l.s8.bf16 %v870_v25  ;;  %v1135_v41 = vunpack.c.h.s8.bf16 %v863_v54  ;;  %v1127_v37 = vunpack.c.l.s8.bf16 %v863_v54 }
 0x20e   :  { %1775 = vmatprep.subr.bf16.mxu1 %v1581_v57  ;;  %v1270_v57 = vunpack.c.l.s8.bf16 %v934_v34  ;;  %v1263_v60 = vunpack.c.h.s8.bf16 %v927_v11  ;;  %v1255_v5 = vunpack.c.l.s8.bf16 %v927_v11 }
 0x210   :  { %1735 = vmatpush2.bf16.msra.mxu0 %v1452_v61  ;;  %v862_v61 = vld [vmem:[#allocation2 + $0x50] sm:$0xff] }
 0x211   :  { %1776 = vmatpush2.bf16.msra.mxu1 %v1580_v30  ;;  %1736 = vmatprep.subr.bf16.mxu0 %v1445_v62  ;;  %v926_v30 = vld [vmem:[#allocation2 + $0x250] sm:$0xff]  ;;  %v1134_v62 = vunpack.c.h.s8.bf16 %v862_v61 }
 0x212   :  { %1777 = vmatprep.subr.bf16.mxu1 %v1573_v63  ;;  %v1262_v63 = vunpack.c.h.s8.bf16 %v926_v30 }
 0x214   :  { %1737 = vmatpush2.bf16.msra.mxu0 %v1444_v8  ;;  %v855_v8 = vld [vmem:[#allocation2 + $0x18] sm:$0xff] }
 0x215   :  { %1778 = vmatpush2.bf16.msra.mxu1 %v1572_v13  ;;  %1738 = vmatprep.subr.bf16.mxu0 %v1437_v16  ;;  %v919_v13 = vld [vmem:[#allocation2 + $0x218] sm:$0xff]  ;;  %v1126_v16 = vunpack.c.l.s8.bf16 %v862_v61  ;;  %v1119_v35 = vunpack.c.h.s8.bf16 %v855_v8  ;;  %v1111_v45 = vunpack.c.l.s8.bf16 %v855_v8 }
 0x216   :  { %1779 = vmatprep.subr.bf16.mxu1 %v1565_v18  ;;  %v1254_v18 = vunpack.c.l.s8.bf16 %v926_v30  ;;  %v1247_v36 = vunpack.c.h.s8.bf16 %v919_v13  ;;  %v1239_v10 = vunpack.c.l.s8.bf16 %v919_v13 }
 0x218   :  { %1739 = vmatpush2.bf16.msra.mxu0 %v1436_v40  ;;  %v854_v40 = vld [vmem:[#allocation2 + $0x10] sm:$0xff] }
 0x219   :  { %1780 = vmatpush2.bf16.msra.mxu1 %v1564_v48  ;;  %1740 = vmatprep.subr.bf16.mxu0 %v1429_v44  ;;  %v918_v48 = vld [vmem:[#allocation2 + $0x210] sm:$0xff]  ;;  %v1118_v44 = vunpack.c.h.s8.bf16 %v854_v40 }
 0x21a   :  { %1781 = vmatprep.subr.bf16.mxu1 %v1557_v12  ;;  %v1246_v12 = vunpack.c.h.s8.bf16 %v918_v48 }
 0x21c   :  { %1741 = vmatpush2.bf16.msra.mxu0 %v1428_v56  ;;  %v911_v56 = vld [vmem:[#allocation2 + $0x1d8] sm:$0xff] }
 0x21d   :  { %1782 = vmatpush2.bf16.msra.mxu1 %v1556_v39  ;;  %1792 = vmatprep.subr.bf16.mxu0 %v1167_v42  ;;  %v975_v39 = vld [vmem:[#allocation2 + $0x3d8] sm:$0xff]  ;;  %v1110_v42 = vunpack.c.l.s8.bf16 %v854_v40  ;;  %v1231_v43 = vunpack.c.h.s8.bf16 %v911_v56  ;;  %v1223_v22 = vunpack.c.l.s8.bf16 %v911_v56 }
 0x21e   :  { %1833 = vmatprep.subr.bf16.mxu1 %v1295_v19  ;;  %v1238_v19 = vunpack.c.l.s8.bf16 %v918_v48  ;;  %v1359_v47 = vunpack.c.h.s8.bf16 %v975_v39  ;;  %v1351_v29 = vunpack.c.l.s8.bf16 %v975_v39 }
 0x21f   :  { %1743 = vmatmul.mubr.bf16.vlgmr.msra.gmra.mxu0 %v4450_v49 }
 0x220   :  { %1784 = vmatmul.mubr.bf16.vlgmr.msra.gmra.mxu1 %v4454_v9  ;;  %1793 = vmatpush1.bf16.msra.mxu0 %v1166_v17  ;;  %v910_v17 = vld [vmem:[#allocation2 + $0x1d0] sm:$0xff] }
 0x221   :  { %1834 = vmatpush1.bf16.msra.mxu1 %v1294_v51  ;;  %1794 = vmatprep.subr.bf16.mxu0 %v1159_v53  ;;  %v974_v51 = vld [vmem:[#allocation2 + $0x3d0] sm:$0xff]  ;;  %v1230_v53 = vunpack.c.h.s8.bf16 %v910_v17 }
 0x222   :  { %1835 = vmatprep.subr.bf16.mxu1 %v1287_v38  ;;  %1824 = vmatprep.mubr.bf16.mxu0 %v4422_v28  ;;  %v1358_v38 = vunpack.c.h.s8.bf16 %v974_v51 }
 0x223   :  { %1865 = vmatprep.mubr.bf16.mxu1 %v4424_v31 }
 0x224   :  { %1795 = vmatpush1.bf16.msra.mxu0 %v1158_v23  ;;  %v903_v23 = vld [vmem:[#allocation2 + $0x198] sm:$0xff] }
 0x225   :  { %1836 = vmatpush1.bf16.msra.mxu1 %v1286_v24  ;;  %1796 = vmatprep.subr.bf16.mxu0 %v1151_v7  ;;  %v967_v24 = vld [vmem:[#allocation2 + $0x398] sm:$0xff]  ;;  %v1222_v7 = vunpack.c.l.s8.bf16 %v910_v17  ;;  %v1215_v25 = vunpack.c.h.s8.bf16 %v903_v23  ;;  %v1207_v54 = vunpack.c.l.s8.bf16 %v903_v23 }
 0x226   :  { %1837 = vmatprep.subr.bf16.mxu1 %v1279_v27  ;;  %v1350_v27 = vunpack.c.l.s8.bf16 %v974_v51  ;;  %v1343_v34 = vunpack.c.h.s8.bf16 %v967_v24  ;;  %v1335_v11 = vunpack.c.l.s8.bf16 %v967_v24 }
 0x228   :  { %1797 = vmatpush1.bf16.msra.mxu0 %v1150_v59  ;;  %v902_v59 = vld [vmem:[#allocation2 + $0x190] sm:$0xff] }
 0x229   :  { %1838 = vmatpush1.bf16.msra.mxu1 %v1278_v6  ;;  %1798 = vmatprep.subr.bf16.mxu0 %v1143_v21  ;;  %v966_v6 = vld [vmem:[#allocation2 + $0x390] sm:$0xff]  ;;  %v1214_v21 = vunpack.c.h.s8.bf16 %v902_v59 }
 0x22a   :  { %1839 = vmatprep.subr.bf16.mxu1 %v1271_v0  ;;  %v1342_v0 = vunpack.c.h.s8.bf16 %v966_v6 }
 0x22c   :  { %1799 = vmatpush1.bf16.msra.mxu0 %v1142_v55  ;;  %v895_v55 = vld [vmem:[#allocation2 + $0x158] sm:$0xff] }
 0x22d   :  { %1840 = vmatpush1.bf16.msra.mxu1 %v1270_v57  ;;  %1800 = vmatprep.subr.bf16.mxu0 %v1135_v41  ;;  %v959_v57 = vld [vmem:[#allocation2 + $0x358] sm:$0xff]  ;;  %v1206_v41 = vunpack.c.l.s8.bf16 %v902_v59  ;;  %v1199_v61 = vunpack.c.h.s8.bf16 %v895_v55  ;;  %v1191_v8 = vunpack.c.l.s8.bf16 %v895_v55 }
 0x22e   :  { %1841 = vmatprep.subr.bf16.mxu1 %v1263_v60  ;;  %v1334_v60 = vunpack.c.l.s8.bf16 %v966_v6  ;;  %v1327_v30 = vunpack.c.h.s8.bf16 %v959_v57  ;;  %v1319_v13 = vunpack.c.l.s8.bf16 %v959_v57 }
 0x230   :  { %1801 = vmatpush1.bf16.msra.mxu0 %v1134_v62  ;;  %v894_v62 = vld [vmem:[#allocation2 + $0x150] sm:$0xff] }
 0x231   :  { %1842 = vmatpush1.bf16.msra.mxu1 %v1262_v63  ;;  %1802 = vmatprep.subr.bf16.mxu0 %v1127_v37  ;;  %v958_v63 = vld [vmem:[#allocation2 + $0x350] sm:$0xff]  ;;  %v1198_v37 = vunpack.c.h.s8.bf16 %v894_v62 }
 0x232   :  { %1843 = vmatprep.subr.bf16.mxu1 %v1255_v5  ;;  %v1326_v5 = vunpack.c.h.s8.bf16 %v958_v63 }
 0x234   :  { %1803 = vmatpush1.bf16.msra.mxu0 %v1126_v16  ;;  %v887_v16 = vld [vmem:[#allocation2 + $0x118] sm:$0xff] }
 0x235   :  { %1844 = vmatpush1.bf16.msra.mxu1 %v1254_v18  ;;  %1804 = vmatprep.subr.bf16.mxu0 %v1119_v35  ;;  %v951_v18 = vld [vmem:[#allocation2 + $0x318] sm:$0xff]  ;;  %v1190_v35 = vunpack.c.l.s8.bf16 %v894_v62  ;;  %v1183_v40 = vunpack.c.h.s8.bf16 %v887_v16  ;;  %v1175_v56 = vunpack.c.l.s8.bf16 %v887_v16 }
 0x236   :  { %1845 = vmatprep.subr.bf16.mxu1 %v1247_v36  ;;  %v1318_v36 = vunpack.c.l.s8.bf16 %v958_v63  ;;  %v1311_v48 = vunpack.c.h.s8.bf16 %v951_v18  ;;  %v1303_v39 = vunpack.c.l.s8.bf16 %v951_v18 }
 0x238   :  { %1805 = vmatpush1.bf16.msra.mxu0 %v1118_v44  ;;  %v886_v44 = vld [vmem:[#allocation2 + $0x110] sm:$0xff] }
 0x239   :  { %1846 = vmatpush1.bf16.msra.mxu1 %v1246_v12  ;;  %1806 = vmatprep.subr.bf16.mxu0 %v1111_v45  ;;  %v950_v12 = vld [vmem:[#allocation2 + $0x310] sm:$0xff]  ;;  %v1182_v45 = vunpack.c.h.s8.bf16 %v886_v44 }
 0x23a   :  { %1847 = vmatprep.subr.bf16.mxu1 %v1239_v10  ;;  %v1310_v10 = vunpack.c.h.s8.bf16 %v950_v12 }
 0x23c   :  { %1807 = vmatpush1.bf16.msra.mxu0 %v1110_v42  ;;  %v1007_v42 = vld [vmem:[#allocation2 + $0x4d8] sm:$0xff] }
 0x23d   :  { %1848 = vmatpush1.bf16.msra.mxu1 %v1238_v19  ;;  %1808 = vmatprep.subr.bf16.mxu0 %v1231_v43  ;;  %v1071_v19 = vld [vmem:[#allocation2 + $0x6d8] sm:$0xff]  ;;  %v1174_v43 = vunpack.c.l.s8.bf16 %v886_v44  ;;  %v1423_v17 = vunpack.c.h.s8.bf16 %v1007_v42  ;;  %v1415_v23 = vunpack.c.l.s8.bf16 %v1007_v42 }
 0x23e   :  { %1849 = vmatprep.subr.bf16.mxu1 %v1359_v47  ;;  %v1302_v47 = vunpack.c.l.s8.bf16 %v950_v12  ;;  %v1551_v51 = vunpack.c.h.s8.bf16 %v1071_v19  ;;  %v1543_v24 = vunpack.c.l.s8.bf16 %v1071_v19 }
 0x240   :  { %1809 = vmatpush2.bf16.msra.mxu0 %v1230_v53  ;;  %v1006_v53 = vld [vmem:[#allocation2 + $0x4d0] sm:$0xff] }
 0x241   :  { %1850 = vmatpush2.bf16.msra.mxu1 %v1358_v38  ;;  %1810 = vmatprep.subr.bf16.mxu0 %v1223_v22  ;;  %v1070_v38 = vld [vmem:[#allocation2 + $0x6d0] sm:$0xff]  ;;  %v1422_v22 = vunpack.c.h.s8.bf16 %v1006_v53 }
 0x242   :  { %1851 = vmatprep.subr.bf16.mxu1 %v1351_v29  ;;  %v1550_v29 = vunpack.c.h.s8.bf16 %v1070_v38 }
 0x244   :  { %1811 = vmatpush2.bf16.msra.mxu0 %v1222_v7  ;;  %v999_v7 = vld [vmem:[#allocation2 + $0x498] sm:$0xff] }
 0x245   :  { %1852 = vmatpush2.bf16.msra.mxu1 %v1350_v27  ;;  %1812 = vmatprep.subr.bf16.mxu0 %v1215_v25  ;;  %v1063_v27 = vld [vmem:[#allocation2 + $0x698] sm:$0xff]  ;;  %v1414_v25 = vunpack.c.l.s8.bf16 %v1006_v53  ;;  %v1407_v59 = vunpack.c.h.s8.bf16 %v999_v7  ;;  %v1399_v55 = vunpack.c.l.s8.bf16 %v999_v7 }
 0x246   :  { %1853 = vmatprep.subr.bf16.mxu1 %v1343_v34  ;;  %v1542_v34 = vunpack.c.l.s8.bf16 %v1070_v38  ;;  %v1535_v6 = vunpack.c.h.s8.bf16 %v1063_v27  ;;  %v1527_v57 = vunpack.c.l.s8.bf16 %v1063_v27 }
 0x248   :  { %1813 = vmatpush2.bf16.msra.mxu0 %v1214_v21  ;;  %v998_v21 = vld [vmem:[#allocation2 + $0x490] sm:$0xff] }
 0x249   :  { %1854 = vmatpush2.bf16.msra.mxu1 %v1342_v0  ;;  %1814 = vmatprep.subr.bf16.mxu0 %v1207_v54  ;;  %v1062_v0 = vld [vmem:[#allocation2 + $0x690] sm:$0xff]  ;;  %v1406_v54 = vunpack.c.h.s8.bf16 %v998_v21 }
 0x24a   :  { %1855 = vmatprep.subr.bf16.mxu1 %v1335_v11  ;;  %v1534_v11 = vunpack.c.h.s8.bf16 %v1062_v0 }
 0x24c   :  { %1815 = vmatpush2.bf16.msra.mxu0 %v1206_v41  ;;  %v991_v41 = vld [vmem:[#allocation2 + $0x458] sm:$0xff] }
 0x24d   :  { %1856 = vmatpush2.bf16.msra.mxu1 %v1334_v60  ;;  %1816 = vmatprep.subr.bf16.mxu0 %v1199_v61  ;;  %v1055_v60 = vld [vmem:[#allocation2 + $0x658] sm:$0xff]  ;;  %v1398_v61 = vunpack.c.l.s8.bf16 %v998_v21  ;;  %v1391_v62 = vunpack.c.h.s8.bf16 %v991_v41  ;;  %v1383_v16 = vunpack.c.l.s8.bf16 %v991_v41 }
 0x24e   :  { %1857 = vmatprep.subr.bf16.mxu1 %v1327_v30  ;;  %v1526_v30 = vunpack.c.l.s8.bf16 %v1062_v0  ;;  %v1519_v63 = vunpack.c.h.s8.bf16 %v1055_v60  ;;  %v1511_v18 = vunpack.c.l.s8.bf16 %v1055_v60 }
 0x250   :  { %1817 = vmatpush2.bf16.msra.mxu0 %v1198_v37  ;;  %v990_v37 = vld [vmem:[#allocation2 + $0x450] sm:$0xff] }
 0x251   :  { %1858 = vmatpush2.bf16.msra.mxu1 %v1326_v5  ;;  %1818 = vmatprep.subr.bf16.mxu0 %v1191_v8  ;;  %v1054_v5 = vld [vmem:[#allocation2 + $0x650] sm:$0xff]  ;;  %v1390_v8 = vunpack.c.h.s8.bf16 %v990_v37 }
 0x252   :  { %1859 = vmatprep.subr.bf16.mxu1 %v1319_v13  ;;  %v1518_v13 = vunpack.c.h.s8.bf16 %v1054_v5 }
 0x254   :  { %1819 = vmatpush2.bf16.msra.mxu0 %v1190_v35  ;;  %v983_v35 = vld [vmem:[#allocation2 + $0x418] sm:$0xff] }
 0x255   :  { %1860 = vmatpush2.bf16.msra.mxu1 %v1318_v36  ;;  %1820 = vmatprep.subr.bf16.mxu0 %v1183_v40  ;;  %v1047_v36 = vld [vmem:[#allocation2 + $0x618] sm:$0xff]  ;;  %v1382_v40 = vunpack.c.l.s8.bf16 %v990_v37  ;;  %v1375_v44 = vunpack.c.h.s8.bf16 %v983_v35  ;;  %v1367_v42 = vunpack.c.l.s8.bf16 %v983_v35 }
 0x256   :  { %1861 = vmatprep.subr.bf16.mxu1 %v1311_v48  ;;  %v1510_v48 = vunpack.c.l.s8.bf16 %v1054_v5  ;;  %v1503_v12 = vunpack.c.h.s8.bf16 %v1047_v36  ;;  %v1495_v19 = vunpack.c.l.s8.bf16 %v1047_v36 }
 0x258   :  { %1821 = vmatpush2.bf16.msra.mxu0 %v1182_v45  ;;  %v982_v45 = vld [vmem:[#allocation2 + $0x410] sm:$0xff] }
 0x259   :  { %1862 = vmatpush2.bf16.msra.mxu1 %v1310_v10  ;;  %1822 = vmatprep.subr.bf16.mxu0 %v1175_v56  ;;  %v1046_v10 = vld [vmem:[#allocation2 + $0x610] sm:$0xff]  ;;  %v1374_v56 = vunpack.c.h.s8.bf16 %v982_v45 }
 0x25a   :  { %1863 = vmatprep.subr.bf16.mxu1 %v1303_v39  ;;  %v1502_v39 = vunpack.c.h.s8.bf16 %v1046_v10 }
 0x25c   :  { %1823 = vmatpush2.bf16.msra.mxu0 %v1174_v43  ;;  %v1039_v43 = vld [vmem:[#allocation2 + $0x5d8] sm:$0xff] }
 0x25d   :  { %1864 = vmatpush2.bf16.msra.mxu1 %v1302_v47  ;;  %1874 = vmatprep.subr.bf16.mxu0 %v1423_v17  ;;  %v1103_v47 = vld [vmem:[#allocation2 + $0x7d8] sm:$0xff]  ;;  %v1366_v17 = vunpack.c.l.s8.bf16 %v982_v45  ;;  %v1487_v53 = vunpack.c.h.s8.bf16 %v1039_v43  ;;  %v1479_v7 = vunpack.c.l.s8.bf16 %v1039_v43 }
 0x25e   :  { %1915 = vmatprep.subr.bf16.mxu1 %v1551_v51  ;;  %v1494_v51 = vunpack.c.l.s8.bf16 %v1046_v10  ;;  %v1615_v38 = vunpack.c.h.s8.bf16 %v1103_v47  ;;  %v1607_v27 = vunpack.c.l.s8.bf16 %v1103_v47 }
 0x25f   :  { %1825 = vmatmul.mubr.bf16.vlgmr.msra.gmra.mxu0 %v4430_v52 }
 0x260   :  { %1866 = vmatmul.mubr.bf16.vlgmr.msra.gmra.mxu1 %v4434_v4  ;;  %1875 = vmatpush1.bf16.msra.mxu0 %v1422_v22  ;;  %v1038_v22 = vld [vmem:[#allocation2 + $0x5d0] sm:$0xff] }
 0x261   :  { %1916 = vmatpush1.bf16.msra.mxu1 %v1550_v29  ;;  %1876 = vmatprep.subr.bf16.mxu0 %v1415_v23  ;;  %v1102_v29 = vld [vmem:[#allocation2 + $0x7d0] sm:$0xff]  ;;  %v1486_v23 = vunpack.c.h.s8.bf16 %v1038_v22 }
 0x262   :  { %1917 = vmatprep.subr.bf16.mxu1 %v1543_v24  ;;  %1906 = vmatprep.mubr.bf16.mxu0 %v4438_v50  ;;  %v1614_v24 = vunpack.c.h.s8.bf16 %v1102_v29 }
 0x263   :  { %1947 = vmatprep.mubr.bf16.mxu1 %v4442_v14 }
 0x264   :  { %1877 = vmatpush1.bf16.msra.mxu0 %v1414_v25  ;;  %v1031_v25 = vld [vmem:[#allocation2 + $0x598] sm:$0xff] }
 0x265   :  { %1918 = vmatpush1.bf16.msra.mxu1 %v1542_v34  ;;  %1878 = vmatprep.subr.bf16.mxu0 %v1407_v59  ;;  %v1095_v34 = vld [vmem:[#allocation2 + $0x798] sm:$0xff]  ;;  %v1478_v59 = vunpack.c.l.s8.bf16 %v1038_v22  ;;  %v1471_v21 = vunpack.c.h.s8.bf16 %v1031_v25  ;;  %v1463_v41 = vunpack.c.l.s8.bf16 %v1031_v25 }
 0x266   :  { %1919 = vmatprep.subr.bf16.mxu1 %v1535_v6  ;;  %v1606_v6 = vunpack.c.l.s8.bf16 %v1102_v29  ;;  %v1599_v0 = vunpack.c.h.s8.bf16 %v1095_v34  ;;  %v1591_v60 = vunpack.c.l.s8.bf16 %v1095_v34 }
 0x268   :  { %1879 = vmatpush1.bf16.msra.mxu0 %v1406_v54  ;;  %v1030_v54 = vld [vmem:[#allocation2 + $0x590] sm:$0xff] }
 0x269   :  { %1920 = vmatpush1.bf16.msra.mxu1 %v1534_v11  ;;  %1880 = vmatprep.subr.bf16.mxu0 %v1399_v55  ;;  %v1094_v11 = vld [vmem:[#allocation2 + $0x790] sm:$0xff]  ;;  %v1470_v55 = vunpack.c.h.s8.bf16 %v1030_v54 }
 0x26a   :  { %1921 = vmatprep.subr.bf16.mxu1 %v1527_v57  ;;  %v1598_v57 = vunpack.c.h.s8.bf16 %v1094_v11 }
 0x26c   :  { %1881 = vmatpush1.bf16.msra.mxu0 %v1398_v61  ;;  %v1023_v61 = vld [vmem:[#allocation2 + $0x558] sm:$0xff] }
 0x26d   :  { %1922 = vmatpush1.bf16.msra.mxu1 %v1526_v30  ;;  %1882 = vmatprep.subr.bf16.mxu0 %v1391_v62  ;;  %v1087_v30 = vld [vmem:[#allocation2 + $0x758] sm:$0xff]  ;;  %v1462_v62 = vunpack.c.l.s8.bf16 %v1030_v54  ;;  %v1455_v37 = vunpack.c.h.s8.bf16 %v1023_v61  ;;  %v1447_v35 = vunpack.c.l.s8.bf16 %v1023_v61 }
 0x26e   :  { %1923 = vmatprep.subr.bf16.mxu1 %v1519_v63  ;;  %v1590_v63 = vunpack.c.l.s8.bf16 %v1094_v11  ;;  %v1583_v5 = vunpack.c.h.s8.bf16 %v1087_v30  ;;  %v1575_v36 = vunpack.c.l.s8.bf16 %v1087_v30  ;;  %v872_v30 = vld [vmem:[#allocation2 + $0xa0] sm:$0xff] }
 0x270   :  { %1883 = vmatpush1.bf16.msra.mxu0 %v1390_v8  ;;  %v1022_v8 = vld [vmem:[#allocation2 + $0x550] sm:$0xff] }
 0x271   :  { %1924 = vmatpush1.bf16.msra.mxu1 %v1518_v13  ;;  %1884 = vmatprep.subr.bf16.mxu0 %v1383_v16  ;;  %v1086_v13 = vld [vmem:[#allocation2 + $0x750] sm:$0xff]  ;;  %v1454_v16 = vunpack.c.h.s8.bf16 %v1022_v8 }
 0x272   :  { %1925 = vmatprep.subr.bf16.mxu1 %v1511_v18  ;;  %v1582_v18 = vunpack.c.h.s8.bf16 %v1086_v13 }
 0x274   :  { %1885 = vmatpush1.bf16.msra.mxu0 %v1382_v40  ;;  %v1015_v40 = vld [vmem:[#allocation2 + $0x518] sm:$0xff] }
 0x275   :  { %1926 = vmatpush1.bf16.msra.mxu1 %v1510_v48  ;;  %1886 = vmatprep.subr.bf16.mxu0 %v1375_v44  ;;  %v1079_v48 = vld [vmem:[#allocation2 + $0x718] sm:$0xff]  ;;  %v1446_v44 = vunpack.c.l.s8.bf16 %v1022_v8  ;;  %v1439_v45 = vunpack.c.h.s8.bf16 %v1015_v40  ;;  %v1431_v43 = vunpack.c.l.s8.bf16 %v1015_v40  ;;  %v1152_v8 = vunpack.c.h.s8.bf16 %v872_v30  ;;  %v865_v40 = vld [vmem:[#allocation2 + $0x68] sm:$0xff] }
 0x276   :  { %1927 = vmatprep.subr.bf16.mxu1 %v1503_v12  ;;  %v1574_v12 = vunpack.c.l.s8.bf16 %v1086_v13  ;;  %v1567_v10 = vunpack.c.h.s8.bf16 %v1079_v48  ;;  %v1559_v47 = vunpack.c.l.s8.bf16 %v1079_v48  ;;  %v929_v48 = vld [vmem:[#allocation2 + $0x268] sm:$0xff] }
 0x278   :  { %1887 = vmatpush1.bf16.msra.mxu0 %v1374_v56  ;;  %v1014_v56 = vld [vmem:[#allocation2 + $0x510] sm:$0xff] }
 0x279   :  { %1928 = vmatpush1.bf16.msra.mxu1 %v1502_v39  ;;  %1888 = vmatprep.subr.bf16.mxu0 %v1367_v42  ;;  %v1078_v39 = vld [vmem:[#allocation2 + $0x710] sm:$0xff]  ;;  %v1438_v42 = vunpack.c.h.s8.bf16 %v1014_v56 }
 0x27a   :  { %1929 = vmatprep.subr.bf16.mxu1 %v1495_v19  ;;  %v1566_v19 = vunpack.c.h.s8.bf16 %v1078_v39 }
 0x27c   :  { %1889 = vmatpush1.bf16.msra.mxu0 %v1366_v17  ;;  %v881_v17 = vld [vmem:[#allocation2 + $0xe8] sm:$0xff] }
 0x27d   :  { %1930 = vmatpush1.bf16.msra.mxu1 %v1494_v51  ;;  %1890 = vmatprep.subr.bf16.mxu0 %v1487_v53  ;;  %v945_v51 = vld [vmem:[#allocation2 + $0x2e8] sm:$0xff]  ;;  %v1430_v53 = vunpack.c.l.s8.bf16 %v1014_v56  ;;  %v1169_v22 = vunpack.c.h.s8.bf16 %v881_v17  ;;  %v1161_v25 = vunpack.c.l.s8.bf16 %v881_v17  ;;  %v864_v56 = vld [vmem:[#allocation2 + $0x60] sm:$0xff] }
 0x27e   :  { %1931 = vmatprep.subr.bf16.mxu1 %v1615_v38  ;;  %v1558_v38 = vunpack.c.l.s8.bf16 %v1078_v39  ;;  %v1297_v29 = vunpack.c.h.s8.bf16 %v945_v51  ;;  %v1289_v34 = vunpack.c.l.s8.bf16 %v945_v51  ;;  %v928_v39 = vld [vmem:[#allocation2 + $0x260] sm:$0xff]  ;;  %v857_v17 = vld [vmem:[#allocation2 + $0x28] sm:$0xff] }
 0x27f   :  { %v921_v51 = vld [vmem:[#allocation2 + $0x228] sm:$0xff] }
 0x280   :  { %1891 = vmatpush2.bf16.msra.mxu0 %v1486_v23  ;;  %v880_v23 = vld [vmem:[#allocation2 + $0xe0] sm:$0xff] }
 0x281   :  { %1932 = vmatpush2.bf16.msra.mxu1 %v1614_v24  ;;  %1892 = vmatprep.subr.bf16.mxu0 %v1479_v7  ;;  %v944_v24 = vld [vmem:[#allocation2 + $0x2e0] sm:$0xff]  ;;  %v1168_v7 = vunpack.c.h.s8.bf16 %v880_v23  ;;  %v1160_v11 = vunpack.c.l.s8.bf16 %v880_v23 }
 0x282   :  { %1933 = vmatprep.subr.bf16.mxu1 %v1607_v27  ;;  %v1296_v27 = vunpack.c.h.s8.bf16 %v944_v24  ;;  %v856_v23 = vld [vmem:[#allocation2 + $0x20] sm:$0xff] }
 0x284   :  { %1893 = vmatpush2.bf16.msra.mxu0 %v1478_v59  ;;  %v873_v59 = vld [vmem:[#allocation2 + $0xa8] sm:$0xff] }
 0x285   :  { %1934 = vmatpush2.bf16.msra.mxu1 %v1606_v6  ;;  %1894 = vmatprep.subr.bf16.mxu0 %v1471_v21  ;;  %v937_v6 = vld [vmem:[#allocation2 + $0x2a8] sm:$0xff] }
 0x286   :  { %1935 = vmatprep.subr.bf16.mxu1 %v1599_v0  ;;  %v1281_v61 = vunpack.c.h.s8.bf16 %v937_v6 }
 0x288   :  { %1895 = vmatpush2.bf16.msra.mxu0 %v1470_v55  ;;  %v1288_v55 = vunpack.c.l.s8.bf16 %v944_v24  ;;  %v920_v24 = vld [vmem:[#allocation2 + $0x220] sm:$0xff] }
 0x289   :  { %1936 = vmatpush2.bf16.msra.mxu1 %v1598_v57  ;;  %1896 = vmatprep.subr.bf16.mxu0 %v1463_v41 }
 0x28a   :  { %1937 = vmatprep.subr.bf16.mxu1 %v1591_v60  ;;  %v1153_v60 = vunpack.c.h.s8.bf16 %v873_v59 }
 0x28c   :  { %1897 = vmatpush2.bf16.msra.mxu0 %v1462_v62  ;;  %v936_v62 = vld [vmem:[#allocation2 + $0x2a0] sm:$0xff] }
 0x28d   :  { %1938 = vmatpush2.bf16.msra.mxu1 %v1590_v63  ;;  %1898 = vmatprep.subr.bf16.mxu0 %v1455_v37  ;;  %v1280_v13 = vunpack.c.h.s8.bf16 %v936_v62 }
 0x28e   :  { %1939 = vmatprep.subr.bf16.mxu1 %v1583_v5 }
 0x290   :  { %1899 = vmatpush2.bf16.msra.mxu0 %v1454_v16 }
 0x291   :  { %1940 = vmatpush2.bf16.msra.mxu1 %v1582_v18  ;;  %1900 = vmatprep.subr.bf16.mxu0 %v1447_v35  ;;  %v1145_v35 = vunpack.c.l.s8.bf16 %v873_v59  ;;  %v913_v59 = vld [vmem:[#allocation2 + $0x1e8] sm:$0xff] }
 0x292   :  { %1941 = vmatprep.subr.bf16.mxu1 %v1575_v36  ;;  %v1273_v36 = vunpack.c.l.s8.bf16 %v937_v6  ;;  %v977_v6 = vld [vmem:[#allocation2 + $0x3e8] sm:$0xff] }
 0x294   :  { %1901 = vmatpush2.bf16.msra.mxu0 %v1446_v44  ;;  %v1144_v44 = vunpack.c.l.s8.bf16 %v872_v30  ;;  %v1225_v30 = vunpack.c.l.s8.bf16 %v913_v59 }
 0x295   :  { %1942 = vmatpush2.bf16.msra.mxu1 %v1574_v12  ;;  %1902 = vmatprep.subr.bf16.mxu0 %v1439_v45  ;;  %v1272_v12 = vunpack.c.l.s8.bf16 %v936_v62  ;;  %v1137_v45 = vunpack.c.h.s8.bf16 %v865_v40  ;;  %v1353_v62 = vunpack.c.l.s8.bf16 %v977_v6 }
 0x296   :  { %1943 = vmatprep.subr.bf16.mxu1 %v1567_v10  ;;  %v1265_v10 = vunpack.c.h.s8.bf16 %v929_v48 }
 0x298   :  { %1903 = vmatpush2.bf16.msra.mxu0 %v1438_v42  ;;  %v1136_v42 = vunpack.c.h.s8.bf16 %v864_v56 }
 0x299   :  { %1944 = vmatpush2.bf16.msra.mxu1 %v1566_v19  ;;  %1904 = vmatprep.subr.bf16.mxu0 %v1431_v43  ;;  %v1264_v19 = vunpack.c.h.s8.bf16 %v928_v39  ;;  %v1129_v43 = vunpack.c.l.s8.bf16 %v865_v40 }
 0x29a   :  { %1945 = vmatprep.subr.bf16.mxu1 %v1559_v47  ;;  %v1257_v47 = vunpack.c.l.s8.bf16 %v929_v48 }
 0x29c   :  { %1905 = vmatpush2.bf16.msra.mxu0 %v1430_v53  ;;  %v1128_v53 = vunpack.c.l.s8.bf16 %v864_v56 }
 0x29d   :  { %1946 = vmatpush2.bf16.msra.mxu1 %v1558_v38  ;;  %1956 = vmatprep.subr.bf16.mxu0 %v1169_v22  ;;  %v1256_v38 = vunpack.c.l.s8.bf16 %v928_v39  ;;  %v1121_v22 = vunpack.c.h.s8.bf16 %v857_v17 }
 0x29e   :  { %1997 = vmatprep.subr.bf16.mxu1 %v1297_v29  ;;  %v1249_v29 = vunpack.c.h.s8.bf16 %v921_v51 }
 0x29f   :  { %v1662_v21 = vpop.f32.mrf.mxu0  ;;  %1907 = vmatmul.mubr.bf16.vlgmr.msra.gmra.mxu0 %v4450_v49 }
 0x2a0   :  { %v1703_v0 = vpop.f32.mrf.mxu1  ;;  %1948 = vmatmul.mubr.bf16.vlgmr.msra.gmra.mxu1 %v4454_v9  ;;  %1957 = vmatpush1.bf16.msra.mxu0 %v1168_v7  ;;  %v1120_v7 = vunpack.c.h.s8.bf16 %v856_v23 }
 0x2a1   :  { %v4466_v54 = vadd.f32 %v1703_v0, %v1662_v21  ;;  %1998 = vmatpush1.bf16.msra.mxu1 %v1296_v27  ;;  %v1664_v57 = vpop.f32.mrf.mxu0  ;;  %1958 = vmatprep.subr.bf16.mxu0 %v1161_v25  ;;  %v1248_v27 = vunpack.c.h.s8.bf16 %v920_v24  ;;  %v1113_v25 = vunpack.c.l.s8.bf16 %v857_v17  ;;  %v1112_v21 = vunpack.c.l.s8.bf16 %v856_v23 }
 0x2a2   :  { %v1705_v41 = vpop.f32.mrf.mxu1  ;;  %1999 = vmatprep.subr.bf16.mxu1 %v1289_v34  ;;  %1988 = vmatprep.mubr.bf16.mxu0 %v4422_v28  ;;  %v1241_v34 = vunpack.c.l.s8.bf16 %v921_v51  ;;  %v1240_v0 = vunpack.c.l.s8.bf16 %v920_v24 }
 0x2a3   :  { %v4468_v63 = vadd.f32 %v1705_v41, %v1664_v57  ;;  %2029 = vmatprep.mubr.bf16.mxu1 %v4424_v31  ;;  %v1666_v37 = vpop.f32.mrf.mxu0  ;;  %v912_v57 = vld [vmem:[#allocation2 + $0x1e0] sm:$0xff] }
 0x2a4   :  { %v1707_v5 = vpop.f32.mrf.mxu1  ;;  %1959 = vmatpush1.bf16.msra.mxu0 %v1160_v11  ;;  %v1233_v11 = vunpack.c.h.s8.bf16 %v913_v59  ;;  %v976_v41 = vld [vmem:[#allocation2 + $0x3e0] sm:$0xff]  ;;  %v905_v37 = vld [vmem:[#allocation2 + $0x1a8] sm:$0xff] }
 0x2a5   :  { %2000 = vmatpush1.bf16.msra.mxu1 %v1288_v55  ;;  %v1667_v16 = vpop.f32.mrf.mxu0  ;;  %1960 = vmatprep.subr.bf16.mxu0 %v1153_v60  ;;  %v1361_v55 = vunpack.c.h.s8.bf16 %v977_v6  ;;  %v1232_v60 = vunpack.c.h.s8.bf16 %v912_v57  ;;  %v969_v5 = vld [vmem:[#allocation2 + $0x3a8] sm:$0xff] }
 0x2a6   :  { %v1708_v18 = vpop.f32.mrf.mxu1  ;;  %2001 = vmatprep.subr.bf16.mxu1 %v1281_v61  ;;  %v1360_v61 = vunpack.c.h.s8.bf16 %v976_v41  ;;  %v1217_v16 = vunpack.c.h.s8.bf16 %v905_v37 }
 0x2a7   :  { %v1345_v18 = vunpack.c.h.s8.bf16 %v969_v5 }
 0x2a8   :  { %1961 = vmatpush1.bf16.msra.mxu0 %v1152_v8  ;;  %v1224_v8 = vunpack.c.l.s8.bf16 %v912_v57 }
 0x2a9   :  { %2002 = vmatpush1.bf16.msra.mxu1 %v1280_v13  ;;  %1962 = vmatprep.subr.bf16.mxu0 %v1145_v35  ;;  %v1352_v13 = vunpack.c.l.s8.bf16 %v976_v41  ;;  %v904_v35 = vld [vmem:[#allocation2 + $0x1a0] sm:$0xff] }
 0x2aa   :  { %2003 = vmatprep.subr.bf16.mxu1 %v1273_v36  ;;  %v968_v36 = vld [vmem:[#allocation2 + $0x3a0] sm:$0xff]  ;;  %v1216_v40 = vunpack.c.h.s8.bf16 %v904_v35  ;;  %v1208_v56 = vunpack.c.l.s8.bf16 %v904_v35 }
 0x2ab   :  { %v1344_v48 = vunpack.c.h.s8.bf16 %v968_v36  ;;  %v1336_v39 = vunpack.c.l.s8.bf16 %v968_v36 }
 0x2ac   :  { %1963 = vmatpush1.bf16.msra.mxu0 %v1144_v44  ;;  %v1209_v44 = vunpack.c.l.s8.bf16 %v905_v37 }
 0x2ad   :  { %2004 = vmatpush1.bf16.msra.mxu1 %v1272_v12  ;;  %1964 = vmatprep.subr.bf16.mxu0 %v1137_v45  ;;  %v1337_v12 = vunpack.c.l.s8.bf16 %v969_v5  ;;  %v897_v45 = vld [vmem:[#allocation2 + $0x168] sm:$0xff] }
 0x2ae   :  { %2005 = vmatprep.subr.bf16.mxu1 %v1265_v10  ;;  %v961_v10 = vld [vmem:[#allocation2 + $0x368] sm:$0xff] }
 0x2b0   :  { %1965 = vmatpush1.bf16.msra.mxu0 %v1136_v42  ;;  %v1201_v42 = vunpack.c.h.s8.bf16 %v897_v45 }
 0x2b1   :  { %2006 = vmatpush1.bf16.msra.mxu1 %v1264_v19  ;;  %1966 = vmatprep.subr.bf16.mxu0 %v1129_v43  ;;  %v1329_v19 = vunpack.c.h.s8.bf16 %v961_v10  ;;  %v896_v43 = vld [vmem:[#allocation2 + $0x160] sm:$0xff] }
 0x2b2   :  { %2007 = vmatprep.subr.bf16.mxu1 %v1257_v47  ;;  %v960_v47 = vld [vmem:[#allocation2 + $0x360] sm:$0xff]  ;;  %v1200_v17 = vunpack.c.h.s8.bf16 %v896_v43  ;;  %v1192_v23 = vunpack.c.l.s8.bf16 %v896_v43 }
 0x2b3   :  { %v1328_v51 = vunpack.c.h.s8.bf16 %v960_v47  ;;  %v1320_v24 = vunpack.c.l.s8.bf16 %v960_v47 }
 0x2b4   :  { %1967 = vmatpush1.bf16.msra.mxu0 %v1128_v53  ;;  %v1193_v53 = vunpack.c.l.s8.bf16 %v897_v45 }
 0x2b5   :  { %2008 = vmatpush1.bf16.msra.mxu1 %v1256_v38  ;;  %1968 = vmatprep.subr.bf16.mxu0 %v1121_v22  ;;  %v1321_v38 = vunpack.c.l.s8.bf16 %v961_v10  ;;  %v889_v22 = vld [vmem:[#allocation2 + $0x128] sm:$0xff] }
 0x2b6   :  { %2009 = vmatprep.subr.bf16.mxu1 %v1249_v29  ;;  %v953_v29 = vld [vmem:[#allocation2 + $0x328] sm:$0xff] }
 0x2b8   :  { %1969 = vmatpush1.bf16.msra.mxu0 %v1120_v7  ;;  %v1185_v7 = vunpack.c.h.s8.bf16 %v889_v22 }
 0x2b9   :  { %2010 = vmatpush1.bf16.msra.mxu1 %v1248_v27  ;;  %1970 = vmatprep.subr.bf16.mxu0 %v1113_v25  ;;  %v1313_v27 = vunpack.c.h.s8.bf16 %v953_v29  ;;  %v888_v25 = vld [vmem:[#allocation2 + $0x120] sm:$0xff] }
 0x2ba   :  { %2011 = vmatprep.subr.bf16.mxu1 %v1241_v34  ;;  %v952_v34 = vld [vmem:[#allocation2 + $0x320] sm:$0xff]  ;;  %v1184_v59 = vunpack.c.h.s8.bf16 %v888_v25  ;;  %v1176_v57 = vunpack.c.l.s8.bf16 %v888_v25 }
 0x2bb   :  { %v1312_v6 = vunpack.c.h.s8.bf16 %v952_v34  ;;  %v1304_v41 = vunpack.c.l.s8.bf16 %v952_v34 }
 0x2bc   :  { %1971 = vmatpush1.bf16.msra.mxu0 %v1112_v21  ;;  %v1177_v21 = vunpack.c.l.s8.bf16 %v889_v22 }
 0x2bd   :  { %2012 = vmatpush1.bf16.msra.mxu1 %v1240_v0  ;;  %1972 = vmatprep.subr.bf16.mxu0 %v1233_v11  ;;  %v1305_v0 = vunpack.c.l.s8.bf16 %v953_v29  ;;  %v1009_v11 = vld [vmem:[#allocation2 + $0x4e8] sm:$0xff] }
 0x2be   :  { %2013 = vmatprep.subr.bf16.mxu1 %v1361_v55  ;;  %v1073_v55 = vld [vmem:[#allocation2 + $0x6e8] sm:$0xff] }
 0x2c0   :  { %1973 = vmatpush2.bf16.msra.mxu0 %v1232_v60  ;;  %v1425_v60 = vunpack.c.h.s8.bf16 %v1009_v11 }
 0x2c1   :  { %2014 = vmatpush2.bf16.msra.mxu1 %v1360_v61  ;;  %1974 = vmatprep.subr.bf16.mxu0 %v1225_v30  ;;  %v1553_v61 = vunpack.c.h.s8.bf16 %v1073_v55  ;;  %v1008_v30 = vld [vmem:[#allocation2 + $0x4e0] sm:$0xff] }
 0x2c2   :  { %2015 = vmatprep.subr.bf16.mxu1 %v1353_v62  ;;  %v1072_v62 = vld [vmem:[#allocation2 + $0x6e0] sm:$0xff]  ;;  %v1424_v37 = vunpack.c.h.s8.bf16 %v1008_v30 }
 0x2c3   :  { %v1552_v5 = vunpack.c.h.s8.bf16 %v1072_v62 }
 0x2c4   :  { %1975 = vmatpush2.bf16.msra.mxu0 %v1224_v8  ;;  %v1417_v8 = vunpack.c.l.s8.bf16 %v1009_v11 }
 0x2c5   :  { %2016 = vmatpush2.bf16.msra.mxu1 %v1352_v13  ;;  %1976 = vmatprep.subr.bf16.mxu0 %v1217_v16  ;;  %v1545_v13 = vunpack.c.l.s8.bf16 %v1073_v55  ;;  %v1001_v16 = vld [vmem:[#allocation2 + $0x4a8] sm:$0xff] }
 0x2c6   :  { %2017 = vmatprep.subr.bf16.mxu1 %v1345_v18  ;;  %v1065_v18 = vld [vmem:[#allocation2 + $0x6a8] sm:$0xff] }
 0x2c8   :  { %1977 = vmatpush2.bf16.msra.mxu0 %v1216_v40 }
 0x2c9   :  { %2018 = vmatpush2.bf16.msra.mxu1 %v1344_v48  ;;  %1978 = vmatprep.subr.bf16.mxu0 %v1209_v44  ;;  %v1416_v48 = vunpack.c.l.s8.bf16 %v1008_v30  ;;  %v1544_v44 = vunpack.c.l.s8.bf16 %v1072_v62 }
 0x2ca   :  { %2019 = vmatprep.subr.bf16.mxu1 %v1337_v12  ;;  %v1000_v12 = vld [vmem:[#allocation2 + $0x4a0] sm:$0xff] }
 0x2cc   :  { %1979 = vmatpush2.bf16.msra.mxu0 %v1208_v56  ;;  %v1409_v56 = vunpack.c.h.s8.bf16 %v1001_v16 }
 0x2cd   :  { %2020 = vmatpush2.bf16.msra.mxu1 %v1336_v39  ;;  %1980 = vmatprep.subr.bf16.mxu0 %v1201_v42  ;;  %v1537_v39 = vunpack.c.h.s8.bf16 %v1065_v18  ;;  %v1064_v42 = vld [vmem:[#allocation2 + $0x6a0] sm:$0xff] }
 0x2ce   :  { %2021 = vmatprep.subr.bf16.mxu1 %v1329_v19  ;;  %v1536_v22 = vunpack.c.h.s8.bf16 %v1064_v42 }
 0x2d0   :  { %1981 = vmatpush2.bf16.msra.mxu0 %v1200_v17  ;;  %v1408_v17 = vunpack.c.h.s8.bf16 %v1000_v12 }
 0x2d1   :  { %2022 = vmatpush2.bf16.msra.mxu1 %v1328_v51  ;;  %1982 = vmatprep.subr.bf16.mxu0 %v1193_v53 }
 0x2d2   :  { %2023 = vmatprep.subr.bf16.mxu1 %v1321_v38 }
 0x2d4   :  { %1983 = vmatpush2.bf16.msra.mxu0 %v1192_v23 }
 0x2d5   :  { %2024 = vmatpush2.bf16.msra.mxu1 %v1320_v24  ;;  %1984 = vmatprep.subr.bf16.mxu0 %v1185_v7  ;;  %v1529_v24 = vunpack.c.l.s8.bf16 %v1065_v18 }
 0x2d6   :  { %2025 = vmatprep.subr.bf16.mxu1 %v1313_v27 }
 0x2d8   :  { %1985 = vmatpush2.bf16.msra.mxu0 %v1184_v59  ;;  %v993_v59 = vld [vmem:[#allocation2 + $0x468] sm:$0xff] }
 0x2d9   :  { %2026 = vmatpush2.bf16.msra.mxu1 %v1312_v6  ;;  %1986 = vmatprep.subr.bf16.mxu0 %v1177_v21  ;;  %v1057_v6 = vld [vmem:[#allocation2 + $0x668] sm:$0xff]  ;;  %v1400_v21 = vunpack.c.l.s8.bf16 %v1000_v12  ;;  %v1393_v30 = vunpack.c.h.s8.bf16 %v993_v59 }
 0x2da   :  { %2027 = vmatprep.subr.bf16.mxu1 %v1305_v0  ;;  %v1528_v0 = vunpack.c.l.s8.bf16 %v1064_v42  ;;  %v1521_v62 = vunpack.c.h.s8.bf16 %v1057_v6  ;;  %v1513_v12 = vunpack.c.l.s8.bf16 %v1057_v6  ;;  %v985_v42 = vld [vmem:[#allocation2 + $0x428] sm:$0xff] }
 0x2dc   :  { %1987 = vmatpush2.bf16.msra.mxu0 %v1176_v57 }
 0x2dd   :  { %2028 = vmatpush2.bf16.msra.mxu1 %v1304_v41  ;;  %2038 = vmatprep.subr.bf16.mxu0 %v1425_v60  ;;  %v992_v60 = vld [vmem:[#allocation2 + $0x460] sm:$0xff] }
 0x2de   :  { %2079 = vmatprep.subr.bf16.mxu1 %v1553_v61  ;;  %v1056_v61 = vld [vmem:[#allocation2 + $0x660] sm:$0xff] }
 0x2df   :  { %v1744_v35 = vpop.f32.mrf.mxu0  ;;  %1989 = vmatmul.mubr.bf16.vlgmr.msra.gmra.mxu0 %v4430_v52  ;;  %v1520_v18 = vunpack.c.h.s8.bf16 %v1056_v61 }
 0x2e0   :  { %v1785_v36 = vpop.f32.mrf.mxu1  ;;  %2030 = vmatmul.mubr.bf16.vlgmr.msra.gmra.mxu1 %v4434_v4  ;;  %v1745_v40 = vadd.f32 %v1744_v35, %v4466_v54  ;;  %2039 = vmatpush1.bf16.msra.mxu0 %v1424_v37 }
 0x2e1   :  { %2080 = vmatpush1.bf16.msra.mxu1 %v1552_v5  ;;  %v1746_v45 = vpop.f32.mrf.mxu0  ;;  %2040 = vmatprep.subr.bf16.mxu0 %v1417_v8 }
 0x2e2   :  { %v1787_v10 = vpop.f32.mrf.mxu1  ;;  %2081 = vmatprep.subr.bf16.mxu1 %v1545_v13  ;;  %v4475_v19 = vadd.f32 %v1785_v36, %v1745_v40  ;;  %v1747_v43 = vadd.f32 %v1746_v45, %v4468_v63  ;;  %2070 = vmatprep.mubr.bf16.mxu0 %v4438_v50  ;;  %v1401_v63 = vunpack.c.l.s8.bf16 %v1001_v16  ;;  %v1392_v16 = vunpack.c.h.s8.bf16 %v992_v60 }
 0x2e3   :  { %2111 = vmatprep.mubr.bf16.mxu1 %v4442_v14  ;;  %v1748_v54 = vpop.f32.mrf.mxu0 }
 0x2e4   :  { %v1789_v47 = vpop.f32.mrf.mxu1  ;;  %v2287_v51 = vrot.slane %v4475_v19, 4  ;;  %v2335_v53 = vmul.f32 %v4475_v19, %v4475_v19  ;;  %v4483_v38 = vadd.f32 %v1787_v10, %v1747_v43  ;;  %2041 = vmatpush1.bf16.msra.mxu0 %v1416_v48  ;;  %v1049_v43 = vld [vmem:[#allocation2 + $0x628] sm:$0xff]  ;;  %v1384_v54 = vunpack.c.l.s8.bf16 %v992_v60 }
 0x2e5   :  { %2082 = vmatpush1.bf16.msra.mxu1 %v1544_v44  ;;  %v1749_v29 = vpop.f32.mrf.mxu0  ;;  %2042 = vmatprep.subr.bf16.mxu0 %v1409_v56  ;;  %v1385_v44 = vunpack.c.l.s8.bf16 %v993_v59  ;;  %v1512_v47 = vunpack.c.l.s8.bf16 %v1056_v61  ;;  %v1497_v60 = vunpack.c.l.s8.bf16 %v1049_v43 }
 0x2e6   :  { %v1790_v23 = vpop.f32.mrf.mxu1  ;;  %2083 = vmatprep.subr.bf16.mxu1 %v1537_v39  ;;  %v2288_v7 = vadd.f32 %v2287_v51, %v4475_v19  ;;  %v2343_v27 = vrot.slane %v2335_v53, 4  ;;  %v2293_v25 = vrot.slane %v4483_v38, 4  ;;  %v2336_v34 = vmul.f32 %v4483_v38, %v4483_v38 }
 0x2e7   :  { %v984_v23 = vld [vmem:[#allocation2 + $0x420] sm:$0xff] }
 0x2e8   :  { %v2289_v11 = vrot.slane %v2288_v7, 2  ;;  %v2344_v55 = vadd.f32 %v2343_v27, %v2335_v53  ;;  %v2294_v57 = vadd.f32 %v2293_v25, %v4483_v38  ;;  %v2349_v41 = vrot.slane %v2336_v34, 4  ;;  %2043 = vmatpush1.bf16.msra.mxu0 %v1408_v17  ;;  %v4490_v17 = vld [vmem:[#allocation14] sm:$0xff] }
 0x2e9   :  { %2084 = vmatpush1.bf16.msra.mxu1 %v1536_v22  ;;  %2044 = vmatprep.subr.bf16.mxu0 %v1401_v63  ;;  %v1377_v63 = vunpack.c.h.s8.bf16 %v985_v42  ;;  %v2435_v6 = vrot.slane %v4490_v17, %v4217_v26 }
 0x2ea   :  { %2085 = vmatprep.subr.bf16.mxu1 %v1529_v24  ;;  %v2290_v37 = vadd.f32 %v2289_v11, %v2288_v7  ;;  %v2345_v5 = vrot.slane %v2344_v55, 2  ;;  %v2295_v8 = vrot.slane %v2294_v57, 2  ;;  %v2350_v13 = vadd.f32 %v2349_v41, %v2336_v34  ;;  %v1048_v7 = vld [vmem:[#allocation2 + $0x620] sm:$0xff] }
 0x2eb   :  { %v1505_v24 = vunpack.c.h.s8.bf16 %v1049_v43  ;;  %v1369_v41 = vunpack.c.l.s8.bf16 %v985_v42  ;;  %v1097_v42 = vld [vmem:[#allocation2 + $0x7a8] sm:$0xff] }
 0x2ec   :  { %v2291_v35 = vrot.slane %v2290_v37, 1  ;;  %v2346_v36 = vadd.f32 %v2345_v5, %v2344_v55  ;;  %v2296_v40 = vadd.f32 %v2295_v8, %v2294_v57  ;;  %v2351_v48 = vrot.slane %v2350_v13, 2  ;;  %2045 = vmatpush1.bf16.msra.mxu0 %v1400_v21  ;;  %v1105_v5 = vld [vmem:[#allocation2 + $0x7e8] sm:$0xff] }
 0x2ed   :  { %2086 = vmatpush1.bf16.msra.mxu1 %v1528_v0  ;;  %2046 = vmatprep.subr.bf16.mxu0 %v1393_v30  ;;  %v1376_v21 = vunpack.c.h.s8.bf16 %v984_v23  ;;  %v1504_v57 = vunpack.c.h.s8.bf16 %v1048_v7 }
 0x2ee   :  { %2087 = vmatprep.subr.bf16.mxu1 %v1521_v62  ;;  %v2292_v45 = vadd.f32 %v2291_v35, %v2290_v37  ;;  %v2347_v10 = vrot.slane %v2346_v36, 1  ;;  %v2297_v56 = vrot.slane %v2296_v40, 1  ;;  %v2352_v39 = vadd.f32 %v2351_v48, %v2350_v13  ;;  %v1041_v37 = vld [vmem:[#allocation2 + $0x5e8] sm:$0xff]  ;;  %v1104_v48 = vld [vmem:[#allocation2 + $0x7e0] sm:$0xff] }
 0x2ef   :  { %v2439_v62 = vrot.slane %v4490_v17, %v4244_v3  ;;  %v1489_v35 = vunpack.c.h.s8.bf16 %v1041_v37 }
 0x2f0   :  { %v2348_v51 = vadd.f32 %v2347_v10, %v2346_v36  ;;  %v4492_v53 = vmul.f32 0.125, %v2292_v45  ;;  %v2298_v22 = vadd.f32 %v2297_v56, %v2296_v40  ;;  %v2353_v29 = vrot.slane %v2352_v39, 1  ;;  %2047 = vmatpush1.bf16.msra.mxu0 %v1392_v16  ;;  %v1040_v40 = vld [vmem:[#allocation2 + $0x5e0] sm:$0xff] }
 0x2f1   :  { %2088 = vmatpush1.bf16.msra.mxu1 %v1520_v18  ;;  %2048 = vmatprep.subr.bf16.mxu0 %v1385_v44  ;;  %v1368_v16 = vunpack.c.l.s8.bf16 %v984_v23  ;;  %v1496_v18 = vunpack.c.l.s8.bf16 %v1048_v7  ;;  %v1617_v36 = vunpack.c.h.s8.bf16 %v1105_v5  ;;  %v1616_v45 = vunpack.c.h.s8.bf16 %v1104_v48 }
 0x2f2   :  { %2089 = vmatprep.subr.bf16.mxu1 %v1513_v12  ;;  %v2399_v27 = vmul.f32 0.125, %v2348_v51  ;;  %v2407_v25 = vmul.f32 %v4492_v53, %v4492_v53  ;;  %v2354_v34 = vadd.f32 %v2353_v29, %v2352_v39  ;;  %v4496_v59 = vmul.f32 0.125, %v2298_v22  ;;  %v1033_v39 = vld [vmem:[#allocation2 + $0x5a8] sm:$0xff]  ;;  %v1032_v22 = vld [vmem:[#allocation2 + $0x5a0] sm:$0xff] }
 0x2f3   :  { %v1488_v12 = vunpack.c.h.s8.bf16 %v1040_v40  ;;  %v1481_v10 = vunpack.c.l.s8.bf16 %v1041_v37  ;;  %v1609_v56 = vunpack.c.l.s8.bf16 %v1105_v5  ;;  %v1480_v43 = vunpack.c.l.s8.bf16 %v1040_v40  ;;  %v1096_v29 = vld [vmem:[#allocation2 + $0x7a0] sm:$0xff]  ;;  %v1017_v5 = vld [vmem:[#allocation2 + $0x528] sm:$0xff] }
 0x2f4   :  { %v2415_v0 = vsub.f32 %v2399_v27, %v2407_v25  ;;  %v2400_v11 = vmul.f32 0.125, %v2354_v34  ;;  %v2408_v55 = vmul.f32 %v4496_v59, %v4496_v59  ;;  %2049 = vmatpush1.bf16.msra.mxu0 %v1384_v54  ;;  %v1608_v54 = vunpack.c.l.s8.bf16 %v1104_v48  ;;  %v1025_v27 = vld [vmem:[#allocation2 + $0x568] sm:$0xff]  ;;  %v1080_v40 = vld [vmem:[#allocation2 + $0x720] sm:$0xff] }
 0x2f5   :  { %2090 = vmatpush1.bf16.msra.mxu1 %v1512_v47  ;;  %2050 = vmatprep.subr.bf16.mxu0 %v1377_v63  ;;  %v1473_v47 = vunpack.c.h.s8.bf16 %v1033_v39  ;;  %v1601_v51 = vunpack.c.h.s8.bf16 %v1097_v42  ;;  %v1472_v23 = vunpack.c.h.s8.bf16 %v1032_v22  ;;  %v1600_v63 = vunpack.c.h.s8.bf16 %v1096_v29  ;;  %v1089_v25 = vld [vmem:[#allocation2 + $0x768] sm:$0xff] }
 0x2f6   :  { %2091 = vmatprep.subr.bf16.mxu1 %v1505_v24  ;;  %v2423_v61 = vmax.f32 %v2415_v0, 0.0  ;;  %v2416_v30 = vsub.f32 %v2400_v11, %v2408_v55  ;;  %v1465_v24 = vunpack.c.l.s8.bf16 %v1033_v39  ;;  %v1593_v7 = vunpack.c.l.s8.bf16 %v1097_v42 }
 0x2f7   :  { %v1457_v11 = vunpack.c.h.s8.bf16 %v1025_v27  ;;  %v1585_v55 = vunpack.c.h.s8.bf16 %v1089_v25  ;;  %v1577_v37 = vunpack.c.l.s8.bf16 %v1089_v25  ;;  %v1560_v42 = vunpack.c.l.s8.bf16 %v1080_v40 }
 0x2f8   :  { %v2472_v8 = vadd.f32 %v2435_v6, %v2423_v61  ;;  %v2424_v13 = vmax.f32 %v2416_v30, 0.0  ;;  %2051 = vmatpush1.bf16.msra.mxu0 %v1376_v21  ;;  %v1464_v6 = vunpack.c.l.s8.bf16 %v1032_v22  ;;  %v1592_v21 = vunpack.c.l.s8.bf16 %v1096_v29 }
 0x2f9   :  { %2092 = vmatpush1.bf16.msra.mxu1 %v1504_v57  ;;  %2052 = vmatprep.subr.bf16.mxu0 %v1369_v41  ;;  %v1024_v57 = vld [vmem:[#allocation2 + $0x560] sm:$0xff] }
 0x2fa   :  { %2093 = vmatprep.subr.bf16.mxu1 %v1497_v60  ;;  %v2473_v44 = vadd.f32 %v2439_v62, %v2424_v13  ;;  %3808 = vrsqrt.f32 %v2472_v8  ;;  %v1088_v41 = vld [vmem:[#allocation2 + $0x760] sm:$0xff]  ;;  %v1456_v61 = vunpack.c.h.s8.bf16 %v1024_v57  ;;  %v1449_v62 = vunpack.c.l.s8.bf16 %v1025_v27  ;;  %v1081_v8 = vld [vmem:[#allocation2 + $0x728] sm:$0xff] }
 0x2fb   :  { %v1584_v30 = vunpack.c.h.s8.bf16 %v1088_v41  ;;  %v1448_v13 = vunpack.c.l.s8.bf16 %v1024_v57 }
 0x2fc   :  { %3810 = vrsqrt.f32 %v2473_v44  ;;  %2053 = vmatpush1.bf16.msra.mxu0 %v1368_v16  ;;  %v1576_v16 = vunpack.c.l.s8.bf16 %v1088_v41  ;;  %v1568_v44 = vunpack.c.h.s8.bf16 %v1080_v40 }
 0x2fd   :  { %2094 = vmatpush1.bf16.msra.mxu1 %v1496_v18  ;;  %2054 = vmatprep.subr.bf16.mxu0 %v1489_v35  ;;  %v1441_v18 = vunpack.c.h.s8.bf16 %v1017_v5  ;;  %v1569_v35 = vunpack.c.h.s8.bf16 %v1081_v8 }
 0x2fe   :  { %2095 = vmatprep.subr.bf16.mxu1 %v1617_v36  ;;  %v1016_v36 = vld [vmem:[#allocation2 + $0x520] sm:$0xff] }
 0x2ff   :  { %v1440_v48 = vunpack.c.h.s8.bf16 %v1016_v36  ;;  %v1432_v39 = vunpack.c.l.s8.bf16 %v1016_v36 }
 0x300   :  { %2055 = vmatpush2.bf16.msra.mxu0 %v1488_v12  ;;  %v1433_v12 = vunpack.c.l.s8.bf16 %v1017_v5 }
 0x301   :  { %2096 = vmatpush2.bf16.msra.mxu1 %v1616_v45  ;;  %2056 = vmatprep.subr.bf16.mxu0 %v1481_v10  ;;  %v1561_v45 = vunpack.c.l.s8.bf16 %v1081_v8  ;;  %v883_v10 = vld [vmem:[#allocation2 + $0xf8] sm:$0xff] }
 0x302   :  { %2097 = vmatprep.subr.bf16.mxu1 %v1609_v56  ;;  %v947_v56 = vld [vmem:[#allocation2 + $0x2f8] sm:$0xff] }
 0x304   :  { %2057 = vmatpush2.bf16.msra.mxu0 %v1480_v43  ;;  %v1171_v43 = vunpack.c.h.s8.bf16 %v883_v10 }
 0x305   :  { %2098 = vmatpush2.bf16.msra.mxu1 %v1608_v54  ;;  %2058 = vmatprep.subr.bf16.mxu0 %v1473_v47  ;;  %v1299_v54 = vunpack.c.h.s8.bf16 %v947_v56  ;;  %v882_v47 = vld [vmem:[#allocation2 + $0xf0] sm:$0xff] }
 0x306   :  { %2099 = vmatprep.subr.bf16.mxu1 %v1601_v51  ;;  %v946_v51 = vld [vmem:[#allocation2 + $0x2f0] sm:$0xff]  ;;  %v1170_v22 = vunpack.c.h.s8.bf16 %v882_v47 }
 0x307   :  { %v4504_v34 = vpop.eup %3808  ;;  %v1298_v29 = vunpack.c.h.s8.bf16 %v946_v51 }
 0x308   :  { %2059 = vmatpush2.bf16.msra.mxu0 %v1472_v23  ;;  %v1163_v23 = vunpack.c.l.s8.bf16 %v883_v10  ;;  %v866_v10 = vld [vmem:[#allocation2 + $0x70] sm:$0xff] }
 0x309   :  { %2100 = vmatpush2.bf16.msra.mxu1 %v1600_v63  ;;  %v4506_v0 = vpop.eup %3810  ;;  %2060 = vmatprep.subr.bf16.mxu0 %v1465_v24  ;;  %v1291_v63 = vunpack.c.l.s8.bf16 %v947_v56  ;;  %v875_v24 = vld [vmem:[#allocation2 + $0xb8] sm:$0xff]  ;;  %v930_v56 = vld [vmem:[#allocation2 + $0x270] sm:$0xff] }
 0x30a   :  { %2101 = vmatprep.subr.bf16.mxu1 %v1593_v7  ;;  %v2496_v60 = vcombine.low %v4504_v34, %v4506_v0  ;;  %v939_v7 = vld [vmem:[#allocation2 + $0x2b8] sm:$0xff]  ;;  %v1155_v41 = vunpack.c.h.s8.bf16 %v875_v24  ;;  %v1147_v36 = vunpack.c.l.s8.bf16 %v875_v24  ;;  %v858_v24 = vld [vmem:[#allocation2 + $0x30] sm:$0xff] }
 0x30b   :  { %v1275_v40 = vunpack.c.l.s8.bf16 %v939_v7 }
 0x30c   :  { %2061 = vmatpush2.bf16.msra.mxu0 %v1464_v6 }
 0x30d   :  { %2102 = vmatpush2.bf16.msra.mxu1 %v1592_v21  ;;  %2062 = vmatprep.subr.bf16.mxu0 %v1457_v11  ;;  %v1162_v21 = vunpack.c.l.s8.bf16 %v882_v47  ;;  %v1290_v11 = vunpack.c.l.s8.bf16 %v946_v51  ;;  %v859_v47 = vld [vmem:[#allocation2 + $0x38] sm:$0xff] }
 0x30e   :  { %2103 = vmatprep.subr.bf16.mxu1 %v1585_v55  ;;  %v923_v51 = vld [vmem:[#allocation2 + $0x238] sm:$0xff] }
 0x310   :  { %2063 = vmatpush2.bf16.msra.mxu0 %v1456_v61  ;;  %v1283_v61 = vunpack.c.h.s8.bf16 %v939_v7  ;;  %v922_v7 = vld [vmem:[#allocation2 + $0x230] sm:$0xff] }
 0x311   :  { %2104 = vmatpush2.bf16.msra.mxu1 %v1584_v30  ;;  %2064 = vmatprep.subr.bf16.mxu0 %v1449_v62  ;;  %v874_v30 = vld [vmem:[#allocation2 + $0xb0] sm:$0xff] }
 0x312   :  { %2105 = vmatprep.subr.bf16.mxu1 %v1577_v37  ;;  %v938_v62 = vld [vmem:[#allocation2 + $0x2b0] sm:$0xff] }
 0x314   :  { %2065 = vmatpush2.bf16.msra.mxu0 %v1448_v13  ;;  %v1154_v13 = vunpack.c.h.s8.bf16 %v874_v30 }
 0x315   :  { %2106 = vmatpush2.bf16.msra.mxu1 %v1576_v16  ;;  %2066 = vmatprep.subr.bf16.mxu0 %v1441_v18  ;;  %v1282_v16 = vunpack.c.h.s8.bf16 %v938_v62 }
 0x316   :  { %2107 = vmatprep.subr.bf16.mxu1 %v1569_v35 }
 0x318   :  { %2067 = vmatpush2.bf16.msra.mxu0 %v1440_v48  ;;  %v867_v48 = vld [vmem:[#allocation2 + $0x78] sm:$0xff] }
 0x319   :  { %2108 = vmatpush2.bf16.msra.mxu1 %v1568_v44  ;;  %2068 = vmatprep.subr.bf16.mxu0 %v1433_v12  ;;  %v931_v44 = vld [vmem:[#allocation2 + $0x278] sm:$0xff]  ;;  %v1146_v12 = vunpack.c.l.s8.bf16 %v874_v30 }
 0x31a   :  { %2109 = vmatprep.subr.bf16.mxu1 %v1561_v45  ;;  %v1267_v45 = vunpack.c.h.s8.bf16 %v931_v44 }
 0x31c   :  { %2069 = vmatpush2.bf16.msra.mxu0 %v1432_v39  ;;  %v1138_v39 = vunpack.c.h.s8.bf16 %v866_v10 }
 0x31d   :  { %2110 = vmatpush2.bf16.msra.mxu1 %v1560_v42  ;;  %2120 = vmatprep.subr.bf16.mxu0 %v1171_v43  ;;  %v1266_v42 = vunpack.c.h.s8.bf16 %v930_v56  ;;  %v1131_v43 = vunpack.c.l.s8.bf16 %v867_v48 }
 0x31e   :  { %2161 = vmatprep.subr.bf16.mxu1 %v1299_v54  ;;  %v1259_v54 = vunpack.c.l.s8.bf16 %v931_v44 }
 0x31f   :  { %v1826_v27 = vpop.f32.mrf.mxu0  ;;  %2071 = vmatmul.mubr.bf16.vlgmr.msra.gmra.mxu0 %v4450_v49 }
 0x320   :  { %v1867_v25 = vpop.f32.mrf.mxu1  ;;  %2112 = vmatmul.mubr.bf16.vlgmr.msra.gmra.mxu1 %v4454_v9  ;;  %2121 = vmatpush1.bf16.msra.mxu0 %v1170_v22  ;;  %v1130_v22 = vunpack.c.l.s8.bf16 %v866_v10 }
 0x321   :  { %v4512_v6 = vadd.f32 %v1867_v25, %v1826_v27  ;;  %2162 = vmatpush1.bf16.msra.mxu1 %v1298_v29  ;;  %v1828_v55 = vpop.f32.mrf.mxu0  ;;  %2122 = vmatprep.subr.bf16.mxu0 %v1163_v23  ;;  %v1258_v29 = vunpack.c.l.s8.bf16 %v930_v56  ;;  %v1123_v23 = vunpack.c.h.s8.bf16 %v859_v47  ;;  %v1122_v27 = vunpack.c.h.s8.bf16 %v858_v24 }
 0x322   :  { %v1869_v57 = vpop.f32.mrf.mxu1  ;;  %2163 = vmatprep.subr.bf16.mxu1 %v1291_v63  ;;  %2152 = vmatprep.mubr.bf16.mxu0 %v4422_v28  ;;  %v1274_v28 = vunpack.c.l.s8.bf16 %v938_v62  ;;  %v1251_v63 = vunpack.c.h.s8.bf16 %v923_v51  ;;  %v1250_v25 = vunpack.c.h.s8.bf16 %v922_v7 }
 0x323   :  { %v4514_v37 = vadd.f32 %v1869_v57, %v1828_v55  ;;  %2193 = vmatprep.mubr.bf16.mxu1 %v4424_v31  ;;  %v1830_v5 = vpop.f32.mrf.mxu0  ;;  %v1139_v31 = vunpack.c.h.s8.bf16 %v867_v48  ;;  %v915_v55 = vld [vmem:[#allocation2 + $0x1f8] sm:$0xff] }
 0x324   :  { %v1871_v8 = vpop.f32.mrf.mxu1  ;;  %2123 = vmatpush1.bf16.msra.mxu0 %v1162_v21  ;;  %v1115_v21 = vunpack.c.l.s8.bf16 %v859_v47  ;;  %v979_v57 = vld [vmem:[#allocation2 + $0x3f8] sm:$0xff]  ;;  %v1235_v30 = vunpack.c.h.s8.bf16 %v915_v55  ;;  %v914_v5 = vld [vmem:[#allocation2 + $0x1f0] sm:$0xff] }
 0x325   :  { %2164 = vmatpush1.bf16.msra.mxu1 %v1290_v11  ;;  %v1831_v18 = vpop.f32.mrf.mxu0  ;;  %2124 = vmatprep.subr.bf16.mxu0 %v1155_v41  ;;  %v1243_v11 = vunpack.c.l.s8.bf16 %v923_v51  ;;  %v1114_v41 = vunpack.c.l.s8.bf16 %v858_v24  ;;  %v1363_v62 = vunpack.c.h.s8.bf16 %v979_v57  ;;  %v978_v8 = vld [vmem:[#allocation2 + $0x3f0] sm:$0xff]  ;;  %v1226_v48 = vunpack.c.l.s8.bf16 %v914_v5 }
 0x326   :  { %v1872_v35 = vpop.f32.mrf.mxu1  ;;  %2165 = vmatprep.subr.bf16.mxu1 %v1283_v61  ;;  %v1242_v61 = vunpack.c.l.s8.bf16 %v922_v7  ;;  %v1227_v18 = vunpack.c.l.s8.bf16 %v915_v55  ;;  %v1354_v44 = vunpack.c.l.s8.bf16 %v978_v8 }
 0x327   :  { %v1355_v35 = vunpack.c.l.s8.bf16 %v979_v57 }
 0x328   :  { %2125 = vmatpush1.bf16.msra.mxu0 %v1154_v13  ;;  %v1234_v13 = vunpack.c.h.s8.bf16 %v914_v5 }
 0x329   :  { %2166 = vmatpush1.bf16.msra.mxu1 %v1282_v16  ;;  %2126 = vmatprep.subr.bf16.mxu0 %v1147_v36  ;;  %v1362_v16 = vunpack.c.h.s8.bf16 %v978_v8  ;;  %v907_v36 = vld [vmem:[#allocation2 + $0x1b8] sm:$0xff] }
 0x32a   :  { %2167 = vmatprep.subr.bf16.mxu1 %v1275_v40  ;;  %v971_v40 = vld [vmem:[#allocation2 + $0x3b8] sm:$0xff] }
 0x32c   :  { %2127 = vmatpush1.bf16.msra.mxu0 %v1146_v12  ;;  %v1219_v12 = vunpack.c.h.s8.bf16 %v907_v36 }
 0x32d   :  { %2168 = vmatpush1.bf16.msra.mxu1 %v1274_v28  ;;  %2128 = vmatprep.subr.bf16.mxu0 %v1139_v31  ;;  %v1347_v28 = vunpack.c.h.s8.bf16 %v971_v40  ;;  %v906_v31 = vld [vmem:[#allocation2 + $0x1b0] sm:$0xff] }
 0x32e   :  { %2169 = vmatprep.subr.bf16.mxu1 %v1267_v45  ;;  %v970_v45 = vld [vmem:[#allocation2 + $0x3b0] sm:$0xff]  ;;  %v1218_v10 = vunpack.c.h.s8.bf16 %v906_v31  ;;  %v1210_v47 = vunpack.c.l.s8.bf16 %v906_v31 }
 0x32f   :  { %v1346_v56 = vunpack.c.h.s8.bf16 %v970_v45  ;;  %v1338_v51 = vunpack.c.l.s8.bf16 %v970_v45 }
 0x330   :  { %2129 = vmatpush1.bf16.msra.mxu0 %v1138_v39  ;;  %v1211_v39 = vunpack.c.l.s8.bf16 %v907_v36 }
 0x331   :  { %2170 = vmatpush1.bf16.msra.mxu1 %v1266_v42  ;;  %2130 = vmatprep.subr.bf16.mxu0 %v1131_v43  ;;  %v1339_v42 = vunpack.c.l.s8.bf16 %v971_v40  ;;  %v899_v43 = vld [vmem:[#allocation2 + $0x178] sm:$0xff] }
 0x332   :  { %2171 = vmatprep.subr.bf16.mxu1 %v1259_v54  ;;  %v963_v54 = vld [vmem:[#allocation2 + $0x378] sm:$0xff] }
 0x334   :  { %2131 = vmatpush1.bf16.msra.mxu0 %v1130_v22  ;;  %v1203_v22 = vunpack.c.h.s8.bf16 %v899_v43 }
 0x335   :  { %2172 = vmatpush1.bf16.msra.mxu1 %v1258_v29  ;;  %2132 = vmatprep.subr.bf16.mxu0 %v1123_v23  ;;  %v1331_v29 = vunpack.c.h.s8.bf16 %v963_v54  ;;  %v898_v23 = vld [vmem:[#allocation2 + $0x170] sm:$0xff] }
 0x336   :  { %2173 = vmatprep.subr.bf16.mxu1 %v1251_v63  ;;  %v962_v63 = vld [vmem:[#allocation2 + $0x370] sm:$0xff]  ;;  %v1202_v24 = vunpack.c.h.s8.bf16 %v898_v23  ;;  %v1194_v55 = vunpack.c.l.s8.bf16 %v898_v23 }
 0x337   :  { %v1330_v7 = vunpack.c.h.s8.bf16 %v962_v63  ;;  %v1322_v57 = vunpack.c.l.s8.bf16 %v962_v63 }
 0x338   :  { %2133 = vmatpush1.bf16.msra.mxu0 %v1122_v27  ;;  %v1195_v27 = vunpack.c.l.s8.bf16 %v899_v43 }
 0x339   :  { %2174 = vmatpush1.bf16.msra.mxu1 %v1250_v25  ;;  %2134 = vmatprep.subr.bf16.mxu0 %v1115_v21  ;;  %v1323_v25 = vunpack.c.l.s8.bf16 %v963_v54  ;;  %v891_v21 = vld [vmem:[#allocation2 + $0x138] sm:$0xff] }
 0x33a   :  { %2175 = vmatprep.subr.bf16.mxu1 %v1243_v11  ;;  %v955_v11 = vld [vmem:[#allocation2 + $0x338] sm:$0xff] }
 0x33c   :  { %2135 = vmatpush1.bf16.msra.mxu0 %v1114_v41  ;;  %v1187_v41 = vunpack.c.h.s8.bf16 %v891_v21 }
 0x33d   :  { %2176 = vmatpush1.bf16.msra.mxu1 %v1242_v61  ;;  %2136 = vmatprep.subr.bf16.mxu0 %v1235_v30  ;;  %v1315_v61 = vunpack.c.h.s8.bf16 %v955_v11  ;;  %v890_v30 = vld [vmem:[#allocation2 + $0x130] sm:$0xff] }
 0x33e   :  { %2177 = vmatprep.subr.bf16.mxu1 %v1363_v62  ;;  %v954_v62 = vld [vmem:[#allocation2 + $0x330] sm:$0xff]  ;;  %v1186_v5 = vunpack.c.h.s8.bf16 %v890_v30  ;;  %v1178_v36 = vunpack.c.l.s8.bf16 %v890_v30 }
 0x33f   :  { %v1314_v8 = vunpack.c.h.s8.bf16 %v954_v62  ;;  %v1306_v40 = vunpack.c.l.s8.bf16 %v954_v62 }
 0x340   :  { %2137 = vmatpush2.bf16.msra.mxu0 %v1234_v13  ;;  %v1179_v13 = vunpack.c.l.s8.bf16 %v891_v21 }
 0x341   :  { %2178 = vmatpush2.bf16.msra.mxu1 %v1362_v16  ;;  %2138 = vmatprep.subr.bf16.mxu0 %v1227_v18  ;;  %v1307_v16 = vunpack.c.l.s8.bf16 %v955_v11  ;;  %v1011_v18 = vld [vmem:[#allocation2 + $0x4f8] sm:$0xff] }
 0x342   :  { %2179 = vmatprep.subr.bf16.mxu1 %v1355_v35  ;;  %v1075_v35 = vld [vmem:[#allocation2 + $0x6f8] sm:$0xff] }
 0x344   :  { %2139 = vmatpush2.bf16.msra.mxu0 %v1226_v48  ;;  %v1427_v48 = vunpack.c.h.s8.bf16 %v1011_v18 }
 0x345   :  { %2180 = vmatpush2.bf16.msra.mxu1 %v1354_v44  ;;  %2140 = vmatprep.subr.bf16.mxu0 %v1219_v12  ;;  %v1555_v44 = vunpack.c.h.s8.bf16 %v1075_v35  ;;  %v1010_v12 = vld [vmem:[#allocation2 + $0x4f0] sm:$0xff] }
 0x346   :  { %2181 = vmatprep.subr.bf16.mxu1 %v1347_v28  ;;  %v1074_v28 = vld [vmem:[#allocation2 + $0x6f0] sm:$0xff]  ;;  %v1426_v31 = vunpack.c.h.s8.bf16 %v1010_v12 }
 0x347   :  { %v1554_v45 = vunpack.c.h.s8.bf16 %v1074_v28 }
 0x348   :  { %2141 = vmatpush2.bf16.msra.mxu0 %v1218_v10  ;;  %v1419_v10 = vunpack.c.l.s8.bf16 %v1011_v18 }
 0x349   :  { %2182 = vmatpush2.bf16.msra.mxu1 %v1346_v56  ;;  %2142 = vmatprep.subr.bf16.mxu0 %v1211_v39  ;;  %v1547_v56 = vunpack.c.l.s8.bf16 %v1075_v35  ;;  %v1003_v39 = vld [vmem:[#allocation2 + $0x4b8] sm:$0xff] }
 0x34a   :  { %2183 = vmatprep.subr.bf16.mxu1 %v1339_v42  ;;  %v1067_v42 = vld [vmem:[#allocation2 + $0x6b8] sm:$0xff] }
 0x34c   :  { %2143 = vmatpush2.bf16.msra.mxu0 %v1210_v47 }
 0x34d   :  { %2184 = vmatpush2.bf16.msra.mxu1 %v1338_v51  ;;  %2144 = vmatprep.subr.bf16.mxu0 %v1203_v22  ;;  %v1418_v51 = vunpack.c.l.s8.bf16 %v1010_v12  ;;  %v1546_v22 = vunpack.c.l.s8.bf16 %v1074_v28  ;;  %v994_v12 = vld [vmem:[#allocation2 + $0x470] sm:$0xff] }
 0x34e   :  { %2185 = vmatprep.subr.bf16.mxu1 %v1331_v29  ;;  %v1002_v29 = vld [vmem:[#allocation2 + $0x4b0] sm:$0xff] }
 0x34f   :  { %v1410_v21 = vunpack.c.h.s8.bf16 %v1002_v29  ;;  %v1402_v18 = vunpack.c.l.s8.bf16 %v1002_v29  ;;  %v1058_v28 = vld [vmem:[#allocation2 + $0x670] sm:$0xff] }
 0x350   :  { %2145 = vmatpush2.bf16.msra.mxu0 %v1202_v24  ;;  %v1411_v24 = vunpack.c.h.s8.bf16 %v1003_v39 }
 0x351   :  { %2186 = vmatpush2.bf16.msra.mxu1 %v1330_v7  ;;  %2146 = vmatprep.subr.bf16.mxu0 %v1195_v27  ;;  %v1539_v7 = vunpack.c.h.s8.bf16 %v1067_v42  ;;  %v1066_v27 = vld [vmem:[#allocation2 + $0x6b0] sm:$0xff] }
 0x352   :  { %2187 = vmatprep.subr.bf16.mxu1 %v1323_v25  ;;  %v1530_v35 = vunpack.c.l.s8.bf16 %v1066_v27 }
 0x354   :  { %2147 = vmatpush2.bf16.msra.mxu0 %v1194_v55 }
 0x355   :  { %2188 = vmatpush2.bf16.msra.mxu1 %v1322_v57  ;;  %2148 = vmatprep.subr.bf16.mxu0 %v1187_v41  ;;  %v1538_v41 = vunpack.c.h.s8.bf16 %v1066_v27 }
 0x356   :  { %2189 = vmatprep.subr.bf16.mxu1 %v1315_v61 }
 0x358   :  { %2149 = vmatpush2.bf16.msra.mxu0 %v1186_v5 }
 0x359   :  { %2190 = vmatpush2.bf16.msra.mxu1 %v1314_v8  ;;  %2150 = vmatprep.subr.bf16.mxu0 %v1179_v13  ;;  %v995_v13 = vld [vmem:[#allocation2 + $0x478] sm:$0xff] }
 0x35a   :  { %2191 = vmatprep.subr.bf16.mxu1 %v1307_v16  ;;  %v1059_v16 = vld [vmem:[#allocation2 + $0x678] sm:$0xff] }
 0x35c   :  { %2151 = vmatpush2.bf16.msra.mxu0 %v1178_v36 }
 0x35d   :  { %2192 = vmatpush2.bf16.msra.mxu1 %v1306_v40  ;;  %2202 = vmatprep.subr.bf16.mxu0 %v1427_v48 }
 0x35e   :  { %2243 = vmatprep.subr.bf16.mxu1 %v1555_v44 }
 0x35f   :  { %v1908_v43 = vpop.f32.mrf.mxu0  ;;  %2153 = vmatmul.mubr.bf16.vlgmr.msra.gmra.mxu0 %v4430_v52 }
 0x360   :  { %v1949_v54 = vpop.f32.mrf.mxu1  ;;  %2194 = vmatmul.mubr.bf16.vlgmr.msra.gmra.mxu1 %v4434_v4  ;;  %v1909_v47 = vadd.f32 %v1908_v43, %v4512_v6  ;;  %2203 = vmatpush1.bf16.msra.mxu0 %v1426_v31  ;;  %v1395_v31 = vunpack.c.h.s8.bf16 %v995_v13  ;;  %v1394_v43 = vunpack.c.h.s8.bf16 %v994_v12 }
 0x361   :  { %2244 = vmatpush1.bf16.msra.mxu1 %v1554_v45  ;;  %v1910_v23 = vpop.f32.mrf.mxu0  ;;  %2204 = vmatprep.subr.bf16.mxu0 %v1419_v10  ;;  %v1523_v45 = vunpack.c.h.s8.bf16 %v1059_v16 }
 0x362   :  { %v1951_v63 = vpop.f32.mrf.mxu1  ;;  %2245 = vmatprep.subr.bf16.mxu1 %v1547_v56  ;;  %v4521_v25 = vadd.f32 %v1949_v54, %v1909_v47  ;;  %v1911_v52 = vadd.f32 %v1910_v23, %v4514_v37  ;;  %2234 = vmatprep.mubr.bf16.mxu0 %v4438_v50  ;;  %v1403_v50 = vunpack.c.l.s8.bf16 %v1003_v39  ;;  %v1531_v37 = vunpack.c.l.s8.bf16 %v1067_v42 }
 0x363   :  { %2275 = vmatprep.mubr.bf16.mxu1 %v4442_v14  ;;  %v1912_v4 = vpop.f32.mrf.mxu0  ;;  %v1522_v54 = vunpack.c.h.s8.bf16 %v1058_v28  ;;  %v1387_v23 = vunpack.c.l.s8.bf16 %v995_v13 }
 0x364   :  { %v1953_v6 = vpop.f32.mrf.mxu1  ;;  %v2299_v11 = vrot.slane %v4521_v25, 4  ;;  %v2337_v55 = vmul.f32 %v4521_v25, %v4521_v25  ;;  %v4529_v57 = vadd.f32 %v1951_v63, %v1911_v52  ;;  %2205 = vmatpush1.bf16.msra.mxu0 %v1418_v51  ;;  %v1515_v63 = vunpack.c.l.s8.bf16 %v1059_v16  ;;  %v987_v4 = vld [vmem:[#allocation2 + $0x438] sm:$0xff] }
 0x365   :  { %2246 = vmatpush1.bf16.msra.mxu1 %v1546_v22  ;;  %v1913_v61 = vpop.f32.mrf.mxu0  ;;  %2206 = vmatprep.subr.bf16.mxu0 %v1411_v24  ;;  %v1051_v6 = vld [vmem:[#allocation2 + $0x638] sm:$0xff] }
 0x366   :  { %v1954_v30 = vpop.f32.mrf.mxu1  ;;  %2247 = vmatprep.subr.bf16.mxu1 %v1539_v7  ;;  %v2300_v14 = vadd.f32 %v2299_v11, %v4521_v25  ;;  %v2355_v62 = vrot.slane %v2337_v55, 4  ;;  %v2305_v5 = vrot.slane %v4529_v57, 4  ;;  %v2338_v8 = vmul.f32 %v4529_v57, %v4529_v57 }
 0x367   :  { %v1514_v11 = vunpack.c.l.s8.bf16 %v1058_v28  ;;  %v1499_v28 = vunpack.c.l.s8.bf16 %v1051_v6 }
 0x368   :  { %v2301_v36 = vrot.slane %v2300_v14, 2  ;;  %v2356_v40 = vadd.f32 %v2355_v62, %v2337_v55  ;;  %v2306_v48 = vadd.f32 %v2305_v5, %v4529_v57  ;;  %v2361_v44 = vrot.slane %v2338_v8, 4  ;;  %2207 = vmatpush1.bf16.msra.mxu0 %v1410_v21  ;;  %v1050_v62 = vld [vmem:[#allocation2 + $0x630] sm:$0xff] }
 0x369   :  { %2248 = vmatpush1.bf16.msra.mxu1 %v1538_v41  ;;  %2208 = vmatprep.subr.bf16.mxu0 %v1403_v50  ;;  %v1386_v21 = vunpack.c.l.s8.bf16 %v994_v12  ;;  %v986_v50 = vld [vmem:[#allocation2 + $0x430] sm:$0xff]  ;;  %v1371_v12 = vunpack.c.l.s8.bf16 %v987_v4 }
 0x36a   :  { %2249 = vmatprep.subr.bf16.mxu1 %v1531_v37  ;;  %v2302_v10 = vadd.f32 %v2301_v36, %v2300_v14  ;;  %v2357_v56 = vrot.slane %v2356_v40, 2  ;;  %v2307_v39 = vrot.slane %v2306_v48, 2  ;;  %v2362_v42 = vadd.f32 %v2361_v44, %v2338_v8 }
 0x36b   :  { %v1379_v37 = vunpack.c.h.s8.bf16 %v987_v4  ;;  %v1507_v14 = vunpack.c.h.s8.bf16 %v1051_v6  ;;  %v1506_v44 = vunpack.c.h.s8.bf16 %v1050_v62  ;;  %v1099_v4 = vld [vmem:[#allocation2 + $0x7b8] sm:$0xff] }
 0x36c   :  { %v2303_v47 = vrot.slane %v2302_v10, 1  ;;  %v2358_v51 = vadd.f32 %v2357_v56, %v2356_v40  ;;  %v2308_v22 = vadd.f32 %v2307_v39, %v2306_v48  ;;  %v2363_v29 = vrot.slane %v2362_v42, 2  ;;  %2209 = vmatpush1.bf16.msra.mxu0 %v1402_v18  ;;  %v1043_v56 = vld [vmem:[#allocation2 + $0x5f8] sm:$0xff] }
 0x36d   :  { %2250 = vmatpush1.bf16.msra.mxu1 %v1530_v35  ;;  %2210 = vmatprep.subr.bf16.mxu0 %v1395_v31  ;;  %v2443_v18 = vrot.slane %v4490_v17, %v4241_v2  ;;  %v1378_v35 = vunpack.c.h.s8.bf16 %v986_v50  ;;  %v1107_v39 = vld [vmem:[#allocation2 + $0x7f8] sm:$0xff] }
 0x36e   :  { %2251 = vmatprep.subr.bf16.mxu1 %v1523_v45  ;;  %v2304_v24 = vadd.f32 %v2303_v47, %v2302_v10  ;;  %v2359_v7 = vrot.slane %v2358_v51, 1  ;;  %v2309_v27 = vrot.slane %v2308_v22, 1  ;;  %v2364_v52 = vadd.f32 %v2363_v29, %v2362_v42  ;;  %v1042_v29 = vld [vmem:[#allocation2 + $0x5f0] sm:$0xff] }
 0x36f   :  { %v2447_v10 = vrot.slane %v4490_v17, %v4253_v20  ;;  %v1498_v47 = vunpack.c.l.s8.bf16 %v1050_v62  ;;  %v1490_v17 = vunpack.c.h.s8.bf16 %v1042_v29  ;;  %v1482_v6 = vunpack.c.l.s8.bf16 %v1042_v29  ;;  %v1082_v29 = vld [vmem:[#allocation2 + $0x730] sm:$0xff] }
 0x370   :  { %v2360_v55 = vadd.f32 %v2359_v7, %v2358_v51  ;;  %v4536_v41 = vmul.f32 0.125, %v2304_v24  ;;  %v2310_v61 = vadd.f32 %v2309_v27, %v2308_v22  ;;  %v2365_v30 = vrot.slane %v2364_v52, 1  ;;  %2211 = vmatpush1.bf16.msra.mxu0 %v1394_v43 }
 0x371   :  { %2252 = vmatpush1.bf16.msra.mxu1 %v1522_v54  ;;  %2212 = vmatprep.subr.bf16.mxu0 %v1387_v23  ;;  %v1370_v54 = vunpack.c.l.s8.bf16 %v986_v50  ;;  %v1491_v51 = vunpack.c.h.s8.bf16 %v1043_v56  ;;  %v1619_v22 = vunpack.c.h.s8.bf16 %v1107_v39  ;;  %v1106_v23 = vld [vmem:[#allocation2 + $0x7f0] sm:$0xff]  ;;  %v1483_v7 = vunpack.c.l.s8.bf16 %v1043_v56 }
 0x372   :  { %2253 = vmatprep.subr.bf16.mxu1 %v1515_v63  ;;  %v2401_v5 = vmul.f32 0.125, %v2360_v55  ;;  %v2409_v8 = vmul.f32 %v4536_v41, %v4536_v41  ;;  %v2366_v13 = vadd.f32 %v2365_v30, %v2364_v52  ;;  %v4540_v16 = vmul.f32 0.125, %v2310_v61  ;;  %v1035_v52 = vld [vmem:[#allocation2 + $0x5b8] sm:$0xff]  ;;  %v1034_v61 = vld [vmem:[#allocation2 + $0x5b0] sm:$0xff] }
 0x373   :  { %v1618_v24 = vunpack.c.h.s8.bf16 %v1106_v23  ;;  %v1611_v27 = vunpack.c.l.s8.bf16 %v1107_v39  ;;  %v1603_v55 = vunpack.c.h.s8.bf16 %v1099_v4  ;;  %v1098_v30 = vld [vmem:[#allocation2 + $0x7b0] sm:$0xff]  ;;  %v1474_v50 = vunpack.c.h.s8.bf16 %v1034_v61 }
 0x374   :  { %v2417_v36 = vsub.f32 %v2401_v5, %v2409_v8  ;;  %v2402_v40 = vmul.f32 0.125, %v2366_v13  ;;  %v2410_v48 = vmul.f32 %v4540_v16, %v4540_v16  ;;  %2213 = vmatpush1.bf16.msra.mxu0 %v1386_v21  ;;  %v1610_v21 = vunpack.c.l.s8.bf16 %v1106_v23  ;;  %v1027_v5 = vld [vmem:[#allocation2 + $0x578] sm:$0xff] }
 0x375   :  { %2254 = vmatpush1.bf16.msra.mxu1 %v1514_v11  ;;  %2214 = vmatprep.subr.bf16.mxu0 %v1379_v37  ;;  %v1475_v11 = vunpack.c.h.s8.bf16 %v1035_v52  ;;  %v1602_v37 = vunpack.c.h.s8.bf16 %v1098_v30  ;;  %v1595_v62 = vunpack.c.l.s8.bf16 %v1099_v4  ;;  %v1091_v8 = vld [vmem:[#allocation2 + $0x778] sm:$0xff]  ;;  %v1451_v39 = vunpack.c.l.s8.bf16 %v1027_v5 }
 0x376   :  { %2255 = vmatprep.subr.bf16.mxu1 %v1507_v14  ;;  %v2425_v31 = vmax.f32 %v2417_v36, 0.0  ;;  %v2418_v45 = vsub.f32 %v2402_v40, %v2410_v48  ;;  %v1467_v14 = vunpack.c.l.s8.bf16 %v1035_v52  ;;  %v1459_v40 = vunpack.c.h.s8.bf16 %v1027_v5 }
 0x377   :  { %v1587_v48 = vunpack.c.h.s8.bf16 %v1091_v8 }
 0x378   :  { %v2474_v42 = vadd.f32 %v2443_v18, %v2425_v31  ;;  %v2426_v43 = vmax.f32 %v2418_v45, 0.0  ;;  %2215 = vmatpush1.bf16.msra.mxu0 %v1378_v35  ;;  %v1466_v18 = vunpack.c.l.s8.bf16 %v1034_v61  ;;  %v1594_v35 = vunpack.c.l.s8.bf16 %v1098_v30 }
 0x379   :  { %2256 = vmatpush1.bf16.msra.mxu1 %v1506_v44  ;;  %2216 = vmatprep.subr.bf16.mxu0 %v1371_v12  ;;  %v1026_v44 = vld [vmem:[#allocation2 + $0x570] sm:$0xff]  ;;  %v4552_v31 = vrot.slane %v2496_v60, %v4353_v32 }
 0x37a   :  { %2257 = vmatprep.subr.bf16.mxu1 %v1499_v28  ;;  %v2475_v63 = vadd.f32 %v2447_v10, %v2426_v43  ;;  %3812 = vrsqrt.f32 %v2474_v42  ;;  %v1090_v12 = vld [vmem:[#allocation2 + $0x770] sm:$0xff]  ;;  %v1458_v10 = vunpack.c.h.s8.bf16 %v1026_v44  ;;  %v1579_v42 = vunpack.c.l.s8.bf16 %v1091_v8 }
 0x37b   :  { %v1586_v56 = vunpack.c.h.s8.bf16 %v1090_v12  ;;  %v1450_v34 = vunpack.c.l.s8.bf16 %v1026_v44  ;;  %v1578_v0 = vunpack.c.l.s8.bf16 %v1090_v12 }
 0x37c   :  { %3814 = vrsqrt.f32 %v2475_v63  ;;  %2217 = vmatpush1.bf16.msra.mxu0 %v1370_v54  ;;  %v1019_v54 = vld [vmem:[#allocation2 + $0x538] sm:$0xff]  ;;  %v1570_v63 = vunpack.c.h.s8.bf16 %v1082_v29 }
 0x37d   :  { %2258 = vmatpush1.bf16.msra.mxu1 %v1498_v47  ;;  %2218 = vmatprep.subr.bf16.mxu0 %v1491_v51  ;;  %v1083_v47 = vld [vmem:[#allocation2 + $0x738] sm:$0xff]  ;;  %v1443_v60 = vunpack.c.h.s8.bf16 %v1019_v54 }
 0x37e   :  { %2259 = vmatprep.subr.bf16.mxu1 %v1619_v22  ;;  %v1571_v51 = vunpack.c.h.s8.bf16 %v1083_v47  ;;  %v1018_v22 = vld [vmem:[#allocation2 + $0x530] sm:$0xff] }
 0x37f   :  { %v1442_v23 = vunpack.c.h.s8.bf16 %v1018_v22 }
 0x380   :  { %2219 = vmatpush2.bf16.msra.mxu0 %v1490_v17  ;;  %v1435_v17 = vunpack.c.l.s8.bf16 %v1019_v54 }
 0x381   :  { %2260 = vmatpush2.bf16.msra.mxu1 %v1618_v24  ;;  %2220 = vmatprep.subr.bf16.mxu0 %v1483_v7  ;;  %v1563_v24 = vunpack.c.l.s8.bf16 %v1083_v47  ;;  %v1434_v7 = vunpack.c.l.s8.bf16 %v1018_v22 }
 0x382   :  { %2261 = vmatprep.subr.bf16.mxu1 %v1611_v27  ;;  %v1562_v27 = vunpack.c.l.s8.bf16 %v1082_v29 }
 0x384   :  { %2221 = vmatpush2.bf16.msra.mxu0 %v1482_v6 }
 0x385   :  { %2262 = vmatpush2.bf16.msra.mxu1 %v1610_v21  ;;  %2222 = vmatprep.subr.bf16.mxu0 %v1475_v11 }
 0x386   :  { %2263 = vmatprep.subr.bf16.mxu1 %v1603_v55 }
 0x387   :  { %v3813_v13 = vpop.eup %3812 }
 0x388   :  { %2223 = vmatpush2.bf16.msra.mxu0 %v1474_v50 }
 0x389   :  { %2264 = vmatpush2.bf16.msra.mxu1 %v1602_v37  ;;  %v3815_v36 = vpop.eup %3814  ;;  %2224 = vmatprep.subr.bf16.mxu0 %v1467_v14 }
 0x38a   :  { %2265 = vmatprep.subr.bf16.mxu1 %v1595_v62  ;;  %v2497_v28 = vcombine.low %v3813_v13, %v3815_v36 }
 0x38c   :  { %v4555_v45 = vrot.slane %v2497_v28, %v4353_v32  ;;  %2225 = vmatpush2.bf16.msra.mxu0 %v1466_v18 }
 0x38d   :  { %2266 = vmatpush2.bf16.msra.mxu1 %v1594_v35  ;;  %2226 = vmatprep.subr.bf16.mxu0 %v1459_v40 }
 0x38e   :  { %2267 = vmatprep.subr.bf16.mxu1 %v1587_v48  ;;  %v2528_v43 = vcombine.low %v4552_v31, %v4555_v45 }
 0x390   :  { %2227 = vmatpush2.bf16.msra.mxu0 %v1458_v10 }
 0x391   :  { %2268 = vmatpush2.bf16.msra.mxu1 %v1586_v56  ;;  %2228 = vmatprep.subr.bf16.mxu0 %v1451_v39 }
 0x392   :  { %2269 = vmatprep.subr.bf16.mxu1 %v1579_v42 }
 0x394   :  { %2229 = vmatpush2.bf16.msra.mxu0 %v1450_v34 }
 0x395   :  { %2270 = vmatpush2.bf16.msra.mxu1 %v1578_v0  ;;  %2230 = vmatprep.subr.bf16.mxu0 %v1443_v60 }
 0x396   :  { %2271 = vmatprep.subr.bf16.mxu1 %v1571_v51 }
 0x398   :  { %2231 = vmatpush2.bf16.msra.mxu0 %v1442_v23 }
 0x399   :  { %2272 = vmatpush2.bf16.msra.mxu1 %v1570_v63  ;;  %2232 = vmatprep.subr.bf16.mxu0 %v1435_v17 }
 0x39a   :  { %2273 = vmatprep.subr.bf16.mxu1 %v1563_v24 }
 0x39c   :  { %2233 = vmatpush2.bf16.msra.mxu0 %v1434_v7 }
 0x39d   :  { %2274 = vmatpush2.bf16.msra.mxu1 %v1562_v27 }
 0x39f   :  { %v1990_v52 = vpop.f32.mrf.mxu0  ;;  %2235 = vmatmul.mubr.bf16.vlgmr.msra.gmra.mxu0 %v4450_v49 }
 0x3a0   :  { %v2031_v4 = vpop.f32.mrf.mxu1  ;;  %2276 = vmatmul.mubr.bf16.vlgmr.msra.gmra.mxu1 %v4454_v9 }
 0x3a1   :  { %v2032_v6 = vadd.f32 %v2031_v4, %v1990_v52  ;;  %v1992_v21 = vpop.f32.mrf.mxu0 }
 0x3a2   :  { %v2033_v11 = vpop.f32.mrf.mxu1 }
 0x3a3   :  { %v2034_v55 = vadd.f32 %v2033_v11, %v1992_v21  ;;  %v1994_v61 = vpop.f32.mrf.mxu0 }
 0x3a4   :  { %v2035_v30 = vpop.f32.mrf.mxu1 }
 0x3a5   :  { %v1995_v50 = vpop.f32.mrf.mxu0 }
 0x3a6   :  { %v2036_v37 = vpop.f32.mrf.mxu1 }
 0x3df   :  { %v2072_v14 = vpop.f32.mrf.mxu0 }
 0x3e0   :  { %v2113_v62 = vpop.f32.mrf.mxu1  ;;  %v2073_v5 = vadd.f32 %v2072_v14, %v2032_v6  ;;  %v4579_v14 = vld [vmem:[#allocation14] sm:$0xff] }
 0x3e1   :  { %v2074_v8 = vpop.f32.mrf.mxu0 }
 0x3e2   :  { %v2115_v13 = vpop.f32.mrf.mxu1  ;;  %v4561_v18 = vadd.f32 %v2113_v62, %v2073_v5  ;;  %v2075_v35 = vadd.f32 %v2074_v8, %v2034_v55  ;;  %v2451_v62 = vrot.slane %v4579_v14, %v4273_v46 }
 0x3e3   :  { %v2076_v36 = vpop.f32.mrf.mxu0 }
 0x3e4   :  { %v2117_v49 = vpop.f32.mrf.mxu1  ;;  %v2311_v9 = vrot.slane %v4561_v18, 4  ;;  %v2339_v40 = vmul.f32 %v4561_v18, %v4561_v18  ;;  %v4566_v48 = vadd.f32 %v2115_v13, %v2075_v35  ;;  %v2455_v36 = vrot.slane %v4579_v14, %v4320_v15 }
 0x3e5   :  { %v2077_v44 = vpop.f32.mrf.mxu0 }
 0x3e6   :  { %v2118_v12 = vpop.f32.mrf.mxu1  ;;  %v2312_v28 = vadd.f32 %v2311_v9, %v4561_v18  ;;  %v2367_v10 = vrot.slane %v2339_v40, 4  ;;  %v2317_v56 = vrot.slane %v4566_v48, 4  ;;  %v2340_v39 = vmul.f32 %v4566_v48, %v4566_v48 }
 0x3e8   :  { %v2313_v42 = vrot.slane %v2312_v28, 2  ;;  %v2368_v54 = vadd.f32 %v2367_v10, %v2339_v40  ;;  %v2318_v47 = vadd.f32 %v2317_v56, %v4566_v48  ;;  %v2373_v34 = vrot.slane %v2340_v39, 4 }
 0x3ea   :  { %v2314_v0 = vadd.f32 %v2313_v42, %v2312_v28  ;;  %v2369_v60 = vrot.slane %v2368_v54, 2  ;;  %v2319_v51 = vrot.slane %v2318_v47, 2  ;;  %v2374_v22 = vadd.f32 %v2373_v34, %v2340_v39 }
 0x3ec   :  { %v2315_v29 = vrot.slane %v2314_v0, 1  ;;  %v2370_v23 = vadd.f32 %v2369_v60, %v2368_v54  ;;  %v2320_v63 = vadd.f32 %v2319_v51, %v2318_v47  ;;  %v2375_v17 = vrot.slane %v2374_v22, 2 }
 0x3ee   :  { %v2316_v24 = vadd.f32 %v2315_v29, %v2314_v0  ;;  %v2371_v7 = vrot.slane %v2370_v23, 1  ;;  %v2321_v27 = vrot.slane %v2320_v63, 1  ;;  %v2376_v52 = vadd.f32 %v2375_v17, %v2374_v22 }
 0x3f0   :  { %v2372_v4 = vadd.f32 %v2371_v7, %v2370_v23  ;;  %v4573_v6 = vmul.f32 0.125, %v2316_v24  ;;  %v2322_v21 = vadd.f32 %v2321_v27, %v2320_v63  ;;  %v2377_v11 = vrot.slane %v2376_v52, 1 }
 0x3f2   :  { %v2403_v55 = vmul.f32 0.125, %v2372_v4  ;;  %v2411_v61 = vmul.f32 %v4573_v6, %v4573_v6  ;;  %v2378_v30 = vadd.f32 %v2377_v11, %v2376_v52  ;;  %v4577_v50 = vmul.f32 0.125, %v2322_v21 }
 0x3f4   :  { %v2419_v37 = vsub.f32 %v2403_v55, %v2411_v61  ;;  %v2404_v5 = vmul.f32 0.125, %v2378_v30  ;;  %v2412_v8 = vmul.f32 %v4577_v50, %v4577_v50 }
 0x3f6   :  { %v2427_v13 = vmax.f32 %v2419_v37, 0.0  ;;  %v2420_v35 = vsub.f32 %v2404_v5, %v2412_v8 }
 0x3f8   :  { %v2476_v49 = vadd.f32 %v2451_v62, %v2427_v13  ;;  %v2428_v9 = vmax.f32 %v2420_v35, 0.0 }
 0x3fa   :  { %v2477_v40 = vadd.f32 %v2455_v36, %v2428_v9  ;;  %3816 = vrsqrt.f32 %v2476_v49 }
 0x3fc   :  { %3818 = vrsqrt.f32 %v2477_v40 }
 0x407   :  { %v4587_v44 = vpop.eup %3816 }
 0x409   :  { %v4589_v12 = vpop.eup %3818 }
 0x40a   :  { %v2498_v28 = vcombine.low %v4587_v44, %v4589_v12 }
 0x41f   :  { %v2154_v10 = vpop.f32.mrf.mxu0 }
 0x420   :  { %v2195_v56 = vpop.f32.mrf.mxu1 }
 0x421   :  { %v2196_v39 = vadd.f32 %v2195_v56, %v2154_v10  ;;  %v2156_v42 = vpop.f32.mrf.mxu0 }
 0x422   :  { %v2197_v54 = vpop.f32.mrf.mxu1 }
 0x423   :  { %v2198_v47 = vadd.f32 %v2197_v54, %v2156_v42  ;;  %v2158_v34 = vpop.f32.mrf.mxu0 }
 0x424   :  { %v2199_v0 = vpop.f32.mrf.mxu1 }
 0x425   :  { %v2159_v60 = vpop.f32.mrf.mxu0 }
 0x426   :  { %v2200_v51 = vpop.f32.mrf.mxu1 }
 0x45f   :  { %v2236_v22 = vpop.f32.mrf.mxu0 }
 0x460   :  { %v2277_v29 = vpop.f32.mrf.mxu1  ;;  %v2237_v23 = vadd.f32 %v2236_v22, %v2196_v39 }
 0x461   :  { %v2238_v63 = vpop.f32.mrf.mxu0 }
 0x462   :  { %v2279_v17 = vpop.f32.mrf.mxu1  ;;  %v4593_v24 = vadd.f32 %v2277_v29, %v2237_v23  ;;  %v2239_v7 = vadd.f32 %v2238_v63, %v2198_v47 }
 0x463   :  { %v2240_v27 = vpop.f32.mrf.mxu0 }
 0x464   :  { %v2281_v52 = vpop.f32.mrf.mxu1  ;;  %v2323_v4 = vrot.slane %v4593_v24, 4  ;;  %v2341_v21 = vmul.f32 %v4593_v24, %v4593_v24  ;;  %v4598_v11 = vadd.f32 %v2279_v17, %v2239_v7 }
 0x465   :  { %v2241_v55 = vpop.f32.mrf.mxu0 }
 0x466   :  { %v2282_v61 = vpop.f32.mrf.mxu1  ;;  %v2324_v30 = vadd.f32 %v2323_v4, %v4593_v24  ;;  %v2379_v37 = vrot.slane %v2341_v21, 4  ;;  %v2329_v62 = vrot.slane %v4598_v11, 4  ;;  %v2342_v5 = vmul.f32 %v4598_v11, %v4598_v11 }
 0x467   :  { %v2459_v4 = vrot.slane %v4579_v14, %v4315_v33 }
 0x468   :  { %v2325_v8 = vrot.slane %v2324_v30, 2  ;;  %v2380_v13 = vadd.f32 %v2379_v37, %v2341_v21  ;;  %v2330_v35 = vadd.f32 %v2329_v62, %v4598_v11  ;;  %v2385_v36 = vrot.slane %v2342_v5, 4 }
 0x469   :  { %v2463_v37 = vrot.slane %v4579_v14, %v4343_v58  ;;  %v2536_v14 = vrot.slane %v2528_v43, %v4353_v32 }
 0x46a   :  { %v2326_v49 = vadd.f32 %v2325_v8, %v2324_v30  ;;  %v2381_v9 = vrot.slane %v2380_v13, 2  ;;  %v2331_v40 = vrot.slane %v2330_v35, 2  ;;  %v2386_v10 = vadd.f32 %v2385_v36, %v2342_v5 }
 0x46c   :  { %v2327_v56 = vrot.slane %v2326_v49, 1  ;;  %v2382_v39 = vadd.f32 %v2381_v9, %v2380_v13  ;;  %v2332_v42 = vadd.f32 %v2331_v40, %v2330_v35  ;;  %v2387_v54 = vrot.slane %v2386_v10, 2 }
 0x46e   :  { %v2328_v47 = vadd.f32 %v2327_v56, %v2326_v49  ;;  %v2383_v34 = vrot.slane %v2382_v39, 1  ;;  %v2333_v0 = vrot.slane %v2332_v42, 1  ;;  %v2388_v60 = vadd.f32 %v2387_v54, %v2386_v10  ;;  %v2284_v56 = vld [vmem:[%s4803_s6] sm:$0xff] }
 0x46f   :  { %v2520_v49 = vrot.slane %v2498_v28, %v4353_v32 }
 0x470   :  { %v2384_v51 = vadd.f32 %v2383_v34, %v2382_v39  ;;  %v2397_v22 = vmul.f32 0.125, %v2328_v47  ;;  %v2334_v29 = vadd.f32 %v2333_v0, %v2332_v42  ;;  %v2389_v23 = vrot.slane %v2388_v60, 1 }
 0x472   :  { %v2405_v63 = vmul.f32 0.125, %v2384_v51  ;;  %v2413_v17 = vmul.f32 %v2397_v22, %v2397_v22  ;;  %v2390_v7 = vadd.f32 %v2389_v23, %v2388_v60  ;;  %v2398_v27 = vmul.f32 0.125, %v2334_v29 }
 0x474   :  { %v2421_v52 = vsub.f32 %v2405_v63, %v2413_v17  ;;  %v2406_v21 = vmul.f32 0.125, %v2390_v7  ;;  %v2414_v55 = vmul.f32 %v2398_v27, %v2398_v27 }
 0x476   :  { %v2429_v61 = vmax.f32 %v2421_v52, 0.0  ;;  %v2422_v30 = vsub.f32 %v2406_v21, %v2414_v55 }
 0x478   :  { %v2478_v62 = vadd.f32 %v2459_v4, %v2429_v61  ;;  %v2430_v5 = vmax.f32 %v2422_v30, 0.0 }
 0x47a   :  { %v2479_v8 = vadd.f32 %v2463_v37, %v2430_v5  ;;  %3820 = vrsqrt.f32 %v2478_v62  ;;  %v2285_v62 = vld [vmem:[#allocation13] sm:$0xff] }
 0x47c   :  { %3822 = vrsqrt.f32 %v2479_v8 }
 0x487   :  { %v3821_v13 = vpop.eup %3820 }
 0x489   :  { %v3823_v35 = vpop.eup %3822 }
 0x48a   :  { %v2499_v36 = vcombine.low %v3821_v13, %v3823_v35 }
 0x48c   :  { %v2527_v9 = vrot.slane %v2499_v36, %v4353_v32 }
 0x48e   :  { %v2529_v40 = vcombine.low %v2520_v49, %v2527_v9 }
 0x490   :  { %v2543_v10 = vrot.slane %v2529_v40, %v4353_v32 }
 0x492   :  { %v2544_v39 = vcombine.low %v2536_v14, %v2543_v10 }
 0x494   :  { %v2546_v42 = vmul.f32 %v2544_v39, %v2284_v56 }
 0x496   :  { %v2551_v54 = vrot.slane %v2546_v42, %v4217_v26  ;;  %v2555_v44 = vrot.slane %v2546_v42, %v4244_v3  ;;  %v2559_v12 = vrot.slane %v2546_v42, %v4241_v2  ;;  %v2563_v28 = vrot.slane %v2546_v42, %v4253_v20 }
 0x497   :  { %v2567_v47 = vrot.slane %v2546_v42, %v4273_v46  ;;  %v2571_v31 = vrot.slane %v2546_v42, %v4320_v15  ;;  %v2575_v45 = vrot.slane %v2546_v42, %v4315_v33  ;;  %v2579_v43 = vrot.slane %v2546_v42, %v4343_v58 }
 0x498   :  { %v2588_v34 = vmul.f32 %v2551_v54, %v4492_v53  ;;  %v2589_v0 = vmul.f32 %v2555_v44, %v4496_v59  ;;  %v2590_v60 = vmul.f32 %v2559_v12, %v4536_v41  ;;  %v2591_v51 = vmul.f32 %v2563_v28, %v4540_v16 }
 0x499   :  { %v2592_v29 = vmul.f32 %v2567_v47, %v4573_v6  ;;  %v2593_v23 = vmul.f32 %v2571_v31, %v4577_v50  ;;  %v2594_v63 = vmul.f32 %v2575_v45, %v2397_v22  ;;  %v2595_v17 = vmul.f32 %v2579_v43, %v2398_v27 }
 0x49a   :  { %v2604_v7 = vcombine.low %v2588_v34, %v2589_v0  ;;  %v2605_v52 = vcombine.low %v2590_v60, %v2591_v51  ;;  %v2655_v4 = vmul.f32 %v2551_v54, %v4475_v19  ;;  %v2656_v21 = vmul.f32 %v2555_v44, %v4483_v38 }
 0x49b   :  { %v2606_v55 = vcombine.low %v2592_v29, %v2593_v23  ;;  %v2607_v53 = vcombine.low %v2594_v63, %v2595_v17  ;;  %v2657_v59 = vmul.f32 %v2559_v12, %v4521_v25  ;;  %v2658_v41 = vmul.f32 %v2563_v28, %v4529_v57 }
 0x49c   :  { %v2614_v16 = vrot.slane %v2604_v7, %v4353_v32  ;;  %v2621_v6 = vrot.slane %v2605_v52, %v4353_v32  ;;  %v2659_v50 = vmul.f32 %v2567_v47, %v4561_v18  ;;  %v2660_v22 = vmul.f32 %v2571_v31, %v4566_v48 }
 0x49d   :  { %v2628_v27 = vrot.slane %v2606_v55, %v4353_v32  ;;  %v2635_v19 = vrot.slane %v2607_v53, %v4353_v32  ;;  %v2661_v38 = vmul.f32 %v2575_v45, %v4593_v24  ;;  %v2662_v61 = vmul.f32 %v2579_v43, %v4598_v11 }
 0x49e   :  { %v2636_v30 = vcombine.low %v2614_v16, %v2621_v6 }
 0x49f   :  { %v2637_v25 = vcombine.low %v2628_v27, %v2635_v19 }
 0x4a0   :  { %v2644_v57 = vrot.slane %v2636_v30, %v4353_v32 }
 0x4a1   :  { %v2651_v37 = vrot.slane %v2637_v25, %v4353_v32 }
 0x4a3   :  { %v2652_v5 = vcombine.low %v2644_v57, %v2651_v37 }
 0x4a5   :  { %v2654_v8 = vsub.f32 %v2285_v62, %v2652_v5 }
 0x4a7   :  { %v2667_v18 = vrot.slane %v2654_v8, %v4217_v26  ;;  %v2671_v48 = vrot.slane %v2654_v8, %v4244_v3  ;;  %v2675_v13 = vrot.slane %v2654_v8, %v4241_v2  ;;  %v2679_v35 = vrot.slane %v2654_v8, %v4253_v20 }
 0x4a8   :  { %v2683_v24 = vrot.slane %v2654_v8, %v4273_v46  ;;  %v2687_v11 = vrot.slane %v2654_v8, %v4320_v15  ;;  %v2691_v36 = vrot.slane %v2654_v8, %v4315_v33  ;;  %v2695_v49 = vrot.slane %v2654_v8, %v4343_v58 }
 0x4a9   :  { %v2704_v9 = vadd.f32 %v2667_v18, %v2655_v4  ;;  %v2705_v40 = vadd.f32 %v2671_v48, %v2656_v21  ;;  %v2706_v14 = vadd.f32 %v2675_v13, %v2657_v59  ;;  %v2707_v10 = vadd.f32 %v2679_v35, %v2658_v41 }
 0x4aa   :  { %v2708_v56 = vadd.f32 %v2683_v24, %v2659_v50  ;;  %v2709_v39 = vadd.f32 %v2687_v11, %v2660_v22  ;;  %v2710_v42 = vadd.f32 %v2691_v36, %v2661_v38  ;;  %v2711_v54 = vadd.f32 %v2695_v49, %v2662_v61 }
 0x4ab   :  { %vm2712_vm9 = vcmp.gt.f32.partialorder %v2704_v9, 0.0  ;;  %vm2713_vm10 = vcmp.gt.f32.partialorder %v2705_v40, 0.0  ;;  %vm2714_vm11 = vcmp.gt.f32.partialorder %v2706_v14, 0.0  ;;  %vm2715_vm12 = vcmp.gt.f32.partialorder %v2707_v10, 0.0 }
 0x4ac   :  { %vm2716_vm13 = vcmp.gt.f32.partialorder %v2708_v56, 0.0  ;;  %vm2717_vm14 = vcmp.gt.f32.partialorder %v2709_v39, 0.0  ;;  %vm2718_vm15 = vcmp.gt.f32.partialorder %v2710_v42, 0.0  ;;  %vm2719_vm0 = vcmp.gt.f32.partialorder %v2711_v54, 0.0 }
 0x4ad   :  { %v2720_v46 = vmul.f32 0.2, %v2704_v9  ;;  %v2721_v33 = vmul.f32 0.2, %v2705_v40  ;;  %v2722_v15 = vmul.f32 0.2, %v2706_v14 }
 0x4ae   :  { %v2723_v58 = vmul.f32 0.2, %v2707_v10  ;;  %v2724_v44 = vmul.f32 0.2, %v2708_v56  ;;  %v2725_v12 = vmul.f32 0.2, %v2709_v39 }
 0x4af   :  { %v2726_v28 = vmul.f32 0.2, %v2710_v42  ;;  %v2727_v47 = vmul.f32 0.2, %v2711_v54  ;;  %v4659_v31 = vsel %vm2712_vm9, %v2704_v9, %v2720_v46  ;;  %v2729_v45 = vsel %vm2713_vm10, %v2705_v40, %v2721_v33 }
 0x4b0   :  { %v4663_v43 = vsel %vm2714_vm11, %v2706_v14, %v2722_v15  ;;  %v2731_v34 = vsel %vm2715_vm12, %v2707_v10, %v2723_v58  ;;  %v4667_v0 = vsel %vm2716_vm13, %v2708_v56, %v2724_v44  ;;  %v4670_v60 = vsel %vm2717_vm14, %v2709_v39, %v2725_v12 }
 0x4b1   :  { %v4673_v51 = vsel %vm2718_vm15, %v2710_v42, %v2726_v28  ;;  %v4676_v29 = vsel %vm2719_vm0, %v2711_v54, %v2727_v47 }
 0x4b2   :  { %4070 = dma.done.wait [#allocation4 + $0x1], 16384 }
 0x4b3   :  { %4071 = vsyncadd [#allocation4 + $0x1], 4294950912  ;;  %v4678_v23 = vpack.c.bf16 %v2729_v45, %v2729_v45  ;;  %v4680_v63 = vpack.c.bf16 %v2731_v34, %v2731_v34  ;;  %3825 = vset.pattern.permute.xlu0 %v4083_v1  ;;  %v2752_v17 = vld [vmem:[#allocation3 + $0x68] sm:$0xff]  ;;  %v2751_v52 = vld [vmem:[#allocation3 + $0x60] sm:$0xff] }
 0x4b4   :  { %v2784_v7 = vld [vmem:[#allocation3 + $0x168] sm:$0xff]  ;;  %v2892_v4 = vunpack.c.l.s8.bf16 %v2752_v17  ;;  %v2896_v21 = vunpack.c.h.s8.bf16 %v2752_v17  ;;  %v2783_v59 = vld [vmem:[#allocation3 + $0x160] sm:$0xff]  ;;  %v2895_v41 = vunpack.c.h.s8.bf16 %v2751_v52  ;;  %v2891_v22 = vunpack.c.l.s8.bf16 %v2751_v52 }
 0x4b5   :  { %3163 = vmatprep.mubr.bf16.mxu0 %v4678_v23  ;;  %3204 = vmatprep.mubr.bf16.mxu1 %v4680_v63  ;;  %v2956_v55 = vunpack.c.l.s8.bf16 %v2784_v7  ;;  %v2960_v53 = vunpack.c.h.s8.bf16 %v2784_v7  ;;  %v2959_v16 = vunpack.c.h.s8.bf16 %v2783_v59  ;;  %v2748_v6 = vld [vmem:[#allocation3 + $0x48] sm:$0xff]  ;;  %v2955_v1 = vunpack.c.l.s8.bf16 %v2783_v59  ;;  %v2747_v38 = vld [vmem:[#allocation3 + $0x40] sm:$0xff] }
 0x4b6   :  { %v2780_v50 = vld [vmem:[#allocation3 + $0x148] sm:$0xff]  ;;  %3131 = vmatprep.subr.bf16.mxu0 %v2896_v21  ;;  %v2888_v27 = vunpack.c.h.s8.bf16 %v2748_v6  ;;  %v2779_v61 = vld [vmem:[#allocation3 + $0x140] sm:$0xff]  ;;  %v2887_v30 = vunpack.c.h.s8.bf16 %v2747_v38  ;;  %v2884_v57 = vunpack.c.l.s8.bf16 %v2748_v6  ;;  %v2883_v8 = vunpack.c.l.s8.bf16 %v2747_v38 }
 0x4b7   :  { %3172 = vmatprep.subr.bf16.mxu1 %v2960_v53  ;;  %3132 = vmatpush1.bf16.msra.mxu0 %v2895_v41  ;;  %v2952_v19 = vunpack.c.h.s8.bf16 %v2780_v50  ;;  %v2951_v25 = vunpack.c.h.s8.bf16 %v2779_v61  ;;  %v2948_v37 = vunpack.c.l.s8.bf16 %v2780_v50  ;;  %v2744_v62 = vld [vmem:[#allocation3 + $0x28] sm:$0xff]  ;;  %v2947_v18 = vunpack.c.l.s8.bf16 %v2779_v61  ;;  %v2743_v35 = vld [vmem:[#allocation3 + $0x20] sm:$0xff] }
 0x4b8   :  { %3173 = vmatpush1.bf16.msra.mxu1 %v2959_v16  ;;  %3133 = vmatprep.subr.bf16.mxu0 %v2892_v4  ;;  %v2776_v5 = vld [vmem:[#allocation3 + $0x128] sm:$0xff]  ;;  %v2880_v48 = vunpack.c.h.s8.bf16 %v2744_v62  ;;  %v2775_v24 = vld [vmem:[#allocation3 + $0x120] sm:$0xff]  ;;  %v2879_v11 = vunpack.c.h.s8.bf16 %v2743_v35  ;;  %v2876_v49 = vunpack.c.l.s8.bf16 %v2744_v62  ;;  %v2875_v10 = vunpack.c.l.s8.bf16 %v2743_v35 }
 0x4b9   :  { %3174 = vmatprep.subr.bf16.mxu1 %v2956_v55  ;;  %v2944_v13 = vunpack.c.h.s8.bf16 %v2776_v5  ;;  %v2943_v36 = vunpack.c.h.s8.bf16 %v2775_v24  ;;  %v2940_v9 = vunpack.c.l.s8.bf16 %v2776_v5  ;;  %v2740_v40 = vld [vmem:[#allocation3 + $0x8] sm:$0xff]  ;;  %v2939_v56 = vunpack.c.l.s8.bf16 %v2775_v24  ;;  %v2739_v54 = vld [vmem:[#allocation3] sm:$0xff] }
 0x4ba   :  { %v2772_v14 = vld [vmem:[#allocation3 + $0x108] sm:$0xff]  ;;  %v2872_v39 = vunpack.c.h.s8.bf16 %v2740_v40  ;;  %v2771_v46 = vld [vmem:[#allocation3 + $0x100] sm:$0xff]  ;;  %v2871_v33 = vunpack.c.h.s8.bf16 %v2739_v54  ;;  %v2868_v58 = vunpack.c.l.s8.bf16 %v2740_v40  ;;  %v2867_v47 = vunpack.c.l.s8.bf16 %v2739_v54 }
 0x4bb   :  { %3134 = vmatpush1.bf16.msra.mxu0 %v2891_v22  ;;  %v2936_v42 = vunpack.c.h.s8.bf16 %v2772_v14  ;;  %v2935_v15 = vunpack.c.h.s8.bf16 %v2771_v46  ;;  %v2932_v44 = vunpack.c.l.s8.bf16 %v2772_v14  ;;  %v2768_v12 = vld [vmem:[#allocation3 + $0xe8] sm:$0xff]  ;;  %v2931_v45 = vunpack.c.l.s8.bf16 %v2771_v46  ;;  %v2767_v7 = vld [vmem:[#allocation3 + $0xe0] sm:$0xff] }
 0x4bc   :  { %3175 = vmatpush1.bf16.msra.mxu1 %v2955_v1  ;;  %3135 = vmatprep.subr.bf16.mxu0 %v2888_v27  ;;  %v2800_v28 = vld [vmem:[#allocation3 + $0x1e8] sm:$0xff]  ;;  %v2928_v34 = vunpack.c.h.s8.bf16 %v2768_v12  ;;  %v2799_v52 = vld [vmem:[#allocation3 + $0x1e0] sm:$0xff]  ;;  %v2927_v4 = vunpack.c.h.s8.bf16 %v2767_v7  ;;  %v2924_v55 = vunpack.c.l.s8.bf16 %v2768_v12  ;;  %v2923_v16 = vunpack.c.l.s8.bf16 %v2767_v7 }
 0x4bd   :  { %3176 = vmatprep.subr.bf16.mxu1 %v2952_v19  ;;  %v2992_v17 = vunpack.c.h.s8.bf16 %v2800_v28  ;;  %v2991_v21 = vunpack.c.h.s8.bf16 %v2799_v52  ;;  %v2988_v53 = vunpack.c.l.s8.bf16 %v2800_v28  ;;  %v2764_v59 = vld [vmem:[#allocation3 + $0xc8] sm:$0xff]  ;;  %v2987_v6 = vunpack.c.l.s8.bf16 %v2799_v52  ;;  %v2763_v1 = vld [vmem:[#allocation3 + $0xc0] sm:$0xff] }
 0x4be   :  { %v2796_v41 = vld [vmem:[#allocation3 + $0x1c8] sm:$0xff]  ;;  %v2920_v50 = vunpack.c.h.s8.bf16 %v2764_v59  ;;  %v2795_v27 = vld [vmem:[#allocation3 + $0x1c0] sm:$0xff]  ;;  %v2919_v19 = vunpack.c.h.s8.bf16 %v2763_v1  ;;  %v2916_v61 = vunpack.c.l.s8.bf16 %v2764_v59  ;;  %v4691_v7 = vpack.c.bf16 %v4663_v43, %v4663_v43 }
 0x4bf   :  { %3136 = vmatpush1.bf16.msra.mxu0 %v2887_v30  ;;  %v2984_v22 = vunpack.c.h.s8.bf16 %v2796_v41  ;;  %v2983_v38 = vunpack.c.h.s8.bf16 %v2795_v27  ;;  %v2980_v30 = vunpack.c.l.s8.bf16 %v2796_v41  ;;  %v2979_v62 = vunpack.c.l.s8.bf16 %v2795_v27  ;;  %v2844_v59 = vld [vmem:[#allocation3 + $0x348] sm:$0xff] }
 0x4c0   :  { %3177 = vmatpush1.bf16.msra.mxu1 %v2951_v25  ;;  %3137 = vmatprep.subr.bf16.mxu0 %v2884_v57  ;;  %v2760_v25 = vld [vmem:[#allocation3 + $0xa8] sm:$0xff]  ;;  %v4695_v41 = vpack.c.bf16 %v4670_v60, %v4670_v60 }
 0x4c1   :  { %3178 = vmatprep.subr.bf16.mxu1 %v2948_v37  ;;  %v2792_v57 = vld [vmem:[#allocation3 + $0x1a8] sm:$0xff]  ;;  %v2915_v37 = vunpack.c.l.s8.bf16 %v2763_v1  ;;  %v2912_v5 = vunpack.c.h.s8.bf16 %v2760_v25  ;;  %v2908_v24 = vunpack.c.l.s8.bf16 %v2760_v25  ;;  %v2843_v1 = vld [vmem:[#allocation3 + $0x340] sm:$0xff] }
 0x4c2   :  { %v3075_v25 = vunpack.c.l.s8.bf16 %v2843_v1 }
 0x4c3   :  { %3138 = vmatpush1.bf16.msra.mxu0 %v2883_v8  ;;  %v2976_v8 = vunpack.c.h.s8.bf16 %v2792_v57 }
 0x4c4   :  { %3179 = vmatpush1.bf16.msra.mxu1 %v2947_v18  ;;  %3139 = vmatprep.subr.bf16.mxu0 %v2880_v48  ;;  %v2759_v18 = vld [vmem:[#allocation3 + $0xa0] sm:$0xff] }
 0x4c5   :  { %3180 = vmatprep.subr.bf16.mxu1 %v2944_v13  ;;  %v2791_v48 = vld [vmem:[#allocation3 + $0x1a0] sm:$0xff]  ;;  %v2911_v13 = vunpack.c.h.s8.bf16 %v2759_v18 }
 0x4c6   :  { %v2975_v35 = vunpack.c.h.s8.bf16 %v2791_v48  ;;  %v2971_v40 = vunpack.c.l.s8.bf16 %v2791_v48 }
 0x4c7   :  { %3140 = vmatpush1.bf16.msra.mxu0 %v2879_v11  ;;  %v2972_v11 = vunpack.c.l.s8.bf16 %v2792_v57 }
 0x4c8   :  { %3181 = vmatpush1.bf16.msra.mxu1 %v2943_v36  ;;  %3141 = vmatprep.subr.bf16.mxu0 %v2876_v49  ;;  %v2756_v36 = vld [vmem:[#allocation3 + $0x88] sm:$0xff] }
 0x4c9   :  { %3182 = vmatprep.subr.bf16.mxu1 %v2940_v9  ;;  %v2788_v49 = vld [vmem:[#allocation3 + $0x188] sm:$0xff]  ;;  %v2907_v9 = vunpack.c.l.s8.bf16 %v2759_v18  ;;  %v2904_v14 = vunpack.c.h.s8.bf16 %v2756_v36  ;;  %v2900_v46 = vunpack.c.l.s8.bf16 %v2756_v36 }
 0x4cb   :  { %3142 = vmatpush1.bf16.msra.mxu0 %v2875_v10  ;;  %v2968_v10 = vunpack.c.h.s8.bf16 %v2788_v49 }
 0x4cc   :  { %3183 = vmatpush1.bf16.msra.mxu1 %v2939_v56  ;;  %3143 = vmatprep.subr.bf16.mxu0 %v2872_v39  ;;  %v2755_v56 = vld [vmem:[#allocation3 + $0x80] sm:$0xff] }
 0x4cd   :  { %3184 = vmatprep.subr.bf16.mxu1 %v2936_v42  ;;  %v2787_v39 = vld [vmem:[#allocation3 + $0x180] sm:$0xff]  ;;  %v2903_v42 = vunpack.c.h.s8.bf16 %v2755_v56 }
 0x4ce   :  { %v2967_v54 = vunpack.c.h.s8.bf16 %v2787_v39  ;;  %v2963_v12 = vunpack.c.l.s8.bf16 %v2787_v39 }
 0x4cf   :  { %3144 = vmatpush1.bf16.msra.mxu0 %v2871_v33  ;;  %v2964_v33 = vunpack.c.l.s8.bf16 %v2788_v49 }
 0x4d0   :  { %3185 = vmatpush1.bf16.msra.mxu1 %v2935_v15  ;;  %3145 = vmatprep.subr.bf16.mxu0 %v2868_v58  ;;  %v2816_v15 = vld [vmem:[#allocation3 + $0x268] sm:$0xff] }
 0x4d1   :  { %3186 = vmatprep.subr.bf16.mxu1 %v2932_v44  ;;  %v2848_v58 = vld [vmem:[#allocation3 + $0x368] sm:$0xff]  ;;  %v2899_v44 = vunpack.c.l.s8.bf16 %v2755_v56  ;;  %v3024_v28 = vunpack.c.h.s8.bf16 %v2816_v15 }
 0x4d3   :  { %3146 = vmatpush1.bf16.msra.mxu0 %v2867_v47  ;;  %v3088_v47 = vunpack.c.h.s8.bf16 %v2848_v58 }
 0x4d4   :  { %3187 = vmatpush1.bf16.msra.mxu1 %v2931_v45  ;;  %3147 = vmatprep.subr.bf16.mxu0 %v2928_v34  ;;  %v2815_v45 = vld [vmem:[#allocation3 + $0x260] sm:$0xff] }
 0x4d5   :  { %3188 = vmatprep.subr.bf16.mxu1 %v2992_v17  ;;  %v2847_v34 = vld [vmem:[#allocation3 + $0x360] sm:$0xff]  ;;  %v4687_v17 = vpack.c.bf16 %v4659_v31, %v4659_v31  ;;  %v3023_v52 = vunpack.c.h.s8.bf16 %v2815_v45  ;;  %v4699_v31 = vpack.c.bf16 %v4676_v29, %v4676_v29  ;;  %v3019_v43 = vunpack.c.l.s8.bf16 %v2815_v45 }
 0x4d6   :  { %v3079_v29 = vunpack.c.h.s8.bf16 %v2843_v1 }
 0x4d7   :  { %3148 = vmatpush2.bf16.msra.mxu0 %v2927_v4  ;;  %v3087_v4 = vunpack.c.h.s8.bf16 %v2847_v34 }
 0x4d8   :  { %3189 = vmatpush2.bf16.msra.mxu1 %v2991_v21  ;;  %3149 = vmatprep.subr.bf16.mxu0 %v2924_v55  ;;  %v3020_v21 = vunpack.c.l.s8.bf16 %v2816_v15  ;;  %v3084_v55 = vunpack.c.l.s8.bf16 %v2848_v58 }
 0x4d9   :  { %3190 = vmatprep.subr.bf16.mxu1 %v2988_v53  ;;  %v2812_v53 = vld [vmem:[#allocation3 + $0x248] sm:$0xff] }
 0x4da   :  { %v3012_v27 = vunpack.c.l.s8.bf16 %v2812_v53 }
 0x4db   :  { %3150 = vmatpush2.bf16.msra.mxu0 %v2923_v16  ;;  %v3083_v16 = vunpack.c.l.s8.bf16 %v2847_v34 }
 0x4dc   :  { %3191 = vmatpush2.bf16.msra.mxu1 %v2987_v6  ;;  %3151 = vmatprep.subr.bf16.mxu0 %v2920_v50  ;;  %v3016_v6 = vunpack.c.h.s8.bf16 %v2812_v53  ;;  %v3080_v50 = vunpack.c.h.s8.bf16 %v2844_v59 }
 0x4dd   :  { %3192 = vmatprep.subr.bf16.mxu1 %v2984_v22  ;;  %v2811_v22 = vld [vmem:[#allocation3 + $0x240] sm:$0xff] }
 0x4de   :  { %v3015_v60 = vunpack.c.h.s8.bf16 %v2811_v22 }
 0x4df   :  { %3152 = vmatpush2.bf16.msra.mxu0 %v2919_v19  ;;  %v3076_v19 = vunpack.c.l.s8.bf16 %v2844_v59 }
 0x4e0   :  { %3193 = vmatpush2.bf16.msra.mxu1 %v2983_v38  ;;  %3153 = vmatprep.subr.bf16.mxu0 %v2916_v61  ;;  %v2808_v38 = vld [vmem:[#allocation3 + $0x228] sm:$0xff] }
 0x4e1   :  { %3194 = vmatprep.subr.bf16.mxu1 %v2980_v30  ;;  %v2840_v61 = vld [vmem:[#allocation3 + $0x328] sm:$0xff]  ;;  %v3011_v30 = vunpack.c.l.s8.bf16 %v2811_v22  ;;  %v3008_v57 = vunpack.c.h.s8.bf16 %v2808_v38  ;;  %v3004_v48 = vunpack.c.l.s8.bf16 %v2808_v38 }
 0x4e3   :  { %3154 = vmatpush2.bf16.msra.mxu0 %v2915_v37  ;;  %v3072_v37 = vunpack.c.h.s8.bf16 %v2840_v61 }
 0x4e4   :  { %3195 = vmatpush2.bf16.msra.mxu1 %v2979_v62  ;;  %3155 = vmatprep.subr.bf16.mxu0 %v2912_v5  ;;  %v2807_v62 = vld [vmem:[#allocation3 + $0x220] sm:$0xff] }
 0x4e5   :  { %3196 = vmatprep.subr.bf16.mxu1 %v2976_v8  ;;  %v2839_v5 = vld [vmem:[#allocation3 + $0x320] sm:$0xff]  ;;  %v3007_v8 = vunpack.c.h.s8.bf16 %v2807_v62 }
 0x4e6   :  { %v3071_v18 = vunpack.c.h.s8.bf16 %v2839_v5  ;;  %v3067_v36 = vunpack.c.l.s8.bf16 %v2839_v5 }
 0x4e7   :  { %3156 = vmatpush2.bf16.msra.mxu0 %v2911_v13  ;;  %v3068_v13 = vunpack.c.l.s8.bf16 %v2840_v61 }
 0x4e8   :  { %3197 = vmatpush2.bf16.msra.mxu1 %v2975_v35  ;;  %3157 = vmatprep.subr.bf16.mxu0 %v2908_v24  ;;  %v2804_v35 = vld [vmem:[#allocation3 + $0x208] sm:$0xff] }
 0x4e9   :  { %3198 = vmatprep.subr.bf16.mxu1 %v2972_v11  ;;  %v2836_v24 = vld [vmem:[#allocation3 + $0x308] sm:$0xff]  ;;  %v3003_v11 = vunpack.c.l.s8.bf16 %v2807_v62  ;;  %v3000_v49 = vunpack.c.h.s8.bf16 %v2804_v35  ;;  %v2996_v39 = vunpack.c.l.s8.bf16 %v2804_v35 }
 0x4eb   :  { %3158 = vmatpush2.bf16.msra.mxu0 %v2907_v9  ;;  %v3064_v9 = vunpack.c.h.s8.bf16 %v2836_v24 }
 0x4ec   :  { %3199 = vmatpush2.bf16.msra.mxu1 %v2971_v40  ;;  %3159 = vmatprep.subr.bf16.mxu0 %v2904_v14  ;;  %v2803_v40 = vld [vmem:[#allocation3 + $0x200] sm:$0xff] }
 0x4ed   :  { %3200 = vmatprep.subr.bf16.mxu1 %v2968_v10  ;;  %v2835_v14 = vld [vmem:[#allocation3 + $0x300] sm:$0xff]  ;;  %v2999_v10 = vunpack.c.h.s8.bf16 %v2803_v40 }
 0x4ee   :  { %v3063_v56 = vunpack.c.h.s8.bf16 %v2835_v14  ;;  %v3059_v15 = vunpack.c.l.s8.bf16 %v2835_v14 }
 0x4ef   :  { %3160 = vmatpush2.bf16.msra.mxu0 %v2903_v42  ;;  %v3060_v42 = vunpack.c.l.s8.bf16 %v2836_v24 }
 0x4f0   :  { %3201 = vmatpush2.bf16.msra.mxu1 %v2967_v54  ;;  %3161 = vmatprep.subr.bf16.mxu0 %v2900_v46  ;;  %v2832_v54 = vld [vmem:[#allocation3 + $0x2e8] sm:$0xff] }
 0x4f1   :  { %3202 = vmatprep.subr.bf16.mxu1 %v2964_v33  ;;  %v2864_v46 = vld [vmem:[#allocation3 + $0x3e8] sm:$0xff]  ;;  %v2995_v33 = vunpack.c.l.s8.bf16 %v2803_v40  ;;  %v3056_v58 = vunpack.c.h.s8.bf16 %v2832_v54  ;;  %v3052_v34 = vunpack.c.l.s8.bf16 %v2832_v54 }
 0x4f3   :  { %3162 = vmatpush2.bf16.msra.mxu0 %v2899_v44  ;;  %v3120_v44 = vunpack.c.h.s8.bf16 %v2864_v46 }
 0x4f4   :  { %3203 = vmatpush2.bf16.msra.mxu1 %v2963_v12  ;;  %3213 = vmatprep.subr.bf16.mxu0 %v3024_v28  ;;  %v2831_v12 = vld [vmem:[#allocation3 + $0x2e0] sm:$0xff] }
 0x4f5   :  { %3254 = vmatprep.subr.bf16.mxu1 %v3088_v47  ;;  %v2863_v28 = vld [vmem:[#allocation3 + $0x3e0] sm:$0xff]  ;;  %v3055_v47 = vunpack.c.h.s8.bf16 %v2831_v12 }
 0x4f6   :  { %3164 = vmatmul.mubr.bf16.vlgmr.msra.gmra.mxu0 %v4687_v17  ;;  %v3119_v45 = vunpack.c.h.s8.bf16 %v2863_v28  ;;  %v3115_v53 = vunpack.c.l.s8.bf16 %v2863_v28 }
 0x4f7   :  { %3205 = vmatmul.mubr.bf16.vlgmr.msra.gmra.mxu1 %v4691_v7  ;;  %3214 = vmatpush1.bf16.msra.mxu0 %v3023_v52  ;;  %v3116_v52 = vunpack.c.l.s8.bf16 %v2864_v46 }
 0x4f8   :  { %3255 = vmatpush1.bf16.msra.mxu1 %v3087_v4  ;;  %3215 = vmatprep.subr.bf16.mxu0 %v3020_v21  ;;  %v2828_v4 = vld [vmem:[#allocation3 + $0x2c8] sm:$0xff] }
 0x4f9   :  { %3256 = vmatprep.subr.bf16.mxu1 %v3084_v55  ;;  %3245 = vmatprep.mubr.bf16.mxu0 %v4695_v41  ;;  %v2860_v21 = vld [vmem:[#allocation3 + $0x3c8] sm:$0xff]  ;;  %v3051_v55 = vunpack.c.l.s8.bf16 %v2831_v12  ;;  %v3048_v59 = vunpack.c.h.s8.bf16 %v2828_v4  ;;  %v3044_v1 = vunpack.c.l.s8.bf16 %v2828_v4  ;;  %v4711_v12 = vpack.c.bf16 %v4673_v51, %v4673_v51  ;;  %v2782_v4 = vld [vmem:[#allocation3 + $0x158] sm:$0xff] }
 0x4fa   :  { %3286 = vmatprep.mubr.bf16.mxu1 %v4699_v31 }
 0x4fb   :  { %3216 = vmatpush1.bf16.msra.mxu0 %v3019_v43  ;;  %v3112_v43 = vunpack.c.h.s8.bf16 %v2860_v21 }
 0x4fc   :  { %3257 = vmatpush1.bf16.msra.mxu1 %v3083_v16  ;;  %3217 = vmatprep.subr.bf16.mxu0 %v3016_v6  ;;  %v2827_v16 = vld [vmem:[#allocation3 + $0x2c0] sm:$0xff] }
 0x4fd   :  { %3258 = vmatprep.subr.bf16.mxu1 %v3080_v50  ;;  %v2859_v6 = vld [vmem:[#allocation3 + $0x3c0] sm:$0xff]  ;;  %v3047_v50 = vunpack.c.h.s8.bf16 %v2827_v16 }
 0x4fe   :  { %v3111_v22 = vunpack.c.h.s8.bf16 %v2859_v6  ;;  %v3107_v38 = vunpack.c.l.s8.bf16 %v2859_v6 }
 0x4ff   :  { %3218 = vmatpush1.bf16.msra.mxu0 %v3015_v60  ;;  %v3108_v60 = vunpack.c.l.s8.bf16 %v2860_v21 }
 0x500   :  { %3259 = vmatpush1.bf16.msra.mxu1 %v3079_v29  ;;  %3219 = vmatprep.subr.bf16.mxu0 %v3012_v27  ;;  %v2824_v29 = vld [vmem:[#allocation3 + $0x2a8] sm:$0xff] }
 0x501   :  { %3260 = vmatprep.subr.bf16.mxu1 %v3076_v19  ;;  %v2856_v27 = vld [vmem:[#allocation3 + $0x3a8] sm:$0xff]  ;;  %v3043_v19 = vunpack.c.l.s8.bf16 %v2827_v16  ;;  %v3040_v61 = vunpack.c.h.s8.bf16 %v2824_v29  ;;  %v3036_v5 = vunpack.c.l.s8.bf16 %v2824_v29 }
 0x503   :  { %3220 = vmatpush1.bf16.msra.mxu0 %v3011_v30  ;;  %v3104_v30 = vunpack.c.h.s8.bf16 %v2856_v27 }
 0x504   :  { %3261 = vmatpush1.bf16.msra.mxu1 %v3075_v25  ;;  %3221 = vmatprep.subr.bf16.mxu0 %v3008_v57  ;;  %v2823_v25 = vld [vmem:[#allocation3 + $0x2a0] sm:$0xff] }
 0x505   :  { %3262 = vmatprep.subr.bf16.mxu1 %v3072_v37  ;;  %v2855_v57 = vld [vmem:[#allocation3 + $0x3a0] sm:$0xff]  ;;  %v3039_v37 = vunpack.c.h.s8.bf16 %v2823_v25 }
 0x506   :  { %v3103_v62 = vunpack.c.h.s8.bf16 %v2855_v57  ;;  %v3099_v35 = vunpack.c.l.s8.bf16 %v2855_v57  ;;  %v2742_v57 = vld [vmem:[#allocation3 + $0x18] sm:$0xff] }
 0x507   :  { %3222 = vmatpush1.bf16.msra.mxu0 %v3007_v8  ;;  %v3100_v8 = vunpack.c.l.s8.bf16 %v2856_v27 }
 0x508   :  { %3263 = vmatpush1.bf16.msra.mxu1 %v3071_v18  ;;  %3223 = vmatprep.subr.bf16.mxu0 %v3004_v48  ;;  %v2820_v18 = vld [vmem:[#allocation3 + $0x288] sm:$0xff] }
 0x509   :  { %3264 = vmatprep.subr.bf16.mxu1 %v3068_v13  ;;  %v2852_v48 = vld [vmem:[#allocation3 + $0x388] sm:$0xff]  ;;  %v3035_v13 = vunpack.c.l.s8.bf16 %v2823_v25  ;;  %v3032_v24 = vunpack.c.h.s8.bf16 %v2820_v18  ;;  %v3028_v14 = vunpack.c.l.s8.bf16 %v2820_v18 }
 0x50b   :  { %3224 = vmatpush1.bf16.msra.mxu0 %v3003_v11  ;;  %v3096_v11 = vunpack.c.h.s8.bf16 %v2852_v48 }
 0x50c   :  { %3265 = vmatpush1.bf16.msra.mxu1 %v3067_v36  ;;  %3225 = vmatprep.subr.bf16.mxu0 %v3000_v49  ;;  %v2819_v36 = vld [vmem:[#allocation3 + $0x280] sm:$0xff] }
 0x50d   :  { %3266 = vmatprep.subr.bf16.mxu1 %v3064_v9  ;;  %v2851_v49 = vld [vmem:[#allocation3 + $0x380] sm:$0xff]  ;;  %v3031_v9 = vunpack.c.h.s8.bf16 %v2819_v36 }
 0x50e   :  { %v3095_v40 = vunpack.c.h.s8.bf16 %v2851_v49  ;;  %v3091_v54 = vunpack.c.l.s8.bf16 %v2851_v49  ;;  %v2770_v49 = vld [vmem:[#allocation3 + $0xf8] sm:$0xff] }
 0x50f   :  { %3226 = vmatpush1.bf16.msra.mxu0 %v2999_v10  ;;  %v3092_v10 = vunpack.c.l.s8.bf16 %v2852_v48  ;;  %v2741_v48 = vld [vmem:[#allocation3 + $0x10] sm:$0xff] }
 0x510   :  { %3267 = vmatpush1.bf16.msra.mxu1 %v3063_v56  ;;  %3227 = vmatprep.subr.bf16.mxu0 %v2996_v39  ;;  %v2754_v56 = vld [vmem:[#allocation3 + $0x78] sm:$0xff] }
 0x511   :  { %3268 = vmatprep.subr.bf16.mxu1 %v3060_v42  ;;  %v2786_v39 = vld [vmem:[#allocation3 + $0x178] sm:$0xff]  ;;  %v3027_v42 = vunpack.c.l.s8.bf16 %v2819_v36  ;;  %v2898_v46 = vunpack.c.h.s8.bf16 %v2754_v56 }
 0x513   :  { %3228 = vmatpush1.bf16.msra.mxu0 %v2995_v33  ;;  %v2962_v33 = vunpack.c.h.s8.bf16 %v2786_v39 }
 0x514   :  { %3269 = vmatpush1.bf16.msra.mxu1 %v3059_v15  ;;  %3229 = vmatprep.subr.bf16.mxu0 %v3056_v58  ;;  %v2753_v15 = vld [vmem:[#allocation3 + $0x70] sm:$0xff] }
 0x515   :  { %3270 = vmatprep.subr.bf16.mxu1 %v3120_v44  ;;  %v2785_v58 = vld [vmem:[#allocation3 + $0x170] sm:$0xff]  ;;  %v4707_v44 = vpack.c.bf16 %v4667_v0, %v4667_v0  ;;  %v2897_v28 = vunpack.c.h.s8.bf16 %v2753_v15  ;;  %v2893_v0 = vunpack.c.l.s8.bf16 %v2753_v15 }
 0x516   :  { %v2957_v21 = vunpack.c.l.s8.bf16 %v2785_v58 }
 0x517   :  { %3230 = vmatpush2.bf16.msra.mxu0 %v3055_v47  ;;  %v2961_v47 = vunpack.c.h.s8.bf16 %v2785_v58  ;;  %v2766_v58 = vld [vmem:[#allocation3 + $0xd8] sm:$0xff] }
 0x518   :  { %3271 = vmatpush2.bf16.msra.mxu1 %v3119_v45  ;;  %3231 = vmatprep.subr.bf16.mxu0 %v3052_v34  ;;  %v2894_v45 = vunpack.c.l.s8.bf16 %v2754_v56  ;;  %v2958_v34 = vunpack.c.l.s8.bf16 %v2786_v39  ;;  %v2769_v39 = vld [vmem:[#allocation3 + $0xf0] sm:$0xff] }
 0x519   :  { %3272 = vmatprep.subr.bf16.mxu1 %v3116_v52  ;;  %v2750_v52 = vld [vmem:[#allocation3 + $0x58] sm:$0xff] }
 0x51a   :  { %v2890_v51 = vunpack.c.h.s8.bf16 %v2750_v52  ;;  %v2886_v6 = vunpack.c.l.s8.bf16 %v2750_v52 }
 0x51b   :  { %3232 = vmatpush2.bf16.msra.mxu0 %v3051_v55  ;;  %v2954_v55 = vunpack.c.h.s8.bf16 %v2782_v4 }
 0x51c   :  { %3273 = vmatpush2.bf16.msra.mxu1 %v3115_v53  ;;  %3233 = vmatprep.subr.bf16.mxu0 %v3048_v59  ;;  %v2749_v53 = vld [vmem:[#allocation3 + $0x50] sm:$0xff] }
 0x51d   :  { %3274 = vmatprep.subr.bf16.mxu1 %v3112_v43  ;;  %v2781_v59 = vld [vmem:[#allocation3 + $0x150] sm:$0xff]  ;;  %v2889_v43 = vunpack.c.h.s8.bf16 %v2749_v53 }
 0x51e   :  { %v2953_v16 = vunpack.c.h.s8.bf16 %v2781_v59  ;;  %v2949_v29 = vunpack.c.l.s8.bf16 %v2781_v59  ;;  %v2762_v59 = vld [vmem:[#allocation3 + $0xb8] sm:$0xff] }
 0x51f   :  { %3234 = vmatpush2.bf16.msra.mxu0 %v3047_v50  ;;  %v2950_v50 = vunpack.c.l.s8.bf16 %v2782_v4  ;;  %v2765_v4 = vld [vmem:[#allocation3 + $0xd0] sm:$0xff] }
 0x520   :  { %3275 = vmatpush2.bf16.msra.mxu1 %v3111_v22  ;;  %3235 = vmatprep.subr.bf16.mxu0 %v3044_v1  ;;  %v2746_v22 = vld [vmem:[#allocation3 + $0x38] sm:$0xff] }
 0x521   :  { %3276 = vmatprep.subr.bf16.mxu1 %v3108_v60  ;;  %v2778_v1 = vld [vmem:[#allocation3 + $0x138] sm:$0xff]  ;;  %v2885_v60 = vunpack.c.l.s8.bf16 %v2749_v53  ;;  %v2882_v27 = vunpack.c.h.s8.bf16 %v2746_v22 }
 0x522   :  { %v2942_v25 = vunpack.c.l.s8.bf16 %v2778_v1 }
 0x523   :  { %3236 = vmatpush2.bf16.msra.mxu0 %v3043_v19  ;;  %v2745_v19 = vld [vmem:[#allocation3 + $0x30] sm:$0xff] }
 0x524   :  { %3277 = vmatpush2.bf16.msra.mxu1 %v3107_v38  ;;  %3237 = vmatprep.subr.bf16.mxu0 %v3040_v61  ;;  %v2881_v38 = vunpack.c.h.s8.bf16 %v2745_v19 }
 0x525   :  { %3278 = vmatprep.subr.bf16.mxu1 %v3104_v30  ;;  %v2878_v30 = vunpack.c.l.s8.bf16 %v2746_v22 }
 0x527   :  { %3238 = vmatpush2.bf16.msra.mxu0 %v3039_v37  ;;  %v2774_v37 = vld [vmem:[#allocation3 + $0x118] sm:$0xff] }
 0x528   :  { %3279 = vmatpush2.bf16.msra.mxu1 %v3103_v62  ;;  %3239 = vmatprep.subr.bf16.mxu0 %v3036_v5  ;;  %v2877_v62 = vunpack.c.l.s8.bf16 %v2745_v19  ;;  %v2938_v18 = vunpack.c.h.s8.bf16 %v2774_v37  ;;  %v2934_v36 = vunpack.c.l.s8.bf16 %v2774_v37  ;;  %v2757_v37 = vld [vmem:[#allocation3 + $0x90] sm:$0xff] }
 0x529   :  { %3280 = vmatprep.subr.bf16.mxu1 %v3100_v8  ;;  %v2874_v8 = vunpack.c.h.s8.bf16 %v2742_v57 }
 0x52b   :  { %3240 = vmatpush2.bf16.msra.mxu0 %v3035_v13  ;;  %v2773_v13 = vld [vmem:[#allocation3 + $0x110] sm:$0xff] }
 0x52c   :  { %3281 = vmatpush2.bf16.msra.mxu1 %v3099_v35  ;;  %3241 = vmatprep.subr.bf16.mxu0 %v3032_v24  ;;  %v2873_v35 = vunpack.c.h.s8.bf16 %v2741_v48  ;;  %v2937_v24 = vunpack.c.h.s8.bf16 %v2773_v13 }
 0x52d   :  { %3282 = vmatprep.subr.bf16.mxu1 %v3096_v11  ;;  %v2870_v11 = vunpack.c.l.s8.bf16 %v2742_v57 }
 0x52f   :  { %3242 = vmatpush2.bf16.msra.mxu0 %v3031_v9  ;;  %v2802_v9 = vld [vmem:[#allocation3 + $0x1f8] sm:$0xff] }
 0x530   :  { %3283 = vmatpush2.bf16.msra.mxu1 %v3095_v40  ;;  %3243 = vmatprep.subr.bf16.mxu0 %v3028_v14  ;;  %v2869_v40 = vunpack.c.l.s8.bf16 %v2741_v48  ;;  %v2933_v14 = vunpack.c.l.s8.bf16 %v2773_v13  ;;  %v2994_v56 = vunpack.c.h.s8.bf16 %v2802_v9  ;;  %v2990_v15 = vunpack.c.l.s8.bf16 %v2802_v9  ;;  %v2818_v13 = vld [vmem:[#allocation3 + $0x278] sm:$0xff]  ;;  %v2817_v9 = vld [vmem:[#allocation3 + $0x270] sm:$0xff] }
 0x531   :  { %3284 = vmatprep.subr.bf16.mxu1 %v3092_v10  ;;  %v2930_v10 = vunpack.c.h.s8.bf16 %v2770_v49 }
 0x533   :  { %3244 = vmatpush2.bf16.msra.mxu0 %v3027_v42  ;;  %v2801_v42 = vld [vmem:[#allocation3 + $0x1f0] sm:$0xff] }
 0x534   :  { %3285 = vmatpush2.bf16.msra.mxu1 %v3091_v54  ;;  %3295 = vmatprep.subr.bf16.mxu0 %v2898_v46  ;;  %v2929_v54 = vunpack.c.h.s8.bf16 %v2769_v39  ;;  %v2993_v46 = vunpack.c.h.s8.bf16 %v2801_v42 }
 0x535   :  { %3336 = vmatprep.subr.bf16.mxu1 %v2962_v33  ;;  %v2926_v33 = vunpack.c.l.s8.bf16 %v2770_v49 }
 0x536   :  { %3246 = vmatmul.mubr.bf16.vlgmr.msra.gmra.mxu0 %v4707_v44 }
 0x537   :  { %3287 = vmatmul.mubr.bf16.vlgmr.msra.gmra.mxu1 %v4711_v12  ;;  %3296 = vmatpush1.bf16.msra.mxu0 %v2897_v28  ;;  %v2798_v28 = vld [vmem:[#allocation3 + $0x1d8] sm:$0xff] }
 0x538   :  { %3337 = vmatpush1.bf16.msra.mxu1 %v2961_v47  ;;  %3297 = vmatprep.subr.bf16.mxu0 %v2894_v45  ;;  %v2925_v47 = vunpack.c.l.s8.bf16 %v2769_v39  ;;  %v2989_v45 = vunpack.c.l.s8.bf16 %v2801_v42  ;;  %v2986_v52 = vunpack.c.h.s8.bf16 %v2798_v28  ;;  %v2982_v53 = vunpack.c.l.s8.bf16 %v2798_v28  ;;  %v2814_v42 = vld [vmem:[#allocation3 + $0x258] sm:$0xff]  ;;  %v2813_v28 = vld [vmem:[#allocation3 + $0x250] sm:$0xff] }
 0x539   :  { %3338 = vmatprep.subr.bf16.mxu1 %v2958_v34  ;;  %3327 = vmatprep.mubr.bf16.mxu0 %v4678_v23  ;;  %v2946_v23 = vunpack.c.h.s8.bf16 %v2778_v1  ;;  %v2922_v34 = vunpack.c.h.s8.bf16 %v2766_v58  ;;  %v2761_v1 = vld [vmem:[#allocation3 + $0xb0] sm:$0xff] }
 0x53a   :  { %3368 = vmatprep.mubr.bf16.mxu1 %v4680_v63  ;;  %v2777_v63 = vld [vmem:[#allocation3 + $0x130] sm:$0xff] }
 0x53b   :  { %3298 = vmatpush1.bf16.msra.mxu0 %v2893_v0  ;;  %v2945_v61 = vunpack.c.h.s8.bf16 %v2777_v63  ;;  %v2941_v5 = vunpack.c.l.s8.bf16 %v2777_v63  ;;  %v2797_v0 = vld [vmem:[#allocation3 + $0x1d0] sm:$0xff]  ;;  %v2758_v63 = vld [vmem:[#allocation3 + $0x98] sm:$0xff] }
 0x53c   :  { %3339 = vmatpush1.bf16.msra.mxu1 %v2957_v21  ;;  %3299 = vmatprep.subr.bf16.mxu0 %v2890_v51  ;;  %v2921_v21 = vunpack.c.h.s8.bf16 %v2765_v4  ;;  %v2985_v51 = vunpack.c.h.s8.bf16 %v2797_v0 }
 0x53d   :  { %3340 = vmatprep.subr.bf16.mxu1 %v2954_v55  ;;  %v2918_v55 = vunpack.c.l.s8.bf16 %v2766_v58 }
 0x53f   :  { %3300 = vmatpush1.bf16.msra.mxu0 %v2889_v43  ;;  %v2794_v43 = vld [vmem:[#allocation3 + $0x1b8] sm:$0xff] }
 0x540   :  { %3341 = vmatpush1.bf16.msra.mxu1 %v2953_v16  ;;  %3301 = vmatprep.subr.bf16.mxu0 %v2886_v6  ;;  %v2917_v16 = vunpack.c.l.s8.bf16 %v2765_v4  ;;  %v2981_v6 = vunpack.c.l.s8.bf16 %v2797_v0  ;;  %v2978_v22 = vunpack.c.h.s8.bf16 %v2794_v43  ;;  %v2974_v19 = vunpack.c.l.s8.bf16 %v2794_v43  ;;  %v2842_v4 = vld [vmem:[#allocation3 + $0x338] sm:$0xff] }
 0x541   :  { %3342 = vmatprep.subr.bf16.mxu1 %v2950_v50  ;;  %v2914_v50 = vunpack.c.h.s8.bf16 %v2762_v59  ;;  %v3013_v0 = vunpack.c.l.s8.bf16 %v2813_v28 }
 0x543   :  { %3302 = vmatpush1.bf16.msra.mxu0 %v2885_v60  ;;  %v2793_v60 = vld [vmem:[#allocation3 + $0x1b0] sm:$0xff] }
 0x544   :  { %3343 = vmatpush1.bf16.msra.mxu1 %v2949_v29  ;;  %3303 = vmatprep.subr.bf16.mxu0 %v2882_v27  ;;  %v2913_v29 = vunpack.c.h.s8.bf16 %v2761_v1  ;;  %v2977_v27 = vunpack.c.h.s8.bf16 %v2793_v60 }
 0x545   :  { %3344 = vmatprep.subr.bf16.mxu1 %v2946_v23  ;;  %v2910_v23 = vunpack.c.l.s8.bf16 %v2762_v59 }
 0x547   :  { %3304 = vmatpush1.bf16.msra.mxu0 %v2881_v38  ;;  %v2790_v38 = vld [vmem:[#allocation3 + $0x198] sm:$0xff] }
 0x548   :  { %3345 = vmatpush1.bf16.msra.mxu1 %v2945_v61  ;;  %3305 = vmatprep.subr.bf16.mxu0 %v2878_v30  ;;  %v2909_v61 = vunpack.c.l.s8.bf16 %v2761_v1  ;;  %v2973_v30 = vunpack.c.l.s8.bf16 %v2793_v60  ;;  %v2970_v57 = vunpack.c.h.s8.bf16 %v2790_v38  ;;  %v2966_v48 = vunpack.c.l.s8.bf16 %v2790_v38 }
 0x549   :  { %3346 = vmatprep.subr.bf16.mxu1 %v2942_v25  ;;  %v2906_v25 = vunpack.c.h.s8.bf16 %v2758_v63 }
 0x54b   :  { %3306 = vmatpush1.bf16.msra.mxu0 %v2877_v62  ;;  %v2789_v62 = vld [vmem:[#allocation3 + $0x190] sm:$0xff] }
 0x54c   :  { %3347 = vmatpush1.bf16.msra.mxu1 %v2941_v5  ;;  %3307 = vmatprep.subr.bf16.mxu0 %v2874_v8  ;;  %v2905_v5 = vunpack.c.h.s8.bf16 %v2757_v37  ;;  %v2969_v8 = vunpack.c.h.s8.bf16 %v2789_v62 }
 0x54d   :  { %3348 = vmatprep.subr.bf16.mxu1 %v2938_v18  ;;  %v2902_v18 = vunpack.c.l.s8.bf16 %v2758_v63 }
 0x54f   :  { %3308 = vmatpush1.bf16.msra.mxu0 %v2873_v35  ;;  %v2850_v35 = vld [vmem:[#allocation3 + $0x378] sm:$0xff] }
 0x550   :  { %3349 = vmatpush1.bf16.msra.mxu1 %v2937_v24  ;;  %3309 = vmatprep.subr.bf16.mxu0 %v2870_v11  ;;  %v2901_v24 = vunpack.c.l.s8.bf16 %v2757_v37  ;;  %v2965_v11 = vunpack.c.l.s8.bf16 %v2789_v62  ;;  %v3090_v49 = vunpack.c.h.s8.bf16 %v2850_v35  ;;  %v3086_v39 = vunpack.c.l.s8.bf16 %v2850_v35 }
 0x551   :  { %3350 = vmatprep.subr.bf16.mxu1 %v2934_v36  ;;  %v3026_v36 = vunpack.c.h.s8.bf16 %v2818_v13 }
 0x553   :  { %3310 = vmatpush1.bf16.msra.mxu0 %v2869_v40  ;;  %v2849_v40 = vld [vmem:[#allocation3 + $0x370] sm:$0xff] }
 0x554   :  { %3351 = vmatpush1.bf16.msra.mxu1 %v2933_v14  ;;  %3311 = vmatprep.subr.bf16.mxu0 %v2930_v10  ;;  %v3025_v14 = vunpack.c.h.s8.bf16 %v2817_v9  ;;  %v3089_v10 = vunpack.c.h.s8.bf16 %v2849_v40 }
 0x555   :  { %3352 = vmatprep.subr.bf16.mxu1 %v2994_v56  ;;  %v3022_v56 = vunpack.c.l.s8.bf16 %v2818_v13 }
 0x557   :  { %3312 = vmatpush2.bf16.msra.mxu0 %v2929_v54  ;;  %v2846_v54 = vld [vmem:[#allocation3 + $0x358] sm:$0xff] }
 0x558   :  { %3353 = vmatpush2.bf16.msra.mxu1 %v2993_v46  ;;  %3313 = vmatprep.subr.bf16.mxu0 %v2926_v33  ;;  %v3021_v46 = vunpack.c.l.s8.bf16 %v2817_v9  ;;  %v3085_v33 = vunpack.c.l.s8.bf16 %v2849_v40  ;;  %v3082_v58 = vunpack.c.h.s8.bf16 %v2846_v54 }
 0x559   :  { %3354 = vmatprep.subr.bf16.mxu1 %v2990_v15  ;;  %v3018_v15 = vunpack.c.h.s8.bf16 %v2814_v42 }
 0x55b   :  { %3314 = vmatpush2.bf16.msra.mxu0 %v2925_v47  ;;  %v2845_v47 = vld [vmem:[#allocation3 + $0x350] sm:$0xff] }
 0x55c   :  { %3355 = vmatpush2.bf16.msra.mxu1 %v2989_v45  ;;  %3315 = vmatprep.subr.bf16.mxu0 %v2922_v34  ;;  %v3017_v45 = vunpack.c.h.s8.bf16 %v2813_v28  ;;  %v3078_v34 = vunpack.c.l.s8.bf16 %v2846_v54 }
 0x55d   :  { %3356 = vmatprep.subr.bf16.mxu1 %v2986_v52  ;;  %v2810_v52 = vld [vmem:[#allocation3 + $0x238] sm:$0xff] }
 0x55e   :  { %v3006_v43 = vunpack.c.l.s8.bf16 %v2810_v52 }
 0x55f   :  { %3316 = vmatpush2.bf16.msra.mxu0 %v2921_v21  ;;  %v3077_v21 = vunpack.c.l.s8.bf16 %v2845_v47 }
 0x560   :  { %3357 = vmatpush2.bf16.msra.mxu1 %v2985_v51  ;;  %3317 = vmatprep.subr.bf16.mxu0 %v2918_v55  ;;  %v3010_v51 = vunpack.c.h.s8.bf16 %v2810_v52  ;;  %v2809_v55 = vld [vmem:[#allocation3 + $0x230] sm:$0xff] }
 0x561   :  { %3358 = vmatprep.subr.bf16.mxu1 %v2982_v53  ;;  %v3009_v53 = vunpack.c.h.s8.bf16 %v2809_v55 }
 0x563   :  { %3318 = vmatpush2.bf16.msra.mxu0 %v2917_v16  ;;  %v3070_v16 = vunpack.c.l.s8.bf16 %v2842_v4 }
 0x564   :  { %3359 = vmatpush2.bf16.msra.mxu1 %v2981_v6  ;;  %3319 = vmatprep.subr.bf16.mxu0 %v2914_v50  ;;  %v2806_v6 = vld [vmem:[#allocation3 + $0x218] sm:$0xff] }
 0x565   :  { %3360 = vmatprep.subr.bf16.mxu1 %v2978_v22  ;;  %v2838_v50 = vld [vmem:[#allocation3 + $0x318] sm:$0xff]  ;;  %v3005_v22 = vunpack.c.l.s8.bf16 %v2809_v55  ;;  %v3002_v60 = vunpack.c.h.s8.bf16 %v2806_v6  ;;  %v2998_v38 = vunpack.c.l.s8.bf16 %v2806_v6 }
 0x567   :  { %3320 = vmatpush2.bf16.msra.mxu0 %v2913_v29  ;;  %v3066_v29 = vunpack.c.h.s8.bf16 %v2838_v50 }
 0x568   :  { %3361 = vmatpush2.bf16.msra.mxu1 %v2977_v27  ;;  %3321 = vmatprep.subr.bf16.mxu0 %v2910_v23  ;;  %v2805_v27 = vld [vmem:[#allocation3 + $0x210] sm:$0xff] }
 0x569   :  { %3362 = vmatprep.subr.bf16.mxu1 %v2974_v19  ;;  %v2837_v23 = vld [vmem:[#allocation3 + $0x310] sm:$0xff]  ;;  %v3001_v19 = vunpack.c.h.s8.bf16 %v2805_v27 }
 0x56a   :  { %v3065_v63 = vunpack.c.h.s8.bf16 %v2837_v23  ;;  %v3061_v37 = vunpack.c.l.s8.bf16 %v2837_v23 }
 0x56b   :  { %3322 = vmatpush2.bf16.msra.mxu0 %v2909_v61  ;;  %v3062_v61 = vunpack.c.l.s8.bf16 %v2838_v50 }
 0x56c   :  { %3363 = vmatpush2.bf16.msra.mxu1 %v2973_v30  ;;  %3323 = vmatprep.subr.bf16.mxu0 %v2906_v25  ;;  %v2834_v30 = vld [vmem:[#allocation3 + $0x2f8] sm:$0xff] }
 0x56d   :  { %3364 = vmatprep.subr.bf16.mxu1 %v2970_v57  ;;  %v2866_v25 = vld [vmem:[#allocation3 + $0x3f8] sm:$0xff]  ;;  %v2997_v57 = vunpack.c.l.s8.bf16 %v2805_v27  ;;  %v3058_v62 = vunpack.c.h.s8.bf16 %v2834_v30  ;;  %v3054_v35 = vunpack.c.l.s8.bf16 %v2834_v30 }
 0x56f   :  { %3324 = vmatpush2.bf16.msra.mxu0 %v2905_v5  ;;  %v3122_v5 = vunpack.c.h.s8.bf16 %v2866_v25 }
 0x570   :  { %3365 = vmatpush2.bf16.msra.mxu1 %v2969_v8  ;;  %3325 = vmatprep.subr.bf16.mxu0 %v2902_v18  ;;  %v2833_v8 = vld [vmem:[#allocation3 + $0x2f0] sm:$0xff] }
 0x571   :  { %3366 = vmatprep.subr.bf16.mxu1 %v2966_v48  ;;  %v2865_v18 = vld [vmem:[#allocation3 + $0x3f0] sm:$0xff]  ;;  %v3057_v48 = vunpack.c.h.s8.bf16 %v2833_v8 }
 0x572   :  { %v3121_v13 = vunpack.c.h.s8.bf16 %v2865_v18  ;;  %v3117_v9 = vunpack.c.l.s8.bf16 %v2865_v18 }
 0x573   :  { %3326 = vmatpush2.bf16.msra.mxu0 %v2901_v24  ;;  %v3118_v24 = vunpack.c.l.s8.bf16 %v2866_v25 }
 0x574   :  { %3367 = vmatpush2.bf16.msra.mxu1 %v2965_v11  ;;  %3377 = vmatprep.subr.bf16.mxu0 %v3026_v36  ;;  %v2830_v11 = vld [vmem:[#allocation3 + $0x2d8] sm:$0xff] }
 0x575   :  { %3418 = vmatprep.subr.bf16.mxu1 %v3090_v49  ;;  %v2862_v36 = vld [vmem:[#allocation3 + $0x3d8] sm:$0xff]  ;;  %v3053_v49 = vunpack.c.l.s8.bf16 %v2833_v8  ;;  %v3050_v40 = vunpack.c.h.s8.bf16 %v2830_v11  ;;  %v3046_v54 = vunpack.c.l.s8.bf16 %v2830_v11 }
 0x576   :  { %3328 = vmatmul.mubr.bf16.vlgmr.msra.gmra.mxu0 %v4687_v17  ;;  %v3081_v17 = vunpack.c.h.s8.bf16 %v2845_v47 }
 0x577   :  { %3369 = vmatmul.mubr.bf16.vlgmr.msra.gmra.mxu1 %v4691_v7  ;;  %3378 = vmatpush1.bf16.msra.mxu0 %v3025_v14  ;;  %v3014_v7 = vunpack.c.l.s8.bf16 %v2814_v42  ;;  %v3114_v14 = vunpack.c.h.s8.bf16 %v2862_v36 }
 0x578   :  { %3419 = vmatpush1.bf16.msra.mxu1 %v3089_v10  ;;  %3379 = vmatprep.subr.bf16.mxu0 %v3022_v56  ;;  %v2829_v10 = vld [vmem:[#allocation3 + $0x2d0] sm:$0xff] }
 0x579   :  { %3420 = vmatprep.subr.bf16.mxu1 %v3086_v39  ;;  %3409 = vmatprep.mubr.bf16.mxu0 %v4695_v41  ;;  %v3074_v41 = vunpack.c.h.s8.bf16 %v2842_v4  ;;  %v2861_v56 = vld [vmem:[#allocation3 + $0x3d0] sm:$0xff]  ;;  %v3049_v39 = vunpack.c.h.s8.bf16 %v2829_v10 }
 0x57a   :  { %3450 = vmatprep.mubr.bf16.mxu1 %v4699_v31  ;;  %v2841_v31 = vld [vmem:[#allocation3 + $0x330] sm:$0xff]  ;;  %v3113_v42 = vunpack.c.h.s8.bf16 %v2861_v56  ;;  %v3109_v28 = vunpack.c.l.s8.bf16 %v2861_v56 }
 0x57b   :  { %3380 = vmatpush1.bf16.msra.mxu0 %v3021_v46  ;;  %v3073_v59 = vunpack.c.h.s8.bf16 %v2841_v31  ;;  %v3069_v1 = vunpack.c.l.s8.bf16 %v2841_v31  ;;  %v3110_v46 = vunpack.c.l.s8.bf16 %v2862_v36 }
 0x57c   :  { %3421 = vmatpush1.bf16.msra.mxu1 %v3085_v33  ;;  %3381 = vmatprep.subr.bf16.mxu0 %v3018_v15  ;;  %v2826_v33 = vld [vmem:[#allocation3 + $0x2b8] sm:$0xff] }
 0x57d   :  { %3422 = vmatprep.subr.bf16.mxu1 %v3082_v58  ;;  %v2858_v15 = vld [vmem:[#allocation3 + $0x3b8] sm:$0xff]  ;;  %v3045_v58 = vunpack.c.l.s8.bf16 %v2829_v10  ;;  %v3042_v47 = vunpack.c.h.s8.bf16 %v2826_v33  ;;  %v3038_v4 = vunpack.c.l.s8.bf16 %v2826_v33 }
 0x57f   :  { %3382 = vmatpush1.bf16.msra.mxu0 %v3017_v45  ;;  %v3106_v45 = vunpack.c.h.s8.bf16 %v2858_v15 }
 0x580   :  { %3423 = vmatpush1.bf16.msra.mxu1 %v3081_v17  ;;  %3383 = vmatprep.subr.bf16.mxu0 %v3014_v7  ;;  %v2825_v17 = vld [vmem:[#allocation3 + $0x2b0] sm:$0xff] }
 0x581   :  { %3424 = vmatprep.subr.bf16.mxu1 %v3078_v34  ;;  %v2857_v7 = vld [vmem:[#allocation3 + $0x3b0] sm:$0xff]  ;;  %v3041_v34 = vunpack.c.h.s8.bf16 %v2825_v17 }
 0x582   :  { %v3105_v52 = vunpack.c.h.s8.bf16 %v2857_v7  ;;  %v3101_v55 = vunpack.c.l.s8.bf16 %v2857_v7 }
 0x583   :  { %3384 = vmatpush1.bf16.msra.mxu0 %v3013_v0  ;;  %v3102_v0 = vunpack.c.l.s8.bf16 %v2858_v15 }
 0x584   :  { %3425 = vmatpush1.bf16.msra.mxu1 %v3077_v21  ;;  %3385 = vmatprep.subr.bf16.mxu0 %v3010_v51  ;;  %v2822_v21 = vld [vmem:[#allocation3 + $0x298] sm:$0xff] }
 0x585   :  { %3426 = vmatprep.subr.bf16.mxu1 %v3074_v41  ;;  %v2854_v51 = vld [vmem:[#allocation3 + $0x398] sm:$0xff]  ;;  %v3037_v41 = vunpack.c.l.s8.bf16 %v2825_v17  ;;  %v3034_v31 = vunpack.c.h.s8.bf16 %v2822_v21  ;;  %v3030_v50 = vunpack.c.l.s8.bf16 %v2822_v21 }
 0x587   :  { %3386 = vmatpush1.bf16.msra.mxu0 %v3009_v53  ;;  %v3098_v53 = vunpack.c.h.s8.bf16 %v2854_v51 }
 0x588   :  { %3427 = vmatpush1.bf16.msra.mxu1 %v3073_v59  ;;  %3387 = vmatprep.subr.bf16.mxu0 %v3006_v43  ;;  %v2821_v59 = vld [vmem:[#allocation3 + $0x290] sm:$0xff] }
 0x589   :  { %3428 = vmatprep.subr.bf16.mxu1 %v3070_v16  ;;  %v2853_v43 = vld [vmem:[#allocation3 + $0x390] sm:$0xff]  ;;  %v3033_v16 = vunpack.c.h.s8.bf16 %v2821_v59 }
 0x58a   :  { %v3097_v6 = vunpack.c.h.s8.bf16 %v2853_v43 }
 0x58b   :  { %3388 = vmatpush1.bf16.msra.mxu0 %v3005_v22  ;;  %v3094_v22 = vunpack.c.l.s8.bf16 %v2854_v51 }
 0x58c   :  { %3429 = vmatpush1.bf16.msra.mxu1 %v3069_v1  ;;  %3389 = vmatprep.subr.bf16.mxu0 %v3002_v60  ;;  %v3029_v1 = vunpack.c.l.s8.bf16 %v2821_v59  ;;  %v3093_v60 = vunpack.c.l.s8.bf16 %v2853_v43 }
 0x58d   :  { %3430 = vmatprep.subr.bf16.mxu1 %v3066_v29 }
 0x58f   :  { %3390 = vmatpush1.bf16.msra.mxu0 %v3001_v19 }
 0x590   :  { %3431 = vmatpush1.bf16.msra.mxu1 %v3065_v63  ;;  %3391 = vmatprep.subr.bf16.mxu0 %v2998_v38 }
 0x591   :  { %3432 = vmatprep.subr.bf16.mxu1 %v3062_v61 }
 0x593   :  { %3392 = vmatpush1.bf16.msra.mxu0 %v2997_v57 }
 0x594   :  { %3433 = vmatpush1.bf16.msra.mxu1 %v3061_v37  ;;  %3393 = vmatprep.subr.bf16.mxu0 %v3058_v62 }
 0x595   :  { %3434 = vmatprep.subr.bf16.mxu1 %v3122_v5 }
 0x597   :  { %3394 = vmatpush2.bf16.msra.mxu0 %v3057_v48 }
 0x598   :  { %3435 = vmatpush2.bf16.msra.mxu1 %v3121_v13  ;;  %3395 = vmatprep.subr.bf16.mxu0 %v3054_v35 }
 0x599   :  { %3436 = vmatprep.subr.bf16.mxu1 %v3118_v24 }
 0x59b   :  { %3396 = vmatpush2.bf16.msra.mxu0 %v3053_v49 }
 0x59c   :  { %3437 = vmatpush2.bf16.msra.mxu1 %v3117_v9  ;;  %3397 = vmatprep.subr.bf16.mxu0 %v3050_v40 }
 0x59d   :  { %3438 = vmatprep.subr.bf16.mxu1 %v3114_v14 }
 0x59f   :  { %3398 = vmatpush2.bf16.msra.mxu0 %v3049_v39 }
 0x5a0   :  { %3439 = vmatpush2.bf16.msra.mxu1 %v3113_v42  ;;  %3399 = vmatprep.subr.bf16.mxu0 %v3046_v54 }
 0x5a1   :  { %3440 = vmatprep.subr.bf16.mxu1 %v3110_v46 }
 0x5a3   :  { %3400 = vmatpush2.bf16.msra.mxu0 %v3045_v58 }
 0x5a4   :  { %3441 = vmatpush2.bf16.msra.mxu1 %v3109_v28  ;;  %3401 = vmatprep.subr.bf16.mxu0 %v3042_v47 }
 0x5a5   :  { %3442 = vmatprep.subr.bf16.mxu1 %v3106_v45 }
 0x5a7   :  { %3402 = vmatpush2.bf16.msra.mxu0 %v3041_v34 }
 0x5a8   :  { %3443 = vmatpush2.bf16.msra.mxu1 %v3105_v52  ;;  %3403 = vmatprep.subr.bf16.mxu0 %v3038_v4 }
 0x5a9   :  { %3444 = vmatprep.subr.bf16.mxu1 %v3102_v0 }
 0x5ab   :  { %3404 = vmatpush2.bf16.msra.mxu0 %v3037_v41 }
 0x5ac   :  { %3445 = vmatpush2.bf16.msra.mxu1 %v3101_v55  ;;  %3405 = vmatprep.subr.bf16.mxu0 %v3034_v31  ;;  %v4737_v55 = vld [vmem:[#allocation19] sm:$0xf] }
 0x5ad   :  { %3446 = vmatprep.subr.bf16.mxu1 %v3098_v53 }
 0x5af   :  { %3406 = vmatpush2.bf16.msra.mxu0 %v3033_v16 }
 0x5b0   :  { %3447 = vmatpush2.bf16.msra.mxu1 %v3097_v6  ;;  %3407 = vmatprep.subr.bf16.mxu0 %v3030_v50  ;;  %v3538_v6 = vrot.slane %v4737_v55, %v4217_v26 }
 0x5b1   :  { %3448 = vmatprep.subr.bf16.mxu1 %v3094_v22 }
 0x5b3   :  { %3408 = vmatpush2.bf16.msra.mxu0 %v3029_v1 }
 0x5b4   :  { %3449 = vmatpush2.bf16.msra.mxu1 %v3093_v60 }
 0x5b6   :  { %v3165_v29 = vpop.f32.mrf.mxu0  ;;  %3410 = vmatmul.mubr.bf16.vlgmr.msra.gmra.mxu0 %v4707_v44 }
 0x5b7   :  { %v3206_v27 = vpop.f32.mrf.mxu1  ;;  %3451 = vmatmul.mubr.bf16.vlgmr.msra.gmra.mxu1 %v4711_v12 }
 0x5b8   :  { %v3207_v23 = vadd.f32 %v3206_v27, %v3165_v29  ;;  %v3167_v19 = vpop.f32.mrf.mxu0  ;;  %v3542_v29 = vrot.slane %v4737_v55, %v4244_v3 }
 0x5b9   :  { %v3208_v63 = vpop.f32.mrf.mxu1 }
 0x5ba   :  { %v3209_v38 = vadd.f32 %v3208_v63, %v3167_v19  ;;  %v3169_v61 = vpop.f32.mrf.mxu0 }
 0x5bb   :  { %v3210_v30 = vpop.f32.mrf.mxu1 }
 0x5bc   :  { %v3170_v25 = vpop.f32.mrf.mxu0 }
 0x5bd   :  { %v3211_v57 = vpop.f32.mrf.mxu1 }
 0x5f6   :  { %v3247_v37 = vpop.f32.mrf.mxu0 }
 0x5f7   :  { %v3288_v62 = vpop.f32.mrf.mxu1  ;;  %v3248_v5 = vadd.f32 %v3247_v37, %v3207_v23 }
 0x5f8   :  { %v3249_v8 = vpop.f32.mrf.mxu0 }
 0x5f9   :  { %v3290_v18 = vpop.f32.mrf.mxu1  ;;  %v4723_v48 = vadd.f32 %v3288_v62, %v3248_v5  ;;  %v3250_v13 = vadd.f32 %v3249_v8, %v3209_v38 }
 0x5fa   :  { %v3251_v35 = vpop.f32.mrf.mxu0 }
 0x5fb   :  { %v3292_v44 = vpop.f32.mrf.mxu1  ;;  %v3462_v12 = vrot.slane %v4723_v48, 4  ;;  %v3486_v24 = vmul.f32 %v4723_v48, %v4723_v48  ;;  %v4728_v11 = vadd.f32 %v3290_v18, %v3250_v13 }
 0x5fc   :  { %v3252_v36 = vpop.f32.mrf.mxu0 }
 0x5fd   :  { %v3293_v49 = vpop.f32.mrf.mxu1  ;;  %v3463_v9 = vadd.f32 %v3462_v12, %v4723_v48  ;;  %v3490_v40 = vrot.slane %v3486_v24, 4  ;;  %v3468_v14 = vrot.slane %v4728_v11, 4  ;;  %v3487_v10 = vmul.f32 %v4728_v11, %v4728_v11 }
 0x5ff   :  { %v3464_v56 = vrot.slane %v3463_v9, 2  ;;  %v3491_v39 = vadd.f32 %v3490_v40, %v3486_v24  ;;  %v3469_v42 = vadd.f32 %v3468_v14, %v4728_v11  ;;  %v3496_v54 = vrot.slane %v3487_v10, 4 }
 0x601   :  { %v3465_v46 = vadd.f32 %v3464_v56, %v3463_v9  ;;  %v3492_v33 = vrot.slane %v3491_v39, 2  ;;  %v3470_v15 = vrot.slane %v3469_v42, 2  ;;  %v3497_v58 = vadd.f32 %v3496_v54, %v3487_v10 }
 0x603   :  { %v3466_v28 = vrot.slane %v3465_v46, 1  ;;  %v3493_v47 = vadd.f32 %v3492_v33, %v3491_v39  ;;  %v3471_v45 = vadd.f32 %v3470_v15, %v3469_v42  ;;  %v3498_v17 = vrot.slane %v3497_v58, 2 }
 0x605   :  { %v3467_v7 = vadd.f32 %v3466_v28, %v3465_v46  ;;  %v3494_v34 = vrot.slane %v3493_v47, 1  ;;  %v3472_v52 = vrot.slane %v3471_v45, 1  ;;  %v3499_v4 = vadd.f32 %v3498_v17, %v3497_v58 }
 0x607   :  { %v3495_v0 = vadd.f32 %v3494_v34, %v3493_v47  ;;  %v4735_v21 = vmul.f32 0.125, %v3467_v7  ;;  %v3473_v51 = vadd.f32 %v3472_v52, %v3471_v45  ;;  %v3500_v41 = vrot.slane %v3499_v4, 1 }
 0x609   :  { %v3518_v31 = vmul.f32 0.125, %v3495_v0  ;;  %v3522_v53 = vmul.f32 %v4735_v21, %v4735_v21  ;;  %v3501_v59 = vadd.f32 %v3500_v41, %v3499_v4  ;;  %v4741_v43 = vmul.f32 0.125, %v3473_v51 }
 0x60b   :  { %v3526_v16 = vsub.f32 %v3518_v31, %v3522_v53  ;;  %v3519_v50 = vmul.f32 0.125, %v3501_v59  ;;  %v3523_v22 = vmul.f32 %v4741_v43, %v4741_v43 }
 0x60d   :  { %v3530_v1 = vmax.f32 %v3526_v16, 0.0  ;;  %v3527_v60 = vsub.f32 %v3519_v50, %v3523_v22 }
 0x60f   :  { %v3555_v27 = vadd.f32 %v3538_v6, %v3530_v1  ;;  %v3531_v23 = vmax.f32 %v3527_v60, 0.0 }
 0x611   :  { %v3556_v19 = vadd.f32 %v3542_v29, %v3531_v23  ;;  %3826 = vrsqrt.f32 %v3555_v27 }
 0x613   :  { %3828 = vrsqrt.f32 %v3556_v19 }
 0x61e   :  { %v4749_v63 = vpop.eup %3826 }
 0x620   :  { %v4751_v38 = vpop.eup %3828 }
 0x621   :  { %v3567_v61 = vcombine.low %v4749_v63, %v4751_v38 }
 0x636   :  { %v3329_v30 = vpop.f32.mrf.mxu0 }
 0x637   :  { %v3370_v25 = vpop.f32.mrf.mxu1 }
 0x638   :  { %v3371_v57 = vadd.f32 %v3370_v25, %v3329_v30  ;;  %v3331_v37 = vpop.f32.mrf.mxu0 }
 0x639   :  { %v3372_v62 = vpop.f32.mrf.mxu1 }
 0x63a   :  { %v3373_v5 = vadd.f32 %v3372_v62, %v3331_v37  ;;  %v3333_v8 = vpop.f32.mrf.mxu0 }
 0x63b   :  { %v3374_v18 = vpop.f32.mrf.mxu1 }
 0x63c   :  { %v3334_v13 = vpop.f32.mrf.mxu0  ;;  %v3550_v18 = vrot.slane %v4737_v55, %v4253_v20 }
 0x63d   :  { %v3375_v35 = vpop.f32.mrf.mxu1 }
 0x676   :  { %v3411_v44 = vpop.f32.mrf.mxu0 }
 0x677   :  { %v3452_v12 = vpop.f32.mrf.mxu1  ;;  %v3412_v24 = vadd.f32 %v3411_v44, %v3371_v57  ;;  %v3546_v57 = vrot.slane %v4737_v55, %v4241_v2 }
 0x678   :  { %v3413_v36 = vpop.f32.mrf.mxu0 }
 0x679   :  { %v3454_v49 = vpop.f32.mrf.mxu1  ;;  %v4755_v9 = vadd.f32 %v3452_v12, %v3412_v24  ;;  %v3414_v40 = vadd.f32 %v3413_v36, %v3373_v5 }
 0x67a   :  { %v3415_v14 = vpop.f32.mrf.mxu0 }
 0x67b   :  { %v3456_v10 = vpop.f32.mrf.mxu1  ;;  %v3474_v56 = vrot.slane %v4755_v9, 4  ;;  %v3488_v39 = vmul.f32 %v4755_v9, %v4755_v9  ;;  %v3455_v42 = vadd.f32 %v3454_v49, %v3414_v40  ;;  %v3575_v49 = vrot.slane %v3567_v61, %v4353_v32 }
 0x67c   :  { %v3416_v54 = vpop.f32.mrf.mxu0  ;;  %v3459_v10 = vld [vmem:[#allocation16] sm:$0xf] }
 0x67d   :  { %v3457_v46 = vpop.f32.mrf.mxu1  ;;  %v3475_v33 = vadd.f32 %v3474_v56, %v4755_v9  ;;  %v3502_v15 = vrot.slane %v3488_v39, 4  ;;  %v3480_v58 = vrot.slane %v3455_v42, 4  ;;  %v3489_v28 = vmul.f32 %v3455_v42, %v3455_v42 }
 0x67f   :  { %v3476_v47 = vrot.slane %v3475_v33, 2  ;;  %v3503_v45 = vadd.f32 %v3502_v15, %v3488_v39  ;;  %v3481_v17 = vadd.f32 %v3480_v58, %v3455_v42  ;;  %v3508_v7 = vrot.slane %v3489_v28, 4 }
 0x681   :  { %v3477_v34 = vadd.f32 %v3476_v47, %v3475_v33  ;;  %v3504_v52 = vrot.slane %v3503_v45, 2  ;;  %v3482_v4 = vrot.slane %v3481_v17, 2  ;;  %v3509_v0 = vadd.f32 %v3508_v7, %v3489_v28 }
 0x683   :  { %v3478_v51 = vrot.slane %v3477_v34, 1  ;;  %v3505_v41 = vadd.f32 %v3504_v52, %v3503_v45  ;;  %v3483_v31 = vadd.f32 %v3482_v4, %v3481_v17  ;;  %v3510_v53 = vrot.slane %v3509_v0, 2 }
 0x685   :  { %v3479_v59 = vadd.f32 %v3478_v51, %v3477_v34  ;;  %v3506_v16 = vrot.slane %v3505_v41, 1  ;;  %v3484_v6 = vrot.slane %v3483_v31, 1  ;;  %v3511_v50 = vadd.f32 %v3510_v53, %v3509_v0  ;;  %v3460_v0 = vld [vmem:[#allocation17] sm:$0xf] }
 0x687   :  { %v3507_v22 = vadd.f32 %v3506_v16, %v3505_v41  ;;  %v3516_v1 = vmul.f32 0.125, %v3479_v59  ;;  %v3485_v60 = vadd.f32 %v3484_v6, %v3483_v31  ;;  %v3512_v29 = vrot.slane %v3511_v50, 1 }
 0x689   :  { %v3520_v27 = vmul.f32 0.125, %v3507_v22  ;;  %v3524_v23 = vmul.f32 %v3516_v1, %v3516_v1  ;;  %v3513_v19 = vadd.f32 %v3512_v29, %v3511_v50  ;;  %v3517_v30 = vmul.f32 0.125, %v3485_v60 }
 0x68b   :  { %v3528_v25 = vsub.f32 %v3520_v27, %v3524_v23  ;;  %v3521_v37 = vmul.f32 0.125, %v3513_v19  ;;  %v3525_v62 = vmul.f32 %v3517_v30, %v3517_v30 }
 0x68d   :  { %v3532_v5 = vmax.f32 %v3528_v25, 0.0  ;;  %v3529_v8 = vsub.f32 %v3521_v37, %v3525_v62 }
 0x68f   :  { %v3557_v13 = vadd.f32 %v3546_v57, %v3532_v5  ;;  %v3533_v35 = vmax.f32 %v3529_v8, 0.0  ;;  %v3774_v8 = vld [vmem:[#allocation5] ss:$0 sm:$0xff] }
 0x691   :  { %v3558_v44 = vadd.f32 %v3550_v18, %v3533_v35  ;;  %3830 = vrsqrt.f32 %v3557_v13 }
 0x693   :  { %3832 = vrsqrt.f32 %v3558_v44 }
 0x69e   :  { %v3831_v12 = vpop.eup %3830 }
 0x6a0   :  { %v3833_v24 = vpop.eup %3832 }
 0x6a1   :  { %v3568_v36 = vcombine.low %v3831_v12, %v3833_v24 }
 0x6a3   :  { %v3582_v40 = vrot.slane %v3568_v36, %v4353_v32 }
 0x6a5   :  { %v3583_v14 = vcombine.low %v3575_v49, %v3582_v40 }
 0x6a7   :  { %v3590_v56 = vrot.slane %v3583_v14, %v4353_v32 }
 0x6a9   :  { %v3592_v55 = vmul.f32 %v3590_v56, %v3459_v10 }
 0x6ab   :  { %v3609_v39 = vrot.slane %v3592_v55, %v4253_v20  ;;  %v3597_v54 = vrot.slane %v3592_v55, %v4217_v26  ;;  %v3601_v46 = vrot.slane %v3592_v55, %v4244_v3  ;;  %v3605_v33 = vrot.slane %v3592_v55, %v4241_v2 }
 0x6ad   :  { %v3617_v15 = vmul.f32 %v3609_v39, %v3517_v30  ;;  %v3651_v58 = vmul.f32 %v3609_v39, %v3455_v42  ;;  %v3614_v63 = vmul.f32 %v3597_v54, %v4735_v21  ;;  %v3615_v38 = vmul.f32 %v3601_v46, %v4741_v43 }
 0x6ae   :  { %v3616_v61 = vmul.f32 %v3605_v33, %v3516_v1  ;;  %v3648_v28 = vmul.f32 %v3597_v54, %v4723_v48  ;;  %v3649_v47 = vmul.f32 %v3601_v46, %v4728_v11  ;;  %v3650_v45 = vmul.f32 %v3605_v33, %v4755_v9  ;;  %v3689_v9 = vld [vmem:[%s4810_s13] sm:$0xf] }
 0x6af   :  { %v3622_v17 = vcombine.low %v3614_v63, %v3615_v38  ;;  %v3694_v16 = vrot.slane %v3689_v9, %v4217_v26  ;;  %v3702_v60 = vrot.slane %v3689_v9, %v4241_v2  ;;  %v3706_v19 = vrot.slane %v3689_v9, %v4253_v20 }
 0x6b0   :  { %v3623_v7 = vcombine.low %v3616_v61, %v3617_v15 }
 0x6b1   :  { %v3630_v34 = vrot.slane %v3622_v17, %v4353_v32 }
 0x6b2   :  { %v3637_v52 = vrot.slane %v3623_v7, %v4353_v32 }
 0x6b4   :  { %v3638_v4 = vcombine.low %v3630_v34, %v3637_v52 }
 0x6b6   :  { %v3645_v42 = vrot.slane %v3638_v4, %v4353_v32  ;;  %v3698_v32 = vrot.slane %v3689_v9, %v4244_v3 }
 0x6b8   :  { %v3647_v21 = vsub.f32 %v3460_v0, %v3645_v42 }
 0x6ba   :  { %v3656_v43 = vrot.slane %v3647_v21, %v4217_v26  ;;  %v3660_v51 = vrot.slane %v3647_v21, %v4244_v3  ;;  %v3664_v48 = vrot.slane %v3647_v21, %v4241_v2  ;;  %v3668_v11 = vrot.slane %v3647_v21, %v4253_v20 }
 0x6bc   :  { %v3673_v41 = vadd.f32 %v3656_v43, %v3648_v28  ;;  %v3674_v31 = vadd.f32 %v3660_v51, %v3649_v47  ;;  %v3675_v53 = vadd.f32 %v3664_v48, %v3650_v45  ;;  %v3676_v59 = vadd.f32 %v3668_v11, %v3651_v58 }
 0x6be   :  { %vm3677_vm1 = vcmp.gt.f32.partialorder %v3673_v41, 0.0  ;;  %vm3678_vm2 = vcmp.gt.f32.partialorder %v3674_v31, 0.0  ;;  %vm3679_vm3 = vcmp.gt.f32.partialorder %v3675_v53, 0.0  ;;  %v3681_v6 = vmul.f32 0.2, %v3673_v41 }
 0x6bf   :  { %v3682_v50 = vmul.f32 0.2, %v3674_v31  ;;  %v3683_v22 = vmul.f32 0.2, %v3675_v53  ;;  %vm3680_vm4 = vcmp.gt.f32.partialorder %v3676_v59, 0.0 }
 0x6c0   :  { %v3684_v1 = vmul.f32 0.2, %v3676_v59  ;;  %v3685_v29 = vsel %vm3677_vm1, %v3673_v41, %v3681_v6 }
 0x6c1   :  { %v3686_v27 = vsel %vm3678_vm2, %v3674_v31, %v3682_v50  ;;  %v3687_v23 = vsel %vm3679_vm3, %v3675_v53, %v3683_v22  ;;  %v3711_v30 = vmul.f32 %v3694_v16, %v3685_v29 }
 0x6c2   :  { %v3712_v25 = vmul.f32 %v3698_v32, %v3686_v27  ;;  %v3688_v26 = vsel %vm3680_vm4, %v3676_v59, %v3684_v1  ;;  %v3713_v57 = vmul.f32 %v3702_v60, %v3687_v23 }
 0x6c3   :  { %v3714_v62 = vmul.f32 %v3706_v19, %v3688_v26 }
 0x6c4   :  { %v3715_v37 = vadd.f32 %v3712_v25, %v3711_v30 }
 0x6c6   :  { %v3716_v5 = vadd.f32 %v3715_v37, %v3713_v57 }
 0x6c8   :  { %v3717_v3 = vadd.f32 %v3716_v5, %v3714_v62 }
 0x6ca   :  { %3718 = vadd.xlane.f32.xlu0 %v3717_v3 }
 0x753   :  { %v3719_v18 = vpop.xlane.xlu0 %3718 }
 0x754   :  { %v3727_v13 = vadd.f32 %v3774_v8, %v3719_v18 }
 0x756   :  { %v3728_v35 = vsub.f32 0.0, %v3727_v13 }
 0x758   :  { %v3729_v44 = vmul.f32 1.442695, %v3728_v35 }
 0x75a   :  { %3834 = vpow2.f32 %v3729_v44 }
 0x767   :  { %v3835_v2 = vpop.eup %3834 }
 0x768   :  { %v3731_v12 = vadd.f32 1.0, %v3835_v2 }
 0x76a   :  { %3836 = vrcp.f32 %v3731_v12 }
 0x777   :  { %v3837_v24 = vpop.eup %3836 }
 0x778   :  { %3736 = vperm.xlu0 %3825, %v3837_v24  }
 0x7f3   :  { %v3737_v20 = vpop.permute.xlu0 %3736 }
 0x7f4   :  { %3739 = vst [vmem:[%s4812_s15] sm:$0xff] %v3737_v20 }
 0x7f5   :  { %3744 = vsyncpa [#allocation7], 1 }
 0x7f6   :  { %3745 = vsyncpa [#allocation9], 1 }
 0x7f7   :  { %3746 = vsyncpa [#allocation12], 1 }
 0x7f8   :  { %3747 = vsyncpa [#allocation15], 1 }
 0x7f9   :  { %3748 = vsyncpa [#allocation18], 1 }
 0x7fa   :  { %3749 = vsyncmov [#allocation4] }
 0x7fd   :  { %s3750_s0 = vpop.sfrf %3749 }
 0x7fe   :  { %p3775_p13 = scmp.ne.s32.totalorder %s3750_s0, 0 }
 0x800   :  { %3754 = shalt.err (%p3775_p13)  }
 0x801   :  { %3756 = vsyncmov [#allocation4 + $0x1] }
 0x804   :  { %s3757_s1 = vpop.sfrf %3756 }
 0x805   :  { %p3776_p0 = scmp.ne.s32.totalorder %s3757_s1, 0 }
 0x807   :  { %3761 = shalt.err (%p3776_p0)  }

</bundles_post_ra>
